<compile_context>
chip_gen: v6e
topology: v6e:2x2x1
jax: 0.10.0
libtpu: 0.0.40
codegen_flags: <defaults>
</compile_context>

<pallas_src>
import functools

import jax
import jax.numpy as jnp
from jax.experimental import pallas as pl
from jax.experimental.pallas import tpu as pltpu

KSIZE = 5
PAD = 2


def _gelu_exact(v):
    # Exact (erf-based) GELU matching PyTorch nn.GELU() default.  erf is built
    # from exp only (Abramowitz & Stegun 7.1.26, |err| <= 1.5e-7) so it lowers
    # on every TPU generation without relying on an erf primitive.
    z = v * 0.7071067811865476
    s = jnp.where(z >= 0.0, 1.0, -1.0)
    az = jnp.abs(z)
    t = 1.0 / (1.0 + 0.3275911 * az)
    poly = ((((1.061405429 * t - 1.453152027) * t + 1.421413741) * t
             - 0.284496736) * t + 0.254829592) * t
    erf = s * (1.0 - poly * jnp.exp(-az * az))
    return 0.5 * v * (1.0 + erf)


def _attention_kernel(H, W, Cp, TH,
                      x_hbm, w1t_ref, b1_ref, wd_ref, bd_ref, w2t_ref, b2_ref,
                      o_ref, xh_ref, sem):
    n = pl.program_id(0)
    i = pl.program_id(1)
    R = TH + 2 * PAD
    r0 = pl.multiple_of(i * TH, TH)

    # ---- fetch rows [r0-PAD, r0+TH+PAD) of image n, reading x only once ----
    # Boundary tiles clamp the halo source into the image; whatever lands in
    # those rows is zeroed below by the row-validity mask (which also
    # implements the conv's zero padding on the post-GELU features).
    top = jnp.maximum(r0 - PAD, 0)
    bot = jnp.minimum(r0 + TH, H - PAD)
    cp_mid = pltpu.make_async_copy(x_hbm.at[n, pl.ds(r0, TH)],
                                   xh_ref.at[pl.ds(PAD, TH)], sem.at[0])
    cp_top = pltpu.make_async_copy(x_hbm.at[n, pl.ds(top, PAD)],
                                   xh_ref.at[pl.ds(0, PAD)], sem.at[1])
    cp_bot = pltpu.make_async_copy(x_hbm.at[n, pl.ds(bot, PAD)],
                                   xh_ref.at[pl.ds(PAD + TH, PAD)], sem.at[2])
    cp_mid.start(); cp_top.start(); cp_bot.start()
    cp_mid.wait(); cp_top.wait(); cp_bot.wait()

    xin = xh_ref[...].astype(jnp.float32)          # (R, W, Cp); no-op for f32 inputs

    # ---- proj_1 (1x1 conv == channel matmul on the MXU) + exact GELU ----
    y = jnp.dot(xin.reshape(R * W, Cp), w1t_ref[...],
                preferred_element_type=jnp.float32)
    y = (y + b1_ref[...]).reshape(R, W, Cp)
    y = _gelu_exact(y)

    # zero post-GELU rows that fall outside the image (= conv zero padding in H)
    row = jax.lax.broadcasted_iota(jnp.int32, (R, 1, 1), 0) + (r0 - PAD)
    y = jnp.where(jnp.logical_and(row >= 0, row < H), y, 0.0)

    # ---- HKA: depthwise 5x5 conv; width shifts on the XLU via pltpu.roll ----
    col = jax.lax.broadcasted_iota(jnp.int32, (1, W, 1), 1)
    wdt = wd_ref[...]                               # (5, 5, Cp) f32
    acc = jnp.zeros((TH, W, Cp), jnp.float32)
    for kw in range(KSIZE):
        d = kw - PAD
        if d == 0:
            tap = y
        else:
            shifted = pltpu.roll(y, shift=(-d) % W, axis=1)
            tap = jnp.where(jnp.logical_and(col + d >= 0, col + d < W),
                            shifted, 0.0)
        for kh in range(KSIZE):
            # output row o needs halo row o + kh; weight is per-channel (lane)
            acc = acc + tap[kh:kh + TH] * wdt[kh, kw]
    attn = acc + bd_ref[...]
    z = y[PAD:PAD + TH] * attn                      # HKA gating: u * attn

    # ---- proj_2 (1x1 conv) + residual ----
    p2 = jnp.dot(z.reshape(TH * W, Cp), w2t_ref[...],
                 preferred_element_type=jnp.float32)
    p2 = (p2 + b2_ref[...]).reshape(TH, W, Cp)
    o_ref[0] = (p2 + xin[PAD:PAD + TH]).astype(o_ref.dtype)


def attention_forward(x_nchw, w1, b1, wd, bd, w2, b2, *, tile_h=8):
    """Fused Attention forward.  x: (N,C,H,W); w1,w2: (C,C,1,1); wd: (C,1,5,5)."""
    N, C, H, W = x_nchw.shape
    TH = tile_h if (H % tile_h == 0 and H >= tile_h) else H
    Cp = ((C + 127) // 128) * 128                   # lane-dense channels
    f32 = jnp.float32

    def pad_to(a, shape):
        return jnp.pad(a, [(0, s - d) for d, s in zip(a.shape, shape)])

    # Glue: NCHW -> NHWC so channels sit on the 128-lane axis; zero-pad C.
    x = jnp.transpose(x_nchw, (0, 2, 3, 1))
    if Cp != C:
        x = jnp.pad(x, ((0, 0), (0, 0), (0, 0), (0, Cp - C)))

    w1t = pad_to(w1[:, :, 0, 0].T.astype(f32), (Cp, Cp))          # y = x @ w1t
    w2t = pad_to(w2[:, :, 0, 0].T.astype(f32), (Cp, Cp))
    wdt = pad_to(jnp.transpose(wd[:, 0, :, :], (1, 2, 0)).astype(f32),
                 (KSIZE, KSIZE, Cp))
    b1p = pad_to(b1.astype(f32).reshape(1, C), (1, Cp))
    bdp = pad_to(bd.astype(f32).reshape(1, C), (1, Cp))
    b2p = pad_to(b2.astype(f32).reshape(1, C), (1, Cp))

    kernel = functools.partial(_attention_kernel, H, W, Cp, TH)
    num_h = H // TH

    out = pl.pallas_call(
        kernel,
        out_shape=jax.ShapeDtypeStruct((N, H, W, Cp), x.dtype),
        grid_spec=pltpu.PrefetchScalarGridSpec(
            num_scalar_prefetch=0,
            grid=(N, num_h),
            in_specs=[
                pl.BlockSpec(memory_space=pl.ANY),                       # x (manual halo DMA)
                pl.BlockSpec((Cp, Cp), lambda n, i: (0, 0)),             # proj_1 weight^T
                pl.BlockSpec((1, Cp), lambda n, i: (0, 0)),              # proj_1 bias
                pl.BlockSpec((KSIZE, KSIZE, Cp), lambda n, i: (0, 0, 0)),  # depthwise weight
                pl.BlockSpec((1, Cp), lambda n, i: (0, 0)),              # depthwise bias
                pl.BlockSpec((Cp, Cp), lambda n, i: (0, 0)),             # proj_2 weight^T
                pl.BlockSpec((1, Cp), lambda n, i: (0, 0)),              # proj_2 bias
            ],
            out_specs=pl.BlockSpec((1, TH, W, Cp), lambda n, i: (n, i, 0, 0)),
            scratch_shapes=[
                pltpu.VMEM((TH + 2 * PAD, W, Cp), x.dtype),              # halo row buffer
                pltpu.SemaphoreType.DMA((3,)),
            ],
        ),
        compiler_params=pltpu.CompilerParams(
            dimension_semantics=("parallel", "parallel"),
            vmem_limit_bytes=64 * 1024 * 1024,
        ),
    )(x, w1t, b1p, wdt, bdp, w2t, b2p)

    out = out[..., :C]
    return jnp.transpose(out, (0, 3, 1, 2))         # back to NCHW


def reference_attention(x, w1, b1, wd, bd, w2, b2):
    """Pure-JAX (XLA) reference of the PyTorch Attention forward."""
    N, C, H, W = x.shape
    dn = ("NCHW", "OIHW", "NCHW")
    y = jax.lax.conv_general_dilated(x, w1, (1, 1), "VALID", dimension_numbers=dn)
    y = y + b1.reshape(1, C, 1, 1)
    y = jax.nn.gelu(y, approximate=False)
    attn = jax.lax.conv_general_dilated(y, wd, (1, 1), ((PAD, PAD), (PAD, PAD)),
                                        dimension_numbers=dn, feature_group_count=C)
    attn = attn + bd.reshape(1, C, 1, 1)
    z = y * attn
    p2 = jax.lax.conv_general_dilated(z, w2, (1, 1), "VALID", dimension_numbers=dn)
    p2 = p2 + b2.reshape(1, C, 1, 1)
    return p2 + x


if __name__ == "__main__":
    # Small deterministic example consistent with Attention(d_model=C) on NCHW input.
    N, C, H, W = 2, 4, 16, 16
    key = jax.random.PRNGKey(0)
    ks = jax.random.split(key, 7)

    x = jax.random.normal(ks[0], (N, C, H, W), dtype=jnp.float32)
    w1 = jax.random.normal(ks[1], (C, C, 1, 1), dtype=jnp.float32) * 0.1
    b1 = jax.random.normal(ks[2], (C,), dtype=jnp.float32) * 0.1
    wd = jax.random.normal(ks[3], (C, 1, KSIZE, KSIZE), dtype=jnp.float32) * 0.1
    bd = jax.random.normal(ks[4], (C,), dtype=jnp.float32) * 0.1
    w2 = jax.random.normal(ks[5], (C, C, 1, 1), dtype=jnp.float32) * 0.1
    b2 = jax.random.normal(ks[6], (C,), dtype=jnp.float32) * 0.1

    out = attention_forward(x, w1, b1, wd, bd, w2, b2)
    out = jax.block_until_ready(out)

    ref = reference_attention(x, w1, b1, wd, bd, w2, b2)
    assert out.shape == ref.shape == (N, C, H, W)
    assert jnp.allclose(out, ref, atol=1e-4, rtol=1e-4), (
        "mismatch vs reference, max abs diff = %e"
        % float(jnp.max(jnp.abs(out - ref))))

    print("KERNEL_OK")
</pallas_src>

<mosaic_0001>
module attributes {stable_mosaic.version = 11 : i64} {
  func.func @_attention_kernel(%arg0: i32, %arg1: i32, %arg2: memref<2x16x16x128xf32, #tpu.memory_space<any>>, %arg3: memref<128x128xf32, #tpu.memory_space<vmem>>, %arg4: memref<1x128xf32, #tpu.memory_space<vmem>>, %arg5: memref<5x5x128xf32, #tpu.memory_space<vmem>>, %arg6: memref<1x128xf32, #tpu.memory_space<vmem>>, %arg7: memref<128x128xf32, #tpu.memory_space<vmem>>, %arg8: memref<1x128xf32, #tpu.memory_space<vmem>>, %arg9: memref<1x8x16x128xf32, #tpu.memory_space<vmem>>, %arg10: memref<12x16x128xf32, #tpu.memory_space<vmem>>, %arg11: memref<3x!tpu.dma_semaphore, #tpu.memory_space<semaphore_mem>>) attributes {dimension_semantics = [#tpu.dimension_semantics<parallel>, #tpu.dimension_semantics<parallel>], iteration_bounds = array<i64: 2, 2>, scalar_prefetch = 0 : i64, scratch_operands = 2 : i64, tpu.core_type = #tpu.core_type<tc>, window_params = [{}, {pipeline_mode = #tpu.pipeline_mode<synchronous>, transform_indices = @transform_1, window_bounds = array<i64: 128, 128>}, {pipeline_mode = #tpu.pipeline_mode<synchronous>, transform_indices = @transform_2, window_bounds = array<i64: 1, 128>}, {pipeline_mode = #tpu.pipeline_mode<synchronous>, transform_indices = @transform_3, window_bounds = array<i64: 5, 5, 128>}, {pipeline_mode = #tpu.pipeline_mode<synchronous>, transform_indices = @transform_4, window_bounds = array<i64: 1, 128>}, {pipeline_mode = #tpu.pipeline_mode<synchronous>, transform_indices = @transform_5, window_bounds = array<i64: 128, 128>}, {pipeline_mode = #tpu.pipeline_mode<synchronous>, transform_indices = @transform_6, window_bounds = array<i64: 1, 128>}, {transform_indices = @transform_7, window_bounds = array<i64: 1, 8, 16, 128>}]} {
    %c8_i32 = arith.constant 8 : i32
    %0 = arith.muli %arg1, %c8_i32 : i32
    %1 = tpu.assume_multiple %0, 8 : i32
    %c2_i32 = arith.constant 2 : i32
    %2 = arith.subi %1, %c2_i32 : i32
    %c0_i32 = arith.constant 0 : i32
    %3 = arith.maxsi %2, %c0_i32 : i32
    %c8_i32_0 = arith.constant 8 : i32
    %4 = arith.addi %1, %c8_i32_0 : i32
    %c14_i32 = arith.constant 14 : i32
    %5 = arith.minsi %4, %c14_i32 : i32
    %c0_i32_1 = arith.constant 0 : i32
    %c0_i32_2 = arith.constant 0 : i32
    %c0_i32_3 = arith.constant 0 : i32
    %6 = tpu.memref_slice %arg2[%arg0, %1, %c0_i32_2, %c0_i32_3] : memref<2x16x16x128xf32, #tpu.memory_space<any>> -> memref<1x8x16x128xf32, #tpu.memory_space<any>>
    %7 = tpu.memref_squeeze %6 : memref<1x8x16x128xf32, #tpu.memory_space<any>> -> memref<8x16x128xf32, #tpu.memory_space<any>>
    %c2_i32_4 = arith.constant 2 : i32
    %c0_i32_5 = arith.constant 0 : i32
    %c0_i32_6 = arith.constant 0 : i32
    %8 = tpu.memref_slice %arg10[%c2_i32_4, %c0_i32_5, %c0_i32_6] : memref<12x16x128xf32, #tpu.memory_space<vmem>> -> memref<8x16x128xf32, #tpu.memory_space<vmem>>
    %9 = tpu.memref_slice %arg11[%c0_i32_1] : memref<3x!tpu.dma_semaphore, #tpu.memory_space<semaphore_mem>> -> memref<1x!tpu.dma_semaphore, #tpu.memory_space<semaphore_mem>>
    %10 = tpu.memref_squeeze %9 : memref<1x!tpu.dma_semaphore, #tpu.memory_space<semaphore_mem>> -> memref<!tpu.dma_semaphore, #tpu.memory_space<semaphore_mem>>
    tpu.enqueue_dma source(%7 : memref<8x16x128xf32, #tpu.memory_space<any>>) target(%8 : memref<8x16x128xf32, #tpu.memory_space<vmem>>) target_semaphore(%10 : memref<!tpu.dma_semaphore, #tpu.memory_space<semaphore_mem>>)
    %c1_i32 = arith.constant 1 : i32
    %c0_i32_7 = arith.constant 0 : i32
    %c0_i32_8 = arith.constant 0 : i32
    %11 = tpu.memref_slice %arg2[%arg0, %3, %c0_i32_7, %c0_i32_8] : memref<2x16x16x128xf32, #tpu.memory_space<any>> -> memref<1x2x16x128xf32, #tpu.memory_space<any>>
    %12 = tpu.memref_squeeze %11 : memref<1x2x16x128xf32, #tpu.memory_space<any>> -> memref<2x16x128xf32, #tpu.memory_space<any>>
    %c0_i32_9 = arith.constant 0 : i32
    %c0_i32_10 = arith.constant 0 : i32
    %c0_i32_11 = arith.constant 0 : i32
    %13 = tpu.memref_slice %arg10[%c0_i32_9, %c0_i32_10, %c0_i32_11] : memref<12x16x128xf32, #tpu.memory_space<vmem>> -> memref<2x16x128xf32, #tpu.memory_space<vmem>>
    %14 = tpu.memref_slice %arg11[%c1_i32] : memref<3x!tpu.dma_semaphore, #tpu.memory_space<semaphore_mem>> -> memref<1x!tpu.dma_semaphore, #tpu.memory_space<semaphore_mem>>
    %15 = tpu.memref_squeeze %14 : memref<1x!tpu.dma_semaphore, #tpu.memory_space<semaphore_mem>> -> memref<!tpu.dma_semaphore, #tpu.memory_space<semaphore_mem>>
    tpu.enqueue_dma source(%12 : memref<2x16x128xf32, #tpu.memory_space<any>>) target(%13 : memref<2x16x128xf32, #tpu.memory_space<vmem>>) target_semaphore(%15 : memref<!tpu.dma_semaphore, #tpu.memory_space<semaphore_mem>>)
    %c2_i32_12 = arith.constant 2 : i32
    %c0_i32_13 = arith.constant 0 : i32
    %c0_i32_14 = arith.constant 0 : i32
    %16 = tpu.memref_slice %arg2[%arg0, %5, %c0_i32_13, %c0_i32_14] : memref<2x16x16x128xf32, #tpu.memory_space<any>> -> memref<1x2x16x128xf32, #tpu.memory_space<any>>
    %17 = tpu.memref_squeeze %16 : memref<1x2x16x128xf32, #tpu.memory_space<any>> -> memref<2x16x128xf32, #tpu.memory_space<any>>
    %c10_i32 = arith.constant 10 : i32
    %c0_i32_15 = arith.constant 0 : i32
    %c0_i32_16 = arith.constant 0 : i32
    %18 = tpu.memref_slice %arg10[%c10_i32, %c0_i32_15, %c0_i32_16] : memref<12x16x128xf32, #tpu.memory_space<vmem>> -> memref<2x16x128xf32, #tpu.memory_space<vmem>>
    %19 = tpu.memref_slice %arg11[%c2_i32_12] : memref<3x!tpu.dma_semaphore, #tpu.memory_space<semaphore_mem>> -> memref<1x!tpu.dma_semaphore, #tpu.memory_space<semaphore_mem>>
    %20 = tpu.memref_squeeze %19 : memref<1x!tpu.dma_semaphore, #tpu.memory_space<semaphore_mem>> -> memref<!tpu.dma_semaphore, #tpu.memory_space<semaphore_mem>>
    tpu.enqueue_dma source(%17 : memref<2x16x128xf32, #tpu.memory_space<any>>) target(%18 : memref<2x16x128xf32, #tpu.memory_space<vmem>>) target_semaphore(%20 : memref<!tpu.dma_semaphore, #tpu.memory_space<semaphore_mem>>)
    %c0_i32_17 = arith.constant 0 : i32
    %c0_i32_18 = arith.constant 0 : i32
    %c0_i32_19 = arith.constant 0 : i32
    %21 = tpu.memref_slice %arg2[%arg0, %1, %c0_i32_18, %c0_i32_19] : memref<2x16x16x128xf32, #tpu.memory_space<any>> -> memref<1x8x16x128xf32, #tpu.memory_space<any>>
    %22 = tpu.memref_squeeze %21 : memref<1x8x16x128xf32, #tpu.memory_space<any>> -> memref<8x16x128xf32, #tpu.memory_space<any>>
    %c2_i32_20 = arith.constant 2 : i32
    %c0_i32_21 = arith.constant 0 : i32
    %c0_i32_22 = arith.constant 0 : i32
    %23 = tpu.memref_slice %arg10[%c2_i32_20, %c0_i32_21, %c0_i32_22] : memref<12x16x128xf32, #tpu.memory_space<vmem>> -> memref<8x16x128xf32, #tpu.memory_space<vmem>>
    %24 = tpu.memref_slice %arg11[%c0_i32_17] : memref<3x!tpu.dma_semaphore, #tpu.memory_space<semaphore_mem>> -> memref<1x!tpu.dma_semaphore, #tpu.memory_space<semaphore_mem>>
    %25 = tpu.memref_squeeze %24 : memref<1x!tpu.dma_semaphore, #tpu.memory_space<semaphore_mem>> -> memref<!tpu.dma_semaphore, #tpu.memory_space<semaphore_mem>>
    tpu.wait_dma2 semaphore(%25 : memref<!tpu.dma_semaphore, #tpu.memory_space<semaphore_mem>>) src(%22 : memref<8x16x128xf32, #tpu.memory_space<any>>) dst(%23 : memref<8x16x128xf32, #tpu.memory_space<vmem>>)
    %c1_i32_23 = arith.constant 1 : i32
    %c0_i32_24 = arith.constant 0 : i32
    %c0_i32_25 = arith.constant 0 : i32
    %26 = tpu.memref_slice %arg2[%arg0, %3, %c0_i32_24, %c0_i32_25] : memref<2x16x16x128xf32, #tpu.memory_space<any>> -> memref<1x2x16x128xf32, #tpu.memory_space<any>>
    %27 = tpu.memref_squeeze %26 : memref<1x2x16x128xf32, #tpu.memory_space<any>> -> memref<2x16x128xf32, #tpu.memory_space<any>>
    %c0_i32_26 = arith.constant 0 : i32
    %c0_i32_27 = arith.constant 0 : i32
    %c0_i32_28 = arith.constant 0 : i32
    %28 = tpu.memref_slice %arg10[%c0_i32_26, %c0_i32_27, %c0_i32_28] : memref<12x16x128xf32, #tpu.memory_space<vmem>> -> memref<2x16x128xf32, #tpu.memory_space<vmem>>
    %29 = tpu.memref_slice %arg11[%c1_i32_23] : memref<3x!tpu.dma_semaphore, #tpu.memory_space<semaphore_mem>> -> memref<1x!tpu.dma_semaphore, #tpu.memory_space<semaphore_mem>>
    %30 = tpu.memref_squeeze %29 : memref<1x!tpu.dma_semaphore, #tpu.memory_space<semaphore_mem>> -> memref<!tpu.dma_semaphore, #tpu.memory_space<semaphore_mem>>
    tpu.wait_dma2 semaphore(%30 : memref<!tpu.dma_semaphore, #tpu.memory_space<semaphore_mem>>) src(%27 : memref<2x16x128xf32, #tpu.memory_space<any>>) dst(%28 : memref<2x16x128xf32, #tpu.memory_space<vmem>>)
    %c2_i32_29 = arith.constant 2 : i32
    %c0_i32_30 = arith.constant 0 : i32
    %c0_i32_31 = arith.constant 0 : i32
    %31 = tpu.memref_slice %arg2[%arg0, %5, %c0_i32_30, %c0_i32_31] : memref<2x16x16x128xf32, #tpu.memory_space<any>> -> memref<1x2x16x128xf32, #tpu.memory_space<any>>
    %32 = tpu.memref_squeeze %31 : memref<1x2x16x128xf32, #tpu.memory_space<any>> -> memref<2x16x128xf32, #tpu.memory_space<any>>
    %c10_i32_32 = arith.constant 10 : i32
    %c0_i32_33 = arith.constant 0 : i32
    %c0_i32_34 = arith.constant 0 : i32
    %33 = tpu.memref_slice %arg10[%c10_i32_32, %c0_i32_33, %c0_i32_34] : memref<12x16x128xf32, #tpu.memory_space<vmem>> -> memref<2x16x128xf32, #tpu.memory_space<vmem>>
    %34 = tpu.memref_slice %arg11[%c2_i32_29] : memref<3x!tpu.dma_semaphore, #tpu.memory_space<semaphore_mem>> -> memref<1x!tpu.dma_semaphore, #tpu.memory_space<semaphore_mem>>
    %35 = tpu.memref_squeeze %34 : memref<1x!tpu.dma_semaphore, #tpu.memory_space<semaphore_mem>> -> memref<!tpu.dma_semaphore, #tpu.memory_space<semaphore_mem>>
    tpu.wait_dma2 semaphore(%35 : memref<!tpu.dma_semaphore, #tpu.memory_space<semaphore_mem>>) src(%32 : memref<2x16x128xf32, #tpu.memory_space<any>>) dst(%33 : memref<2x16x128xf32, #tpu.memory_space<vmem>>)
    %c0 = arith.constant 0 : index
    %c0_35 = arith.constant 0 : index
    %c0_36 = arith.constant 0 : index
    %36 = vector.load %arg10[%c0, %c0_35, %c0_36] : memref<12x16x128xf32, #tpu.memory_space<vmem>>, vector<12x16x128xf32>
    %37 = vector.shape_cast %36 : vector<12x16x128xf32> to vector<192x128xf32>
    %c0_37 = arith.constant 0 : index
    %c0_38 = arith.constant 0 : index
    %38 = vector.load %arg3[%c0_37, %c0_38] : memref<128x128xf32, #tpu.memory_space<vmem>>, vector<128x128xf32>
    %cst = arith.constant dense<0.000000e+00> : vector<192x128xf32>
    %39 = tpu.matmul %37, %38, %cst {dimension_numbers = #tpu.dot_dimension_numbers<[1], [0], [0], [1], [0, 0, 1, 1], [], []>} : vector<192x128xf32>, vector<128x128xf32>, vector<192x128xf32> -> vector<192x128xf32>
    %c0_39 = arith.constant 0 : index
    %c0_40 = arith.constant 0 : index
    %40 = vector.load %arg4[%c0_39, %c0_40] : memref<1x128xf32, #tpu.memory_space<vmem>>, vector<1x128xf32>
    %41 = vector.broadcast %40 : vector<1x128xf32> to vector<192x128xf32>
    %42 = arith.addf %39, %41 : vector<192x128xf32>
    %43 = vector.shape_cast %42 : vector<192x128xf32> to vector<12x16x128xf32>
    %cst_41 = arith.constant 0.707106769 : f32
    %44 = vector.broadcast %cst_41 : f32 to vector<12x16x128xf32>
    %45 = arith.mulf %43, %44 : vector<12x16x128xf32>
    %cst_42 = arith.constant 0.000000e+00 : f32
    %46 = vector.broadcast %cst_42 : f32 to vector<12x16x128xf32>
    %47 = arith.cmpf oge, %45, %46 : vector<12x16x128xf32>
    %cst_43 = arith.constant 1.000000e+00 : f32
    %cst_44 = arith.constant -1.000000e+00 : f32
    %48 = vector.broadcast %cst_43 : f32 to vector<12x16x128xf32>
    %49 = vector.broadcast %cst_44 : f32 to vector<12x16x128xf32>
    %50 = arith.select %47, %48, %49 : vector<12x16x128xi1>, vector<12x16x128xf32>
    %51 = math.absf %45 : vector<12x16x128xf32>
    %cst_45 = arith.constant 0.327591091 : f32
    %52 = vector.broadcast %cst_45 : f32 to vector<12x16x128xf32>
    %53 = arith.mulf %52, %51 : vector<12x16x128xf32>
    %cst_46 = arith.constant 1.000000e+00 : f32
    %54 = vector.broadcast %cst_46 : f32 to vector<12x16x128xf32>
    %55 = arith.addf %54, %53 : vector<12x16x128xf32>
    %cst_47 = arith.constant 1.000000e+00 : f32
    %56 = vector.broadcast %cst_47 : f32 to vector<12x16x128xf32>
    %57 = arith.divf %56, %55 : vector<12x16x128xf32>
    %cst_48 = arith.constant 1.06140542 : f32
    %58 = vector.broadcast %cst_48 : f32 to vector<12x16x128xf32>
    %59 = arith.mulf %58, %57 : vector<12x16x128xf32>
    %cst_49 = arith.constant 1.45315206 : f32
    %60 = vector.broadcast %cst_49 : f32 to vector<12x16x128xf32>
    %61 = arith.subf %59, %60 : vector<12x16x128xf32>
    %62 = arith.mulf %61, %57 : vector<12x16x128xf32>
    %cst_50 = arith.constant 1.42141378 : f32
    %63 = vector.broadcast %cst_50 : f32 to vector<12x16x128xf32>
    %64 = arith.addf %62, %63 : vector<12x16x128xf32>
    %65 = arith.mulf %64, %57 : vector<12x16x128xf32>
    %cst_51 = arith.constant 0.284496725 : f32
    %66 = vector.broadcast %cst_51 : f32 to vector<12x16x128xf32>
    %67 = arith.subf %65, %66 : vector<12x16x128xf32>
    %68 = arith.mulf %67, %57 : vector<12x16x128xf32>
    %cst_52 = arith.constant 0.254829586 : f32
    %69 = vector.broadcast %cst_52 : f32 to vector<12x16x128xf32>
    %70 = arith.addf %68, %69 : vector<12x16x128xf32>
    %71 = arith.mulf %70, %57 : vector<12x16x128xf32>
    %cst_53 = arith.constant 0.000000e+00 : f32
    %72 = vector.broadcast %cst_53 : f32 to vector<12x16x128xf32>
    %73 = arith.subf %72, %51 : vector<12x16x128xf32>
    %74 = arith.mulf %73, %51 : vector<12x16x128xf32>
    %75 = math.exp %74 : vector<12x16x128xf32>
    %76 = arith.mulf %71, %75 : vector<12x16x128xf32>
    %cst_54 = arith.constant 1.000000e+00 : f32
    %77 = vector.broadcast %cst_54 : f32 to vector<12x16x128xf32>
    %78 = arith.subf %77, %76 : vector<12x16x128xf32>
    %79 = arith.mulf %50, %78 : vector<12x16x128xf32>
    %cst_55 = arith.constant 5.000000e-01 : f32
    %80 = vector.broadcast %cst_55 : f32 to vector<12x16x128xf32>
    %81 = arith.mulf %80, %43 : vector<12x16x128xf32>
    %cst_56 = arith.constant 1.000000e+00 : f32
    %82 = vector.broadcast %cst_56 : f32 to vector<12x16x128xf32>
    %83 = arith.addf %82, %79 : vector<12x16x128xf32>
    %84 = arith.mulf %81, %83 : vector<12x16x128xf32>
    %85 = tpu.iota {dimensions = array<i32: 0>} : vector<12x1x1xi32>
    %c2_i32_57 = arith.constant 2 : i32
    %86 = arith.subi %1, %c2_i32_57 : i32
    %87 = vector.broadcast %86 : i32 to vector<12x1x1xi32>
    %88 = arith.addi %85, %87 : vector<12x1x1xi32>
    %c0_i32_58 = arith.constant 0 : i32
    %89 = vector.broadcast %c0_i32_58 : i32 to vector<12x1x1xi32>
    %90 = arith.cmpi sge, %88, %89 : vector<12x1x1xi32>
    %c16_i32 = arith.constant 16 : i32
    %91 = vector.broadcast %c16_i32 : i32 to vector<12x1x1xi32>
    %92 = arith.cmpi slt, %88, %91 : vector<12x1x1xi32>
    %93 = arith.andi %90, %92 : vector<12x1x1xi1>
    %cst_59 = arith.constant 0.000000e+00 : f32
    %94 = vector.shape_cast %93 : vector<12x1x1xi1> to vector<12x1x1xi1>
    %95 = vector.broadcast %94 : vector<12x1x1xi1> to vector<12x16x128xi1>
    %96 = vector.broadcast %cst_59 : f32 to vector<12x16x128xf32>
    %97 = arith.select %95, %84, %96 : vector<12x16x128xi1>, vector<12x16x128xf32>
    %98 = tpu.iota {dimensions = array<i32: 1>} : vector<1x16x1xi32>
    %c0_60 = arith.constant 0 : index
    %c0_61 = arith.constant 0 : index
    %c0_62 = arith.constant 0 : index
    %99 = vector.load %arg5[%c0_60, %c0_61, %c0_62] : memref<5x5x128xf32, #tpu.memory_space<vmem>>, vector<5x5x128xf32>
    %cst_63 = arith.constant 0.000000e+00 : f32
    %100 = vector.broadcast %cst_63 : f32 to vector<8x16x128xf32>
    %c2_i32_64 = arith.constant 2 : i32
    %101 = tpu.dynamic_rotate %97 by %c2_i32_64 dim 1 : vector<12x16x128xf32>, i32 -> vector<12x16x128xf32>
    %c-2_i32 = arith.constant -2 : i32
    %102 = vector.broadcast %c-2_i32 : i32 to vector<1x16x1xi32>
    %103 = arith.addi %98, %102 : vector<1x16x1xi32>
    %c0_i32_65 = arith.constant 0 : i32
    %104 = vector.broadcast %c0_i32_65 : i32 to vector<1x16x1xi32>
    %105 = arith.cmpi sge, %103, %104 : vector<1x16x1xi32>
    %c-2_i32_66 = arith.constant -2 : i32
    %106 = vector.broadcast %c-2_i32_66 : i32 to vector<1x16x1xi32>
    %107 = arith.addi %98, %106 : vector<1x16x1xi32>
    %c16_i32_67 = arith.constant 16 : i32
    %108 = vector.broadcast %c16_i32_67 : i32 to vector<1x16x1xi32>
    %109 = arith.cmpi slt, %107, %108 : vector<1x16x1xi32>
    %110 = arith.andi %105, %109 : vector<1x16x1xi1>
    %cst_68 = arith.constant 0.000000e+00 : f32
    %111 = vector.shape_cast %110 : vector<1x16x1xi1> to vector<1x16x1xi1>
    %112 = vector.broadcast %111 : vector<1x16x1xi1> to vector<12x16x128xi1>
    %113 = vector.broadcast %cst_68 : f32 to vector<12x16x128xf32>
    %114 = arith.select %112, %101, %113 : vector<12x16x128xi1>, vector<12x16x128xf32>
    %115 = vector.extract_strided_slice %114 {offsets = [0, 0, 0], sizes = [8, 16, 128], strides = [1, 1, 1]} : vector<12x16x128xf32> to vector<8x16x128xf32>
    %116 = vector.extract_strided_slice %99 {offsets = [0, 0, 0], sizes = [1, 1, 128], strides = [1, 1, 1]} : vector<5x5x128xf32> to vector<1x1x128xf32>
    %117 = vector.shape_cast %116 : vector<1x1x128xf32> to vector<128xf32>
    %118 = vector.shape_cast %117 : vector<128xf32> to vector<1x1x128xf32>
    %119 = vector.broadcast %118 : vector<1x1x128xf32> to vector<8x16x128xf32>
    %120 = arith.mulf %115, %119 : vector<8x16x128xf32>
    %121 = arith.addf %100, %120 : vector<8x16x128xf32>
    %122 = vector.extract_strided_slice %114 {offsets = [1, 0, 0], sizes = [8, 16, 128], strides = [1, 1, 1]} : vector<12x16x128xf32> to vector<8x16x128xf32>
    %123 = vector.extract_strided_slice %99 {offsets = [1, 0, 0], sizes = [1, 1, 128], strides = [1, 1, 1]} : vector<5x5x128xf32> to vector<1x1x128xf32>
    %124 = vector.shape_cast %123 : vector<1x1x128xf32> to vector<128xf32>
    %125 = vector.shape_cast %124 : vector<128xf32> to vector<1x1x128xf32>
    %126 = vector.broadcast %125 : vector<1x1x128xf32> to vector<8x16x128xf32>
    %127 = arith.mulf %122, %126 : vector<8x16x128xf32>
    %128 = arith.addf %121, %127 : vector<8x16x128xf32>
    %129 = vector.extract_strided_slice %114 {offsets = [2, 0, 0], sizes = [8, 16, 128], strides = [1, 1, 1]} : vector<12x16x128xf32> to vector<8x16x128xf32>
    %130 = vector.extract_strided_slice %99 {offsets = [2, 0, 0], sizes = [1, 1, 128], strides = [1, 1, 1]} : vector<5x5x128xf32> to vector<1x1x128xf32>
    %131 = vector.shape_cast %130 : vector<1x1x128xf32> to vector<128xf32>
    %132 = vector.shape_cast %131 : vector<128xf32> to vector<1x1x128xf32>
    %133 = vector.broadcast %132 : vector<1x1x128xf32> to vector<8x16x128xf32>
    %134 = arith.mulf %129, %133 : vector<8x16x128xf32>
    %135 = arith.addf %128, %134 : vector<8x16x128xf32>
    %136 = vector.extract_strided_slice %114 {offsets = [3, 0, 0], sizes = [8, 16, 128], strides = [1, 1, 1]} : vector<12x16x128xf32> to vector<8x16x128xf32>
    %137 = vector.extract_strided_slice %99 {offsets = [3, 0, 0], sizes = [1, 1, 128], strides = [1, 1, 1]} : vector<5x5x128xf32> to vector<1x1x128xf32>
    %138 = vector.shape_cast %137 : vector<1x1x128xf32> to vector<128xf32>
    %139 = vector.shape_cast %138 : vector<128xf32> to vector<1x1x128xf32>
    %140 = vector.broadcast %139 : vector<1x1x128xf32> to vector<8x16x128xf32>
    %141 = arith.mulf %136, %140 : vector<8x16x128xf32>
    %142 = arith.addf %135, %141 : vector<8x16x128xf32>
    %143 = vector.extract_strided_slice %114 {offsets = [4, 0, 0], sizes = [8, 16, 128], strides = [1, 1, 1]} : vector<12x16x128xf32> to vector<8x16x128xf32>
    %144 = vector.extract_strided_slice %99 {offsets = [4, 0, 0], sizes = [1, 1, 128], strides = [1, 1, 1]} : vector<5x5x128xf32> to vector<1x1x128xf32>
    %145 = vector.shape_cast %144 : vector<1x1x128xf32> to vector<128xf32>
    %146 = vector.shape_cast %145 : vector<128xf32> to vector<1x1x128xf32>
    %147 = vector.broadcast %146 : vector<1x1x128xf32> to vector<8x16x128xf32>
    %148 = arith.mulf %143, %147 : vector<8x16x128xf32>
    %149 = arith.addf %142, %148 : vector<8x16x128xf32>
    %c1_i32_69 = arith.constant 1 : i32
    %150 = tpu.dynamic_rotate %97 by %c1_i32_69 dim 1 : vector<12x16x128xf32>, i32 -> vector<12x16x128xf32>
    %c-1_i32 = arith.constant -1 : i32
    %151 = vector.broadcast %c-1_i32 : i32 to vector<1x16x1xi32>
    %152 = arith.addi %98, %151 : vector<1x16x1xi32>
    %c0_i32_70 = arith.constant 0 : i32
    %153 = vector.broadcast %c0_i32_70 : i32 to vector<1x16x1xi32>
    %154 = arith.cmpi sge, %152, %153 : vector<1x16x1xi32>
    %c-1_i32_71 = arith.constant -1 : i32
    %155 = vector.broadcast %c-1_i32_71 : i32 to vector<1x16x1xi32>
    %156 = arith.addi %98, %155 : vector<1x16x1xi32>
    %c16_i32_72 = arith.constant 16 : i32
    %157 = vector.broadcast %c16_i32_72 : i32 to vector<1x16x1xi32>
    %158 = arith.cmpi slt, %156, %157 : vector<1x16x1xi32>
    %159 = arith.andi %154, %158 : vector<1x16x1xi1>
    %cst_73 = arith.constant 0.000000e+00 : f32
    %160 = vector.shape_cast %159 : vector<1x16x1xi1> to vector<1x16x1xi1>
    %161 = vector.broadcast %160 : vector<1x16x1xi1> to vector<12x16x128xi1>
    %162 = vector.broadcast %cst_73 : f32 to vector<12x16x128xf32>
    %163 = arith.select %161, %150, %162 : vector<12x16x128xi1>, vector<12x16x128xf32>
    %164 = vector.extract_strided_slice %163 {offsets = [0, 0, 0], sizes = [8, 16, 128], strides = [1, 1, 1]} : vector<12x16x128xf32> to vector<8x16x128xf32>
    %165 = vector.extract_strided_slice %99 {offsets = [0, 1, 0], sizes = [1, 1, 128], strides = [1, 1, 1]} : vector<5x5x128xf32> to vector<1x1x128xf32>
    %166 = vector.shape_cast %165 : vector<1x1x128xf32> to vector<128xf32>
    %167 = vector.shape_cast %166 : vector<128xf32> to vector<1x1x128xf32>
    %168 = vector.broadcast %167 : vector<1x1x128xf32> to vector<8x16x128xf32>
    %169 = arith.mulf %164, %168 : vector<8x16x128xf32>
    %170 = arith.addf %149, %169 : vector<8x16x128xf32>
    %171 = vector.extract_strided_slice %163 {offsets = [1, 0, 0], sizes = [8, 16, 128], strides = [1, 1, 1]} : vector<12x16x128xf32> to vector<8x16x128xf32>
    %172 = vector.extract_strided_slice %99 {offsets = [1, 1, 0], sizes = [1, 1, 128], strides = [1, 1, 1]} : vector<5x5x128xf32> to vector<1x1x128xf32>
    %173 = vector.shape_cast %172 : vector<1x1x128xf32> to vector<128xf32>
    %174 = vector.shape_cast %173 : vector<128xf32> to vector<1x1x128xf32>
    %175 = vector.broadcast %174 : vector<1x1x128xf32> to vector<8x16x128xf32>
    %176 = arith.mulf %171, %175 : vector<8x16x128xf32>
    %177 = arith.addf %170, %176 : vector<8x16x128xf32>
    %178 = vector.extract_strided_slice %163 {offsets = [2, 0, 0], sizes = [8, 16, 128], strides = [1, 1, 1]} : vector<12x16x128xf32> to vector<8x16x128xf32>
    %179 = vector.extract_strided_slice %99 {offsets = [2, 1, 0], sizes = [1, 1, 128], strides = [1, 1, 1]} : vector<5x5x128xf32> to vector<1x1x128xf32>
    %180 = vector.shape_cast %179 : vector<1x1x128xf32> to vector<128xf32>
    %181 = vector.shape_cast %180 : vector<128xf32> to vector<1x1x128xf32>
    %182 = vector.broadcast %181 : vector<1x1x128xf32> to vector<8x16x128xf32>
    %183 = arith.mulf %178, %182 : vector<8x16x128xf32>
    %184 = arith.addf %177, %183 : vector<8x16x128xf32>
    %185 = vector.extract_strided_slice %163 {offsets = [3, 0, 0], sizes = [8, 16, 128], strides = [1, 1, 1]} : vector<12x16x128xf32> to vector<8x16x128xf32>
    %186 = vector.extract_strided_slice %99 {offsets = [3, 1, 0], sizes = [1, 1, 128], strides = [1, 1, 1]} : vector<5x5x128xf32> to vector<1x1x128xf32>
    %187 = vector.shape_cast %186 : vector<1x1x128xf32> to vector<128xf32>
    %188 = vector.shape_cast %187 : vector<128xf32> to vector<1x1x128xf32>
    %189 = vector.broadcast %188 : vector<1x1x128xf32> to vector<8x16x128xf32>
    %190 = arith.mulf %185, %189 : vector<8x16x128xf32>
    %191 = arith.addf %184, %190 : vector<8x16x128xf32>
    %192 = vector.extract_strided_slice %163 {offsets = [4, 0, 0], sizes = [8, 16, 128], strides = [1, 1, 1]} : vector<12x16x128xf32> to vector<8x16x128xf32>
    %193 = vector.extract_strided_slice %99 {offsets = [4, 1, 0], sizes = [1, 1, 128], strides = [1, 1, 1]} : vector<5x5x128xf32> to vector<1x1x128xf32>
    %194 = vector.shape_cast %193 : vector<1x1x128xf32> to vector<128xf32>
    %195 = vector.shape_cast %194 : vector<128xf32> to vector<1x1x128xf32>
    %196 = vector.broadcast %195 : vector<1x1x128xf32> to vector<8x16x128xf32>
    %197 = arith.mulf %192, %196 : vector<8x16x128xf32>
    %198 = arith.addf %191, %197 : vector<8x16x128xf32>
    %199 = vector.extract_strided_slice %97 {offsets = [0, 0, 0], sizes = [8, 16, 128], strides = [1, 1, 1]} : vector<12x16x128xf32> to vector<8x16x128xf32>
    %200 = vector.extract_strided_slice %99 {offsets = [0, 2, 0], sizes = [1, 1, 128], strides = [1, 1, 1]} : vector<5x5x128xf32> to vector<1x1x128xf32>
    %201 = vector.shape_cast %200 : vector<1x1x128xf32> to vector<128xf32>
    %202 = vector.shape_cast %201 : vector<128xf32> to vector<1x1x128xf32>
    %203 = vector.broadcast %202 : vector<1x1x128xf32> to vector<8x16x128xf32>
    %204 = arith.mulf %199, %203 : vector<8x16x128xf32>
    %205 = arith.addf %198, %204 : vector<8x16x128xf32>
    %206 = vector.extract_strided_slice %97 {offsets = [1, 0, 0], sizes = [8, 16, 128], strides = [1, 1, 1]} : vector<12x16x128xf32> to vector<8x16x128xf32>
    %207 = vector.extract_strided_slice %99 {offsets = [1, 2, 0], sizes = [1, 1, 128], strides = [1, 1, 1]} : vector<5x5x128xf32> to vector<1x1x128xf32>
    %208 = vector.shape_cast %207 : vector<1x1x128xf32> to vector<128xf32>
    %209 = vector.shape_cast %208 : vector<128xf32> to vector<1x1x128xf32>
    %210 = vector.broadcast %209 : vector<1x1x128xf32> to vector<8x16x128xf32>
    %211 = arith.mulf %206, %210 : vector<8x16x128xf32>
    %212 = arith.addf %205, %211 : vector<8x16x128xf32>
    %213 = vector.extract_strided_slice %97 {offsets = [2, 0, 0], sizes = [8, 16, 128], strides = [1, 1, 1]} : vector<12x16x128xf32> to vector<8x16x128xf32>
    %214 = vector.extract_strided_slice %99 {offsets = [2, 2, 0], sizes = [1, 1, 128], strides = [1, 1, 1]} : vector<5x5x128xf32> to vector<1x1x128xf32>
    %215 = vector.shape_cast %214 : vector<1x1x128xf32> to vector<128xf32>
    %216 = vector.shape_cast %215 : vector<128xf32> to vector<1x1x128xf32>
    %217 = vector.broadcast %216 : vector<1x1x128xf32> to vector<8x16x128xf32>
    %218 = arith.mulf %213, %217 : vector<8x16x128xf32>
    %219 = arith.addf %212, %218 : vector<8x16x128xf32>
    %220 = vector.extract_strided_slice %97 {offsets = [3, 0, 0], sizes = [8, 16, 128], strides = [1, 1, 1]} : vector<12x16x128xf32> to vector<8x16x128xf32>
    %221 = vector.extract_strided_slice %99 {offsets = [3, 2, 0], sizes = [1, 1, 128], strides = [1, 1, 1]} : vector<5x5x128xf32> to vector<1x1x128xf32>
    %222 = vector.shape_cast %221 : vector<1x1x128xf32> to vector<128xf32>
    %223 = vector.shape_cast %222 : vector<128xf32> to vector<1x1x128xf32>
    %224 = vector.broadcast %223 : vector<1x1x128xf32> to vector<8x16x128xf32>
    %225 = arith.mulf %220, %224 : vector<8x16x128xf32>
    %226 = arith.addf %219, %225 : vector<8x16x128xf32>
    %227 = vector.extract_strided_slice %97 {offsets = [4, 0, 0], sizes = [8, 16, 128], strides = [1, 1, 1]} : vector<12x16x128xf32> to vector<8x16x128xf32>
    %228 = vector.extract_strided_slice %99 {offsets = [4, 2, 0], sizes = [1, 1, 128], strides = [1, 1, 1]} : vector<5x5x128xf32> to vector<1x1x128xf32>
    %229 = vector.shape_cast %228 : vector<1x1x128xf32> to vector<128xf32>
    %230 = vector.shape_cast %229 : vector<128xf32> to vector<1x1x128xf32>
    %231 = vector.broadcast %230 : vector<1x1x128xf32> to vector<8x16x128xf32>
    %232 = arith.mulf %227, %231 : vector<8x16x128xf32>
    %233 = arith.addf %226, %232 : vector<8x16x128xf32>
    %c15_i32 = arith.constant 15 : i32
    %234 = tpu.dynamic_rotate %97 by %c15_i32 dim 1 : vector<12x16x128xf32>, i32 -> vector<12x16x128xf32>
    %c1_i32_74 = arith.constant 1 : i32
    %235 = vector.broadcast %c1_i32_74 : i32 to vector<1x16x1xi32>
    %236 = arith.addi %98, %235 : vector<1x16x1xi32>
    %c0_i32_75 = arith.constant 0 : i32
    %237 = vector.broadcast %c0_i32_75 : i32 to vector<1x16x1xi32>
    %238 = arith.cmpi sge, %236, %237 : vector<1x16x1xi32>
    %c1_i32_76 = arith.constant 1 : i32
    %239 = vector.broadcast %c1_i32_76 : i32 to vector<1x16x1xi32>
    %240 = arith.addi %98, %239 : vector<1x16x1xi32>
    %c16_i32_77 = arith.constant 16 : i32
    %241 = vector.broadcast %c16_i32_77 : i32 to vector<1x16x1xi32>
    %242 = arith.cmpi slt, %240, %241 : vector<1x16x1xi32>
    %243 = arith.andi %238, %242 : vector<1x16x1xi1>
    %cst_78 = arith.constant 0.000000e+00 : f32
    %244 = vector.shape_cast %243 : vector<1x16x1xi1> to vector<1x16x1xi1>
    %245 = vector.broadcast %244 : vector<1x16x1xi1> to vector<12x16x128xi1>
    %246 = vector.broadcast %cst_78 : f32 to vector<12x16x128xf32>
    %247 = arith.select %245, %234, %246 : vector<12x16x128xi1>, vector<12x16x128xf32>
    %248 = vector.extract_strided_slice %247 {offsets = [0, 0, 0], sizes = [8, 16, 128], strides = [1, 1, 1]} : vector<12x16x128xf32> to vector<8x16x128xf32>
    %249 = vector.extract_strided_slice %99 {offsets = [0, 3, 0], sizes = [1, 1, 128], strides = [1, 1, 1]} : vector<5x5x128xf32> to vector<1x1x128xf32>
    %250 = vector.shape_cast %249 : vector<1x1x128xf32> to vector<128xf32>
    %251 = vector.shape_cast %250 : vector<128xf32> to vector<1x1x128xf32>
    %252 = vector.broadcast %251 : vector<1x1x128xf32> to vector<8x16x128xf32>
    %253 = arith.mulf %248, %252 : vector<8x16x128xf32>
    %254 = arith.addf %233, %253 : vector<8x16x128xf32>
    %255 = vector.extract_strided_slice %247 {offsets = [1, 0, 0], sizes = [8, 16, 128], strides = [1, 1, 1]} : vector<12x16x128xf32> to vector<8x16x128xf32>
    %256 = vector.extract_strided_slice %99 {offsets = [1, 3, 0], sizes = [1, 1, 128], strides = [1, 1, 1]} : vector<5x5x128xf32> to vector<1x1x128xf32>
    %257 = vector.shape_cast %256 : vector<1x1x128xf32> to vector<128xf32>
    %258 = vector.shape_cast %257 : vector<128xf32> to vector<1x1x128xf32>
    %259 = vector.broadcast %258 : vector<1x1x128xf32> to vector<8x16x128xf32>
    %260 = arith.mulf %255, %259 : vector<8x16x128xf32>
    %261 = arith.addf %254, %260 : vector<8x16x128xf32>
    %262 = vector.extract_strided_slice %247 {offsets = [2, 0, 0], sizes = [8, 16, 128], strides = [1, 1, 1]} : vector<12x16x128xf32> to vector<8x16x128xf32>
    %263 = vector.extract_strided_slice %99 {offsets = [2, 3, 0], sizes = [1, 1, 128], strides = [1, 1, 1]} : vector<5x5x128xf32> to vector<1x1x128xf32>
    %264 = vector.shape_cast %263 : vector<1x1x128xf32> to vector<128xf32>
    %265 = vector.shape_cast %264 : vector<128xf32> to vector<1x1x128xf32>
    %266 = vector.broadcast %265 : vector<1x1x128xf32> to vector<8x16x128xf32>
    %267 = arith.mulf %262, %266 : vector<8x16x128xf32>
    %268 = arith.addf %261, %267 : vector<8x16x128xf32>
    %269 = vector.extract_strided_slice %247 {offsets = [3, 0, 0], sizes = [8, 16, 128], strides = [1, 1, 1]} : vector<12x16x128xf32> to vector<8x16x128xf32>
    %270 = vector.extract_strided_slice %99 {offsets = [3, 3, 0], sizes = [1, 1, 128], strides = [1, 1, 1]} : vector<5x5x128xf32> to vector<1x1x128xf32>
    %271 = vector.shape_cast %270 : vector<1x1x128xf32> to vector<128xf32>
    %272 = vector.shape_cast %271 : vector<128xf32> to vector<1x1x128xf32>
    %273 = vector.broadcast %272 : vector<1x1x128xf32> to vector<8x16x128xf32>
    %274 = arith.mulf %269, %273 : vector<8x16x128xf32>
    %275 = arith.addf %268, %274 : vector<8x16x128xf32>
    %276 = vector.extract_strided_slice %247 {offsets = [4, 0, 0], sizes = [8, 16, 128], strides = [1, 1, 1]} : vector<12x16x128xf32> to vector<8x16x128xf32>
    %277 = vector.extract_strided_slice %99 {offsets = [4, 3, 0], sizes = [1, 1, 128], strides = [1, 1, 1]} : vector<5x5x128xf32> to vector<1x1x128xf32>
    %278 = vector.shape_cast %277 : vector<1x1x128xf32> to vector<128xf32>
    %279 = vector.shape_cast %278 : vector<128xf32> to vector<1x1x128xf32>
    %280 = vector.broadcast %279 : vector<1x1x128xf32> to vector<8x16x128xf32>
    %281 = arith.mulf %276, %280 : vector<8x16x128xf32>
    %282 = arith.addf %275, %281 : vector<8x16x128xf32>
    %c14_i32_79 = arith.constant 14 : i32
    %283 = tpu.dynamic_rotate %97 by %c14_i32_79 dim 1 : vector<12x16x128xf32>, i32 -> vector<12x16x128xf32>
    %c2_i32_80 = arith.constant 2 : i32
    %284 = vector.broadcast %c2_i32_80 : i32 to vector<1x16x1xi32>
    %285 = arith.addi %98, %284 : vector<1x16x1xi32>
    %c0_i32_81 = arith.constant 0 : i32
    %286 = vector.broadcast %c0_i32_81 : i32 to vector<1x16x1xi32>
    %287 = arith.cmpi sge, %285, %286 : vector<1x16x1xi32>
    %c2_i32_82 = arith.constant 2 : i32
    %288 = vector.broadcast %c2_i32_82 : i32 to vector<1x16x1xi32>
    %289 = arith.addi %98, %288 : vector<1x16x1xi32>
    %c16_i32_83 = arith.constant 16 : i32
    %290 = vector.broadcast %c16_i32_83 : i32 to vector<1x16x1xi32>
    %291 = arith.cmpi slt, %289, %290 : vector<1x16x1xi32>
    %292 = arith.andi %287, %291 : vector<1x16x1xi1>
    %cst_84 = arith.constant 0.000000e+00 : f32
    %293 = vector.shape_cast %292 : vector<1x16x1xi1> to vector<1x16x1xi1>
    %294 = vector.broadcast %293 : vector<1x16x1xi1> to vector<12x16x128xi1>
    %295 = vector.broadcast %cst_84 : f32 to vector<12x16x128xf32>
    %296 = arith.select %294, %283, %295 : vector<12x16x128xi1>, vector<12x16x128xf32>
    %297 = vector.extract_strided_slice %296 {offsets = [0, 0, 0], sizes = [8, 16, 128], strides = [1, 1, 1]} : vector<12x16x128xf32> to vector<8x16x128xf32>
    %298 = vector.extract_strided_slice %99 {offsets = [0, 4, 0], sizes = [1, 1, 128], strides = [1, 1, 1]} : vector<5x5x128xf32> to vector<1x1x128xf32>
    %299 = vector.shape_cast %298 : vector<1x1x128xf32> to vector<128xf32>
    %300 = vector.shape_cast %299 : vector<128xf32> to vector<1x1x128xf32>
    %301 = vector.broadcast %300 : vector<1x1x128xf32> to vector<8x16x128xf32>
    %302 = arith.mulf %297, %301 : vector<8x16x128xf32>
    %303 = arith.addf %282, %302 : vector<8x16x128xf32>
    %304 = vector.extract_strided_slice %296 {offsets = [1, 0, 0], sizes = [8, 16, 128], strides = [1, 1, 1]} : vector<12x16x128xf32> to vector<8x16x128xf32>
    %305 = vector.extract_strided_slice %99 {offsets = [1, 4, 0], sizes = [1, 1, 128], strides = [1, 1, 1]} : vector<5x5x128xf32> to vector<1x1x128xf32>
    %306 = vector.shape_cast %305 : vector<1x1x128xf32> to vector<128xf32>
    %307 = vector.shape_cast %306 : vector<128xf32> to vector<1x1x128xf32>
    %308 = vector.broadcast %307 : vector<1x1x128xf32> to vector<8x16x128xf32>
    %309 = arith.mulf %304, %308 : vector<8x16x128xf32>
    %310 = arith.addf %303, %309 : vector<8x16x128xf32>
    %311 = vector.extract_strided_slice %296 {offsets = [2, 0, 0], sizes = [8, 16, 128], strides = [1, 1, 1]} : vector<12x16x128xf32> to vector<8x16x128xf32>
    %312 = vector.extract_strided_slice %99 {offsets = [2, 4, 0], sizes = [1, 1, 128], strides = [1, 1, 1]} : vector<5x5x128xf32> to vector<1x1x128xf32>
    %313 = vector.shape_cast %312 : vector<1x1x128xf32> to vector<128xf32>
    %314 = vector.shape_cast %313 : vector<128xf32> to vector<1x1x128xf32>
    %315 = vector.broadcast %314 : vector<1x1x128xf32> to vector<8x16x128xf32>
    %316 = arith.mulf %311, %315 : vector<8x16x128xf32>
    %317 = arith.addf %310, %316 : vector<8x16x128xf32>
    %318 = vector.extract_strided_slice %296 {offsets = [3, 0, 0], sizes = [8, 16, 128], strides = [1, 1, 1]} : vector<12x16x128xf32> to vector<8x16x128xf32>
    %319 = vector.extract_strided_slice %99 {offsets = [3, 4, 0], sizes = [1, 1, 128], strides = [1, 1, 1]} : vector<5x5x128xf32> to vector<1x1x128xf32>
    %320 = vector.shape_cast %319 : vector<1x1x128xf32> to vector<128xf32>
    %321 = vector.shape_cast %320 : vector<128xf32> to vector<1x1x128xf32>
    %322 = vector.broadcast %321 : vector<1x1x128xf32> to vector<8x16x128xf32>
    %323 = arith.mulf %318, %322 : vector<8x16x128xf32>
    %324 = arith.addf %317, %323 : vector<8x16x128xf32>
    %325 = vector.extract_strided_slice %296 {offsets = [4, 0, 0], sizes = [8, 16, 128], strides = [1, 1, 1]} : vector<12x16x128xf32> to vector<8x16x128xf32>
    %326 = vector.extract_strided_slice %99 {offsets = [4, 4, 0], sizes = [1, 1, 128], strides = [1, 1, 1]} : vector<5x5x128xf32> to vector<1x1x128xf32>
    %327 = vector.shape_cast %326 : vector<1x1x128xf32> to vector<128xf32>
    %328 = vector.shape_cast %327 : vector<128xf32> to vector<1x1x128xf32>
    %329 = vector.broadcast %328 : vector<1x1x128xf32> to vector<8x16x128xf32>
    %330 = arith.mulf %325, %329 : vector<8x16x128xf32>
    %331 = arith.addf %324, %330 : vector<8x16x128xf32>
    %c0_85 = arith.constant 0 : index
    %c0_86 = arith.constant 0 : index
    %332 = vector.load %arg6[%c0_85, %c0_86] : memref<1x128xf32, #tpu.memory_space<vmem>>, vector<1x128xf32>
    %333 = vector.shape_cast %332 : vector<1x128xf32> to vector<1x1x128xf32>
    %334 = vector.broadcast %333 : vector<1x1x128xf32> to vector<8x16x128xf32>
    %335 = arith.addf %331, %334 : vector<8x16x128xf32>
    %336 = vector.extract_strided_slice %97 {offsets = [2, 0, 0], sizes = [8, 16, 128], strides = [1, 1, 1]} : vector<12x16x128xf32> to vector<8x16x128xf32>
    %337 = arith.mulf %336, %335 : vector<8x16x128xf32>
    %338 = vector.shape_cast %337 : vector<8x16x128xf32> to vector<128x128xf32>
    %c0_87 = arith.constant 0 : index
    %c0_88 = arith.constant 0 : index
    %339 = vector.load %arg7[%c0_87, %c0_88] : memref<128x128xf32, #tpu.memory_space<vmem>>, vector<128x128xf32>
    %cst_89 = arith.constant dense<0.000000e+00> : vector<128x128xf32>
    %340 = tpu.matmul %338, %339, %cst_89 {dimension_numbers = #tpu.dot_dimension_numbers<[1], [0], [0], [1], [0, 0, 1, 1], [], []>} : vector<128x128xf32>, vector<128x128xf32>, vector<128x128xf32> -> vector<128x128xf32>
    %c0_90 = arith.constant 0 : index
    %c0_91 = arith.constant 0 : index
    %341 = vector.load %arg8[%c0_90, %c0_91] : memref<1x128xf32, #tpu.memory_space<vmem>>, vector<1x128xf32>
    %342 = vector.broadcast %341 : vector<1x128xf32> to vector<128x128xf32>
    %343 = arith.addf %340, %342 : vector<128x128xf32>
    %344 = vector.shape_cast %343 : vector<128x128xf32> to vector<8x16x128xf32>
    %345 = vector.extract_strided_slice %36 {offsets = [2, 0, 0], sizes = [8, 16, 128], strides = [1, 1, 1]} : vector<12x16x128xf32> to vector<8x16x128xf32>
    %346 = arith.addf %344, %345 : vector<8x16x128xf32>
    %c0_92 = arith.constant 0 : index
    %c0_93 = arith.constant 0 : index
    %c0_94 = arith.constant 0 : index
    %c0_95 = arith.constant 0 : index
    %347 = vector.load %arg9[%c0_92, %c0_93, %c0_94, %c0_95] : memref<1x8x16x128xf32, #tpu.memory_space<vmem>>, vector<1x8x16x128xf32>
    %348 = vector.shape_cast %347 : vector<1x8x16x128xf32> to vector<8x16x128xf32>
    %349 = vector.shape_cast %346 : vector<8x16x128xf32> to vector<1x8x16x128xf32>
    tpu.vector_store %arg9[%c0_92, %c0_93, %c0_94, %c0_95], %349 {strides = array<i32>} : memref<1x8x16x128xf32, #tpu.memory_space<vmem>>, vector<1x8x16x128xf32>,
    return
  }
  func.func @transform_1(%arg0: i32, %arg1: i32) -> (i32, i32) {
    %c0_i32 = arith.constant 0 : i32
    %c0_i32_0 = arith.constant 0 : i32
    %c0_i32_1 = arith.constant 0 : i32
    return %c0_i32, %c0_i32_0 : i32, i32
  }
  func.func @transform_2(%arg0: i32, %arg1: i32) -> (i32, i32) {
    %c0_i32 = arith.constant 0 : i32
    %c0_i32_0 = arith.constant 0 : i32
    %c0_i32_1 = arith.constant 0 : i32
    return %c0_i32, %c0_i32_0 : i32, i32
  }
  func.func @transform_3(%arg0: i32, %arg1: i32) -> (i32, i32, i32) {
    %c0_i32 = arith.constant 0 : i32
    %c0_i32_0 = arith.constant 0 : i32
    %c0_i32_1 = arith.constant 0 : i32
    %c0_i32_2 = arith.constant 0 : i32
    return %c0_i32, %c0_i32_0, %c0_i32_1 : i32, i32, i32
  }
  func.func @transform_4(%arg0: i32, %arg1: i32) -> (i32, i32) {
    %c0_i32 = arith.constant 0 : i32
    %c0_i32_0 = arith.constant 0 : i32
    %c0_i32_1 = arith.constant 0 : i32
    return %c0_i32, %c0_i32_0 : i32, i32
  }
  func.func @transform_5(%arg0: i32, %arg1: i32) -> (i32, i32) {
    %c0_i32 = arith.constant 0 : i32
    %c0_i32_0 = arith.constant 0 : i32
    %c0_i32_1 = arith.constant 0 : i32
    return %c0_i32, %c0_i32_0 : i32, i32
  }
  func.func @transform_6(%arg0: i32, %arg1: i32) -> (i32, i32) {
    %c0_i32 = arith.constant 0 : i32
    %c0_i32_0 = arith.constant 0 : i32
    %c0_i32_1 = arith.constant 0 : i32
    return %c0_i32, %c0_i32_0 : i32, i32
  }
  func.func @transform_7(%arg0: i32, %arg1: i32) -> (i32, i32, i32, i32) {
    %c0_i32 = arith.constant 0 : i32
    %c0_i32_0 = arith.constant 0 : i32
    %c0_i32_1 = arith.constant 0 : i32
    return %arg0, %arg1, %c0_i32, %c0_i32_0 : i32, i32, i32, i32
  }
}

</mosaic_0001>

<bundles_post_ra>
// kernel: tpu_custom_call.1
= control target key start
LH: loop header
LB: loop body
LE: loop exit
PB: predicated region body
PF: predicated region fallthrough
CT: control target
= control target key end

     0   :  { %s7189_s0 = inlined_call_operand.hbm [shape: f32[2,16,16,128], index: 0, kind: input, shape index: {}]   ;;  %s7190_s1 = inlined_call_operand.hbm [shape: f32[128,128], index: 1, kind: input, shape index: {}]   ;;  %s7191_s2 = inlined_call_operand.vmem [shape: f32[1,128], index: 2, kind: input, shape index: {}]   ;;  %s7192_s3 = inlined_call_operand.hbm [shape: f32[5,5,128], index: 3, kind: input, shape index: {}]   ;;  %s7193_s4 = inlined_call_operand.vmem [shape: f32[1,128], index: 4, kind: input, shape index: {}]   ;;  %s7194_s5 = inlined_call_operand.hbm [shape: f32[128,128], index: 5, kind: input, shape index: {}]   ;;  %s7195_s6 = inlined_call_operand.vmem [shape: f32[1,128], index: 6, kind: input, shape index: {}]   ;;  %s7196_s7 = inlined_call_operand.hbm [shape: f32[2,16,16,128], index: 7, kind: output, shape index: {}]  }
   0x1   :  { %7353 = sst [smem:[#allocation207_spill]] %s7190_s1 }
   0x2   :  { %7354 = sst [smem:[#allocation208_spill]] %s7192_s3 }
   0x3   :  { %7355 = sst [smem:[#allocation209_spill]] %s7194_s5 }
   0x4   :  { %12 = vsyncpa [#allocation5], 0 }
   0x5   :  { %13 = vsyncpa [#allocation8], 0 }
   0x6   :  { %14 = vsyncpa [#allocation6], 0 }
   0x7   :  { %16 = vsyncpa [#allocation6 + $0x1], 0  ;;  %s3779_s24 = smov 0   ;;  %s3781_s25 = smov 0  }
   0x8   :  { %s3783_s26 = smov 0   ;;  %s3785_s27 = smov 0  }
   0x9   :  { %s3787_s28 = smov 0   ;;  %s3789_s29 = smov 0  }
   0xa   :  { %s3791_s30 = smov 0   ;;  %s3793_s8 = smov 0  }
   0xb LB: > { %7356 = sst [smem:[#allocation25_spill]] %s3705_s26  ;;  %s2967_s9 = sadd.s32 4294967295, %s3725_s8   ;;  %s3725_s8 = sphi %s3793_s8, %s22_s8   ;;  %s3721_s30 = sphi %s3791_s30, %s8015_s30   ;;  %s3717_s29 = sphi %s3789_s29, %s8014_s29   ;;  %s3713_s28 = sphi %s3787_s28, %s8013_s28   ;;  %s3709_s27 = sphi %s3785_s27, %s8012_s27   ;;  %s3705_s26 = sphi %s3783_s26, %s8011_s26   ;;  %s3701_s25 = sphi %s3781_s25, %s8017_s25   ;;  %s3697_s24 = sphi %s3779_s24, %s8016_s24  }
   0xc   : > { %7357 = sst [smem:[#allocation26_spill]] %s3717_s29  ;;  %s2968_s10 = sadd.s32 4294967294, %s3725_s8  }
   0xd   : > { %7358 = sst [smem:[#allocation27_spill]] %s3721_s30  ;;  %s31_s11 = sadd.s32 1, %s3717_s29 }
   0xe   : > { %s34_s12 = sadd.s32 1, %s3721_s30  ;;  %p32_p0 = scmp.ge.s32.totalorder %s31_s11, 2 }
   0xf   : > { %s169_s13 = sadd.s32 1, %s3705_s26  ;;  %p179_p1 = scmp.ne.s32.totalorder %s3705_s26, %s3701_s25 }
  0x10   : > { %p180_p2 = scmp.eq.s32.totalorder %s2967_s9, 3  ;;  %s8019_s11 = smov (%p32_p0, %s31_s11), 0 }
  0x11   : > { %7359 = sst [smem:[#allocation28_spill]] %s8019_s11  ;;  %s8021_s12 = smov (!%p32_p0, %s34_s12), %s3721_s30 }
  0x12   : > { %s165_s14 = ssub.s32 %s3717_s29, %s8019_s11  ;;  %p3831_p3 = por %p180_p2, %p179_p1 }
  0x13   : > { %p36_p4 = scmp.ge.s32.totalorder %s8021_s12, 2  ;;  %p185_p5 = scmp.ne.s32.totalorder %s3701_s25, %s3697_s24 }
  0x14   : > { %p186_p6 = scmp.eq.s32.totalorder %s2968_s10, 3  ;;  %p2969_p7 = scmp.ge.s32.totalorder %s3725_s8, 1 }
  0x15   : > { %s8023_s12 = smov (%p36_p4, %s8021_s12), 0  ;;  %p193_p9 = scmp.lt.s32.totalorder %s3725_s8, 5 }
  0x16   : > { %7361 = sst [smem:[#allocation29_spill]] %s8023_s12  ;;  %p3840_p8 = por %p186_p6, %p185_p5 }
  0x17   : > { %s164_s17 = ssub.s32 %s3721_s30, %s8023_s12  ;;  %p3847_p10 = pnand %p2969_p7, %p193_p9 }
  0x18   : > { %s7362_s16 = scalar_select %p3840_p8, 1, 0 }
  0x19   : > { %s166_s18 = sor.u32 %s165_s14, %s164_s17  ;;  %p3851_p12 = scmp.eq.s32.totalorder %s2967_s9, 0 }
  0x1a   : > { %7363 = sst [smem:[#allocation30_spill]] %s7362_s16  ;;  %p167_p11 = scmp.eq.s32.totalorder %s166_s18, 0 }
  0x1b   : > { %p3260_p13 = pneg %p3847_p10  ;;  %s3727_s23 = smov [#allocation7]  }
  0x1c   : > { %s3858_s21 = scalar_select %p167_p11, %s3705_s26, %s169_s13  }
  0x1d   : > { %p3862_p0 = pnand %p3851_p12, %p3260_p13  ;;  %s221_s10 = sshll.u32 %s3727_s23, 4  ;;  %s222_s10 = int_to_ptr.vmem [resolvable:$true] %s221_s10 }
  0x1e   : > { %7366 = sst [smem:[#allocation31_spill]] %s3858_s21  ;;  %s3486_s9 = scalar_lea.vmem %s222_s10, 640 }
  0x1f   : > { %p3477_p1 = pneg %p3862_p0  ;;  %p3487_p2 = scmp.ne.s32.totalorder %s222_s10, %s3486_s9 }
  0x20   : > { %p3494_p6 = scmp.lt.s32.totalorder %s222_s10, %s222_s10  ;;  %p3495_p7 = scmp.lt.s32.totalorder %s3486_s9, %s3486_s9 }
  0x21   : > { %p3489_p4 = pnand %p3487_p2, %p3477_p1 }
  0x22   : > { %p3496_p9 = por %p3495_p7, %p3494_p6 }
  0x23   : > { %p3490_p5 = pneg %p3489_p4 }
  0x25   : > { %p3497_p11 = pnand %p3496_p9, %p3490_p5 }
  0x27   : > { %3500 = shalt.err (!%p3497_p11)
}
  0x28   : > { %s3728_s13 = smov 128   ;;  %s3729_s14 = smov 8  }
  0x29   : > { %s7368_s3 = sld [smem:[#allocation208_spill]]  ;;  %s3730_s23 = smov [#allocation4]  }
  0x2a   : > { %s205_s12 = sshll.u32 %s3730_s23, 4  ;;  %s3731_s11 = smov [#allocation9]   ;;  %s206_s12 = int_to_ptr.vmem [resolvable:$true] %s205_s12 }
  0x2b   : > { %s237_s30 = sshll.u32 %s3731_s11, 4  ;;  %s3512_s9 = scalar_lea.vmem %s206_s12, 2048  ;;  %s238_s30 = int_to_ptr.vmem [resolvable:$true] %s237_s30 }
  0x2c   : > { %p3513_p13 = scmp.ne.s32.totalorder %s206_s12, %s3512_s9  ;;  %p3520_p5 = scmp.lt.s32.totalorder %s206_s12, %s206_s12 }
  0x2d   : > { %p3521_p6 = scmp.lt.s32.totalorder %s3512_s9, %s3512_s9 }
  0x2e   : > { %p3515_p2 = pnand %p3513_p13, %p3477_p1 }
  0x2f   : > { %3266 = dma.hbm_to_vmem [thread:$0]  (!%p3862_p0), %s7368_s3, 640, %s222_s10, [#allocation8], %s3728_s13, %s3728_s13, %s3729_s14  }
  0x30   : > { %p3516_p4 = pneg %p3515_p2  ;;  %p3522_p7 = por %p3521_p6, %p3520_p5 }
  0x32   : > { %p3523_p9 = pnand %p3522_p7, %p3516_p4 }
  0x34   : > { %3526 = shalt.err (!%p3523_p9)
}
  0x35   : > { %s7369_s1 = sld [smem:[#allocation207_spill]]  ;;  %s3538_s17 = scalar_lea.vmem %s238_s30, 2048 }
  0x36   : > { %p3539_p11 = scmp.ne.s32.totalorder %s238_s30, %s3538_s17  ;;  %p3546_p8 = scmp.lt.s32.totalorder %s238_s30, %s238_s30 }
  0x37   : > { %p3547_p5 = scmp.lt.s32.totalorder %s3538_s17, %s3538_s17 }
  0x38   : > { %p3541_p13 = pnand %p3539_p11, %p3477_p1 }
  0x39   : > { %p3548_p4 = por %p3547_p5, %p3546_p8 }
  0x3a   : > { %p3542_p2 = pneg %p3541_p13 }
  0x3b   : > { %3263 = dma.hbm_to_vmem [thread:$0]  (!%p3862_p0), %s7369_s1, 2048, %s206_s12, [#allocation5], %s3728_s13, %s3728_s13, %s3729_s14  }
  0x3c   : > { %p3549_p6 = pnand %p3548_p4, %p3542_p2 }
  0x3e   : > { %3552 = shalt.err (!%p3549_p6)
}
  0x3f   : > { %s7370_s5 = sld [smem:[#allocation209_spill]] }
  0x41   : > { %256 = sbr.rel (%p3847_p10) target bundleno = 1062 (0x426), region = 44 }
  0x45   : > { %3269 = dma.hbm_to_vmem [thread:$0]  (!%p3862_p0), %s7370_s5, 2048, %s238_s30, [#allocation8], %s3728_s13, %s3728_s13, %s3729_s14  }
  0x46   : > { %3678 = dma.done.wait (%p3851_p12), [#allocation5], 2048  }
  0x47   : > { %3680 = vsyncadd (%p3851_p12), [#allocation5], 4294965248 }
  0x48   : > { %3682 = dma.done.wait (%p3851_p12), [#allocation8], 2688  }
  0x49   : > { %3684 = vsyncadd (%p3851_p12), [#allocation8], 4294964608  ;;  %s7200_s30 = sand.u32 1, %s3701_s25   ;;  %s3048_s12 = sshll.u32 %s3709_s27, 7 }
  0x4a   : > { %s3915_s19 = sshll.u32 %s7200_s30, 7  ;;  %s3918_s22 = sshll.u32 %s3713_s28, 8 }
  0x4b   : > { %s299_s13 = sadd.s32 %s3048_s12, %s3918_s22  ;;  %s3732_s11 = smov [#allocation2 + $0x20]  }
  0x4c   : > { %s2982_s14 = sshll.u32 %s299_s13, 4  ;;  %s310_s17 = sshll.u32 %s3732_s11, 4  ;;  %s311_s17 = int_to_ptr.vmem [resolvable:$true] %s310_s17 }
  0x4d   : > { %s301_s20 = scalar_lea.hbm %s7189_s0, %s2982_s14  ;;  %s2978_s18 = sshll.u32 %s3709_s27, 3 }
  0x4e   : > { %s3553_s23 = scalar_lea.hbm %s301_s20, 2048  ;;  %s3928_s30 = scalar_lea.hbm %s7189_s0, 8192 }
  0x4f   : > { %p3554_p8 = scmp.ne.s32.totalorder %s301_s20, %s3553_s23  ;;  %p3556_p10 = scmp.lt.s32.totalorder %s301_s20, %s7189_s0 }
  0x50   : > { %p3557_p12 = scmp.lt.s32.totalorder %s3928_s30, %s3553_s23 }
  0x52   : > { %p3558_p0 = por %p3557_p12, %p3556_p10 }
  0x54   : > { %p3559_p1 = pnand %p3558_p0, %p3554_p8 }
  0x56   : > { %3562 = shalt.err (!%p3559_p1)  }
  0x57   : > { %s3563_s12 = scalar_lea.vmem %s311_s17, 2048  ;;  %s3733_s13 = smov [#allocation2]  }
  0x58   : > { %p3564_p7 = scmp.ne.s32.totalorder %s311_s17, %s3563_s12  ;;  %s3565_s14 = sshll.u32 %s3733_s13, 4  ;;  %s3934_s14 = int_to_ptr.vmem [resolvable:$false] %s3565_s14 }
  0x59   : > { %s3937_s1 = scalar_lea.vmem %s3934_s14, 3072  ;;  %p3568_p9 = scmp.lt.s32.totalorder %s311_s17, %s3934_s14 }
  0x5a   : > { %p3569_p11 = scmp.lt.s32.totalorder %s3937_s1, %s3563_s12 }
  0x5c   : > { %p3570_p13 = por %p3569_p11, %p3568_p9 }
  0x5e   : > { %p3571_p2 = pnand %p3570_p13, %p3564_p7 }
  0x60   : > { %3574 = shalt.err (!%p3571_p2)  }
  0x61   : > { %313 = dma.hbm_to_vmem [thread:$0]  %s301_s20, 2048, %s311_s17, [#allocation3] }
  0x62   : > { %s3941_s3 = sadd.s32 4294967294, %s2978_s18  ;;  %s294_s5 = sadd.s32 8, %s2978_s18 }
  0x63   : > { %p292_p5 = scmp.gt.s32.totalorder %s3941_s3, 0  ;;  %p295_p4 = scmp.lt.s32.totalorder %s294_s5, 14 }
  0x64   : > { %s3734_s21 = smov [#allocation2 + $0xa0]  }
  0x65   : > { %s293_s29 = scalar_select %p292_p5, %s3941_s3, 0 }
  0x66   : > { %s343_s26 = sshll.u32 %s3734_s21, 4  ;;  %s344_s26 = int_to_ptr.vmem [resolvable:$true] %s343_s26 }
  0x67   : > { %s2983_s9 = sshll.u32 %s293_s29, 4 }
  0x68   : > { %s315_s10 = sadd.s32 %s2983_s9, %s3918_s22 }
  0x69   : > { %s2984_s11 = sshll.u32 %s315_s10, 4 }
  0x6a   : > { %s317_s12 = scalar_lea.hbm %s7189_s0, %s2984_s11 }
  0x6b   : > { %s3575_s20 = scalar_lea.hbm %s317_s12, 512  ;;  %p3578_p8 = scmp.lt.s32.totalorder %s317_s12, %s7189_s0 }
  0x6c   : > { %p3576_p6 = scmp.ne.s32.totalorder %s317_s12, %s3575_s20  ;;  %p3579_p10 = scmp.lt.s32.totalorder %s3928_s30, %s3575_s20 }
  0x6e   : > { %p3580_p12 = por %p3579_p10, %p3578_p8 }
  0x70   : > { %p3581_p0 = pnand %p3580_p12, %p3576_p6 }
  0x72   : > { %3584 = shalt.err (!%p3581_p0)  }
  0x73   : > { %s3585_s18 = scalar_lea.vmem %s3934_s14, 512  ;;  %p3590_p7 = scmp.lt.s32.totalorder %s3934_s14, %s3934_s14 }
  0x74   : > { %p3586_p1 = scmp.ne.s32.totalorder %s3934_s14, %s3585_s18  ;;  %p3591_p9 = scmp.lt.s32.totalorder %s3937_s1, %s3585_s18 }
  0x76   : > { %p3592_p11 = por %p3591_p9, %p3590_p7 }
  0x78   : > { %p3593_p13 = pnand %p3592_p11, %p3586_p1 }
  0x7a   : > { %3596 = shalt.err (!%p3593_p13)  }
  0x7b   : > { %329 = dma.hbm_to_vmem [thread:$0]  %s317_s12, 512, %s3934_s14, [#allocation3 + $0x1] }
  0x7c   : > { %s8025_s5 = smov (!%p295_p4, %s294_s5), 14 }
  0x7d   : > { %s2985_s16 = sshll.u32 %s8025_s5, 4 }
  0x7e   : > { %s331_s21 = sadd.s32 %s2985_s16, %s3918_s22 }
  0x7f   : > { %s2986_s29 = sshll.u32 %s331_s21, 4 }
  0x80   : > { %s333_s11 = scalar_lea.hbm %s7189_s0, %s2986_s29 }
  0x81   : > { %s3597_s23 = scalar_lea.hbm %s333_s11, 512  ;;  %p3600_p5 = scmp.lt.s32.totalorder %s333_s11, %s7189_s0 }
  0x82   : > { %p3598_p2 = scmp.ne.s32.totalorder %s333_s11, %s3597_s23  ;;  %p3601_p6 = scmp.lt.s32.totalorder %s3928_s30, %s3597_s23 }
  0x84   : > { %p3602_p8 = por %p3601_p6, %p3600_p5 }
  0x86   : > { %p3603_p10 = pnand %p3602_p8, %p3598_p2 }
  0x88   : > { %3606 = shalt.err (!%p3603_p10)  }
  0x89   : > { %s3607_s12 = scalar_lea.vmem %s344_s26, 512  ;;  %p3612_p12 = scmp.lt.s32.totalorder %s344_s26, %s3934_s14 }
  0x8a   : > { %p3608_p4 = scmp.ne.s32.totalorder %s344_s26, %s3607_s12  ;;  %p3613_p0 = scmp.lt.s32.totalorder %s3937_s1, %s3607_s12 }
  0x8c   : > { %p3614_p1 = por %p3613_p0, %p3612_p12 }
  0x8e   : > { %p3615_p7 = pnand %p3614_p1, %p3608_p4 }
  0x90   : > { %3618 = shalt.err (!%p3615_p7)  }
  0x91   : > { %346 = dma.hbm_to_vmem [thread:$0]  %s333_s11, 512, %s344_s26, [#allocation3 + $0x2] }
  0x92   : > { %s3971_s22 = scalar_lea.vmem [#allocation10], %s3915_s19 }
  0x93   : > { %3685 = dma.done.wait [#allocation3], 2048 }
  0x94   : > { %3686 = vsyncadd [#allocation3], 4294965248 }
  0x95   : > { %3687 = dma.done.wait [#allocation3 + $0x1], 512 }
  0x96   : > { %3688 = vsyncadd [#allocation3 + $0x1], 4294966784 }
  0x97   : > { %3689 = dma.done.wait [#allocation3 + $0x2], 512 }
  0x98   : > { %3690 = vsyncadd [#allocation3 + $0x2], 4294966784  ;;  %v396_v0 = vld [vmem:[#allocation4 + $0x78] sm:$0xff]  ;;  %v395_v1 = vld [vmem:[#allocation4 + $0x70] sm:$0xff]  ;;  %v1333_v40 = vlaneseq  ;;  %v3999_v52 = vstv %s3941_s3  ;;  %s3049_s21 = sshll.u32 %s3709_s27, 4  ;;  %s3041_s29 = sshll.u32 %s3713_s28, 5 }
  0x99   : > { %3122 = vmatprep.subr.mxu0 %v396_v0  ;;  %v394_v2 = vld [vmem:[#allocation4 + $0x68] sm:$0xff]  ;;  %v393_v3 = vld [vmem:[#allocation4 + $0x60] sm:$0xff]  ;;  %v392_v5 = vld [vmem:[#allocation4 + $0x58] sm:$0xff]  ;;  %vm1249_vm7 = vcmp.ge.s32.totalorder %v3999_v52, 0  ;;  %vm1261_vm8 = vcmp.lt.s32.totalorder %v3999_v52, 16  ;;  %s2834_s9 = sadd.s32 %s3049_s21, %s3041_s29  ;;  %s2837_s10 = sshll.u32 %s3971_s22, 4  ;;  %s7127_s10 = int_to_ptr.vmem [resolvable:$true] %s2837_s10 }
  0x9a   : > { %3123 = vmatpush3.msra.mxu0 %v396_v0  ;;  %v357_v4 = vld [vmem:[#allocation2] sm:$0xff]  ;;  %v391_v6 = vld [vmem:[#allocation4 + $0x50] sm:$0xff]  ;;  %v390_v7 = vld [vmem:[#allocation4 + $0x48] sm:$0xff]  ;;  %v3981_v44 = vshrl.u32 %v1333_v40, 7  ;;  %s3042_s11 = sshll.u32 %s2834_s9, 7  ;;  %s8007_s13 = sand.u32 1, %s3701_s25  }
  0x9b   : > { %3124 = vmatprep.subr.mxu0 %v395_v1  ;;  %3154 = vmatprep.mubr.f32.mxu0 %v357_v4  ;;  %v389_v8 = vld [vmem:[#allocation4 + $0x40] sm:$0xff]  ;;  %v388_v9 = vld [vmem:[#allocation4 + $0x38] sm:$0xff]  ;;  %v387_v10 = vld [vmem:[#allocation4 + $0x30] sm:$0xff]  ;;  %s7133_s23 = scalar_lea.hbm %s7196_s7, %s3042_s11  ;;  %s7138_s20 = scalar_lea.sflag [#allocation6], %s8007_s13 }
  0x9c   : > { %3125 = vmatpush3.msra.mxu0 %v395_v1  ;;  %v386_v11 = vld [vmem:[#allocation4 + $0x28] sm:$0xff]  ;;  %v385_v12 = vld [vmem:[#allocation4 + $0x20] sm:$0xff]  ;;  %v384_v13 = vld [vmem:[#allocation4 + $0x18] sm:$0xff]  ;;  %v3993_v50 = vsub.s32 2, %v3981_v44  ;;  %v4002_v54 = vsub.s32 0, %v3981_v44  ;;  %v1335_v59 = vadd.s32 8, %v3981_v44 }
  0x9d   : > { %3126 = vmatprep.subr.mxu0 %v394_v2  ;;  %v383_v14 = vld [vmem:[#allocation4 + $0x10] sm:$0xff]  ;;  %v382_v15 = vld [vmem:[#allocation4 + $0x8] sm:$0xff]  ;;  %v381_v16 = vld [vmem:[#allocation4] sm:$0xff]  ;;  %v4013_v60 = vsub.s32 1, %v3981_v44  ;;  %v4016_v61 = vadd.s32 4294967294, %v3981_v44  ;;  %v4019_v62 = vsub.s32 3, %v3981_v44 }
  0x9e   : > { %3127 = vmatpush3.msra.mxu0 %v394_v2  ;;  %v358_v17 = vld [vmem:[#allocation2 + $0x8] sm:$0xff]  ;;  %v359_v18 = vld [vmem:[#allocation2 + $0x10] sm:$0xff]  ;;  %v360_v19 = vld [vmem:[#allocation2 + $0x18] sm:$0xff]  ;;  %7371 = vst [vmem:[#allocation32_spill] sm:$0xff] %v3993_v50  ;;  %vm1365_vm12 = vcmp.lt.s32.totalorder %v3981_v44, 2  ;;  %vm1630_vm13 = vcmp.lt.s32.totalorder %v3981_v44, 1 }
  0x9f   : > { %3128 = vmatprep.subr.mxu0 %v393_v3  ;;  %v361_v20 = vld [vmem:[#allocation2 + $0x20] sm:$0xff]  ;;  %v362_v21 = vld [vmem:[#allocation2 + $0x28] sm:$0xff]  ;;  %v363_v22 = vld [vmem:[#allocation2 + $0x30] sm:$0xff]  ;;  %7372 = vst [vmem:[#allocation33_spill] sm:$0xff] %v4002_v54  ;;  %vm2075_vm14 = vcmp.lt.s32.totalorder %v3981_v44, 7  ;;  %s3619_s12 = scalar_lea.vmem %s7127_s10, 2048 }
  0xa0   : > { %3129 = vmatpush3.msra.mxu0 %v393_v3  ;;  %v364_v23 = vld [vmem:[#allocation2 + $0x38] sm:$0xff]  ;;  %v365_v24 = vld [vmem:[#allocation2 + $0x40] sm:$0xff]  ;;  %v366_v25 = vld [vmem:[#allocation2 + $0x48] sm:$0xff]  ;;  %7373 = vst [vmem:[#allocation34_spill] sm:$0xff] %v4013_v60  ;;  %p3620_p9 = scmp.ne.s32.totalorder %s7127_s10, %s3619_s12  ;;  %s3736_s26 = smov [#allocation10]  }
  0xa1   : > { %3130 = vmatprep.subr.mxu0 %v392_v5  ;;  %v367_v26 = vld [vmem:[#allocation2 + $0x50] sm:$0xff]  ;;  %v368_v27 = vld [vmem:[#allocation2 + $0x58] sm:$0xff]  ;;  %v369_v28 = vld [vmem:[#allocation2 + $0x60] sm:$0xff]  ;;  %7374 = vst [vmem:[#allocation35_spill] sm:$0xff] %v4016_v61  ;;  %s3623_s30 = sshll.u32 %s3736_s26, 4  ;;  %s3624_s30 = int_to_ptr.vmem [resolvable:$false] %s3623_s30 }
  0xa2   : > { %3131 = vmatpush3.msra.mxu0 %v392_v5  ;;  %v370_v29 = vld [vmem:[#allocation2 + $0x68] sm:$0xff]  ;;  %v371_v30 = vld [vmem:[#allocation2 + $0x70] sm:$0xff]  ;;  %v372_v31 = vld [vmem:[#allocation2 + $0x78] sm:$0xff]  ;;  %7375 = vst [vmem:[#allocation36_spill] sm:$0xff] %v4019_v62  ;;  %v4032_v5 = vadd.s32 4294967295, %v3981_v44  ;;  %p3621_p11 = pnand %p3620_p9, %p3831_p3  ;;  %s3625_s19 = scalar_lea.vmem %s3624_s30, 4096 }
  0xa3   : > { %3132 = vmatprep.subr.mxu0 %v391_v6  ;;  %v373_v32 = vld [vmem:[#allocation2 + $0x80] sm:$0xff]  ;;  %v374_v33 = vld [vmem:[#allocation2 + $0x88] sm:$0xff]  ;;  %v375_v34 = vld [vmem:[#allocation2 + $0x90] sm:$0xff]  ;;  %p3626_p2 = scmp.lt.s32.totalorder %s7127_s10, %s3624_s30  ;;  %p3627_p5 = scmp.lt.s32.totalorder %s3625_s19, %s3619_s12 }
  0xa4   : > { %3133 = vmatpush3.msra.mxu0 %v391_v6  ;;  %v376_v35 = vld [vmem:[#allocation2 + $0x98] sm:$0xff]  ;;  %v377_v36 = vld [vmem:[#allocation2 + $0xa0] sm:$0xff]  ;;  %v378_v37 = vld [vmem:[#allocation2 + $0xa8] sm:$0xff]  ;;  %7377 = vst [vmem:[#allocation38_spill] sm:$0xff] %v4032_v5  ;;  %p3622_p13 = pneg %p3621_p11 }
  0xa5   : > { %3134 = vmatprep.subr.mxu0 %v390_v7  ;;  %v379_v38 = vld [vmem:[#allocation2 + $0xb0] sm:$0xff]  ;;  %v380_v39 = vld [vmem:[#allocation2 + $0xb8] sm:$0xff]  ;;  %v3976_v41 = vld [vmem:[%s7191_s2] ss:$0 sm:$0xff]  ;;  %p3628_p6 = por %p3627_p5, %p3626_p2 }
  0xa6   : > { %3135 = vmatpush3.msra.mxu0 %v390_v7  ;;  %v1336_v53 = vld [vmem:[#allocation7] sm:$0x1f]  ;;  %v1337_v6 = vld [vmem:[#allocation7 + $0x8] sm:$0x1f] }
  0xa7   : > { %3136 = vmatprep.subr.mxu0 %v389_v8  ;;  %v4028_v3 = vrot.slane %v1336_v53, %v3993_v50  ;;  %v4035_v7 = vrot.slane %v1336_v53, %v4002_v54  ;;  %p3629_p8 = pnand %p3628_p6, %p3622_p13 }
  0xa8   : > { %3137 = vmatpush3.msra.mxu0 %v389_v8 }
  0xa9   : > { %3138 = vmatprep.subr.mxu0 %v388_v9  ;;  %7376 = vst [vmem:[#allocation37_spill] sm:$0xff] %v4028_v3  ;;  %7378 = vst [vmem:[#allocation39_spill] sm:$0xff] %v4035_v7 }
  0xaa   : > { %3139 = vmatpush3.msra.mxu0 %v388_v9  ;;  %v4039_v9 = vadd.s32 1, %v3999_v52 }
  0xab   : > { %3140 = vmatprep.subr.mxu0 %v387_v10 }
  0xac   : > { %3141 = vmatpush3.msra.mxu0 %v387_v10  ;;  %vm1250_vm10 = vcmp.ge.s32.totalorder %v4039_v9, 0  ;;  %vm1262_vm11 = vcmp.lt.s32.totalorder %v4039_v9, 16 }
  0xad   : > { %3142 = vmatprep.subr.mxu0 %v386_v11 }
  0xae   : > { %3143 = vmatpush3.msra.mxu0 %v386_v11 }
  0xaf   : > { %3144 = vmatprep.subr.mxu0 %v385_v12 }
  0xb0   : > { %3145 = vmatpush3.msra.mxu0 %v385_v12 }
  0xb1   : > { %3146 = vmatprep.subr.mxu0 %v384_v13 }
  0xb2   : > { %3147 = vmatpush3.msra.mxu0 %v384_v13  ;;  %v4045_v13 = vrot.slane %v1336_v53, %v4013_v60 }
  0xb3   : > { %3148 = vmatprep.subr.mxu0 %v383_v14 }
  0xb4   : > { %3149 = vmatpush3.msra.mxu0 %v383_v14  ;;  %v4047_v14 = vadd.s32 1, %v1335_v59 }
  0xb5   : > { %3150 = vmatprep.subr.mxu0 %v382_v15 }
  0xb6   : > { %3151 = vmatpush3.msra.mxu0 %v382_v15  ;;  %7379 = vst [vmem:[#allocation40_spill] sm:$0xff] %v4047_v14  ;;  %v4050_v15 = vrot.slane %v1336_v53, %v4019_v62 }
  0xb7   : > { %3152 = vmatprep.subr.mxu0 %v381_v16 }
  0xb8   : > { %3153 = vmatpush3.msra.mxu0 %v381_v16  ;;  %7380 = vst [vmem:[#allocation41_spill] sm:$0xff] %v4050_v15  ;;  %v4052_v16 = vadd.s32 2, %v1335_v59  ;;  %v4115_v59 = vadd.s32 4, %v3999_v52 }
  0xb9   : > { %3155 = vmatmul.mubr.f32.vlgmr.msra.gmra.mxu0 %v358_v17 }
  0xba   : > { %3157 = vmatprep.mubr.f32.mxu0 %v359_v18  ;;  %7381 = vst [vmem:[#allocation42_spill] sm:$0xff] %v4052_v16  ;;  %v4055_v18 = vrot.slane %v1337_v6, %v3993_v50  ;;  %7393 = vst [vmem:[#allocation54_spill] sm:$0xff] %v4115_v59 }
  0xbc   : > { %7382 = vst [vmem:[#allocation43_spill] sm:$0xff] %v4055_v18 }
  0xbd   : > { %3158 = vmatmul.mubr.f32.gmra.mxu0 %v360_v19  ;;  %v1338_v19 = vld [vmem:[#allocation7 + $0x10] sm:$0x1f] }
  0xbe   : > { %3160 = vmatprep.mubr.f32.mxu0 %v361_v20 }
  0xc1   : > { %3161 = vmatmul.mubr.f32.gmra.mxu0 %v362_v21  ;;  %v4061_v21 = vrot.slane %v1337_v6, %v4002_v54 }
  0xc2   : > { %3163 = vmatprep.mubr.f32.mxu0 %v363_v22  ;;  %v4064_v22 = vrot.slane %v1337_v6, %v4013_v60 }
  0xc3   : > { %7383 = vst [vmem:[#allocation44_spill] sm:$0xff] %v4061_v21 }
  0xc4   : > { %7384 = vst [vmem:[#allocation45_spill] sm:$0xff] %v4064_v22 }
  0xc5   : > { %3164 = vmatmul.mubr.f32.gmra.mxu0 %v364_v23  ;;  %v4067_v23 = vrot.slane %v1337_v6, %v4019_v62 }
  0xc6   : > { %3166 = vmatprep.mubr.f32.mxu0 %v365_v24 }
  0xc7   : > { %7385 = vst [vmem:[#allocation46_spill] sm:$0xff] %v4067_v23 }
  0xc9   : > { %3167 = vmatmul.mubr.f32.gmra.mxu0 %v366_v25 }
  0xca   : > { %3169 = vmatprep.mubr.f32.mxu0 %v367_v26  ;;  %v4073_v26 = vadd.s32 2, %v3999_v52 }
  0xcd   : > { %3170 = vmatmul.mubr.f32.gmra.mxu0 %v368_v27 }
  0xce   : > { %3172 = vmatprep.mubr.f32.mxu0 %v369_v28  ;;  %v1339_v28 = vld [vmem:[#allocation7 + $0x18] sm:$0x1f] }
  0xcf   : > { %v4109_v53 = vrot.slane %v1339_v28, %v4002_v54 }
  0xd1   : > { %3173 = vmatmul.mubr.f32.gmra.mxu0 %v370_v29  ;;  %7391 = vst [vmem:[#allocation52_spill] sm:$0xff] %v4109_v53 }
  0xd2   : > { %3175 = vmatprep.mubr.f32.mxu0 %v371_v30  ;;  %v4077_v30 = vrot.slane %v1338_v19, %v3993_v50 }
  0xd4   : > { %7386 = vst [vmem:[#allocation47_spill] sm:$0xff] %v4077_v30 }
  0xd5   : > { %3176 = vmatmul.mubr.f32.gmra.mxu0 %v372_v31 }
  0xd6   : > { %3178 = vmatprep.mubr.f32.mxu0 %v373_v32  ;;  %v4083_v32 = vrot.slane %v1338_v19, %v4002_v54 }
  0xd8   : > { %7387 = vst [vmem:[#allocation48_spill] sm:$0xff] %v4083_v32 }
  0xd9   : > { %3179 = vmatmul.mubr.f32.gmra.mxu0 %v374_v33 }
  0xda   : > { %3181 = vmatprep.mubr.f32.mxu0 %v375_v34 }
  0xdd   : > { %3182 = vmatmul.mubr.f32.gmra.mxu0 %v376_v35  ;;  %v4090_v35 = vadd.s32 3, %v3999_v52 }
  0xde   : > { %3184 = vmatprep.mubr.f32.mxu0 %v377_v36 }
  0xdf   : > { %7388 = vst [vmem:[#allocation49_spill] sm:$0xff] %v4090_v35 }
  0xe1   : > { %3185 = vmatmul.mubr.f32.gmra.mxu0 %v378_v37 }
  0xe2   : > { %3187 = vmatprep.mubr.f32.mxu0 %v379_v38  ;;  %v4096_v38 = vrot.slane %v1338_v19, %v4013_v60 }
  0xe4   : > { %7389 = vst [vmem:[#allocation50_spill] sm:$0xff] %v4096_v38 }
  0xe5   : > { %3188 = vmatmul.mubr.f32.gmra.mxu0 %v380_v39  ;;  %v4099_v39 = vrot.slane %v1339_v28, %v3993_v50  ;;  %v7394_v50 = vmov -1.0  }
  0xe7   : > { %7390 = vst [vmem:[#allocation51_spill] sm:$0xff] %v4099_v39 }
 0x179   : > { %v3156_v42 = vpop.f32.mrf.mxu0 }
 0x17a   : > { %v3979_v43 = vadd.f32 %v3156_v42, %v3976_v41 }
 0x17b   : > { %v470_v45 = vpop.f32.mrf.mxu0 }
 0x17c   : > { %v3984_v46 = vmul.f32 0.70710677, %v3979_v43  ;;  %v3987_v47 = vadd.f32 %v3976_v41, %v470_v45  ;;  %v4124_v6 = vmul.f32 0.5, %v3979_v43 }
 0x17d   : > { %v3159_v48 = vpop.f32.mrf.mxu0 }
 0x17e   : > { %v3990_v49 = vand.u32 2147483647, %v3984_v46  ;;  %v3996_v51 = vmul.f32 0.70710677, %v3987_v47  ;;  %v4005_v55 = vadd.f32 %v3159_v48, %v3976_v41  ;;  %vm614_vm0 = vcmp.ge.f32.partialorder %v3984_v46, 0.0 }
 0x17f   : > { %v480_v56 = vpop.f32.mrf.mxu0 }
 0x180   : > { %v686_v57 = vmul.f32 0.3275911, %v3990_v49  ;;  %v4009_v58 = vand.u32 2147483647, %v3996_v51  ;;  %v4022_v63 = vmul.f32 0.70710677, %v4005_v55  ;;  %v4025_v0 = vadd.f32 %v3976_v41, %v480_v56 }
 0x181   : > { %v3162_v1 = vpop.f32.mrf.mxu0  ;;  %v998_v33 = vsub.f32 0.0, %v3990_v49  ;;  %vm613_vm1 = vcmp.ge.f32.partialorder %v3996_v51, 0.0 }
 0x182   : > { %v710_v2 = vadd.f32 1.0, %v686_v57  ;;  %v685_v4 = vmul.f32 0.3275911, %v4009_v58  ;;  %v664_v8 = vand.u32 2147483647, %v4022_v63  ;;  %v4070_v25 = vadd.f32 %v3162_v1, %v3976_v41 }
 0x183   : > { %v4042_v10 = vmul.f32 0.70710677, %v4025_v0  ;;  %v490_v11 = vpop.f32.mrf.mxu0  ;;  %v997_v40 = vsub.f32 0.0, %v4009_v58  ;;  %v4112_v57 = vrot.slane %v1339_v28, %v4013_v60  ;;  %v1022_v1 = vmul.f32 %v998_v33, %v3990_v49 }
 0x184   : > { %3356 = vrcp.f32 %v710_v2  ;;  %v709_v12 = vadd.f32 1.0, %v685_v4  ;;  %v688_v17 = vmul.f32 0.3275911, %v664_v8  ;;  %v4080_v31 = vadd.f32 %v3976_v41, %v490_v11 }
 0x185   : > { %v4058_v20 = vand.u32 2147483647, %v4042_v10  ;;  %v3165_v27 = vpop.f32.mrf.mxu0  ;;  %v4087_v34 = vmul.f32 0.70710677, %v4070_v25  ;;  %v1000_v56 = vsub.f32 0.0, %v664_v8  ;;  %7392 = vst [vmem:[#allocation53_spill] sm:$0xff] %v4112_v57  ;;  %v1021_v46 = vmul.f32 %v997_v40, %v4009_v58 }
 0x186   : > { %3358 = vrcp.f32 %v709_v12  ;;  %v712_v24 = vadd.f32 1.0, %v688_v17  ;;  %v4093_v37 = vmul.f32 0.70710677, %v4080_v31  ;;  %v4106_v45 = vadd.f32 %v3165_v27, %v3976_v41 }
 0x187   : > { %v687_v29 = vmul.f32 0.3275911, %v4058_v20  ;;  %v4103_v42 = vand.u32 2147483647, %v4087_v34  ;;  %v500_v48 = vpop.f32.mrf.mxu0  ;;  %v4127_v11 = vmul.f32 0.5, %v3987_v47  ;;  %v1024_v27 = vmul.f32 %v1000_v56, %v664_v8 }
 0x188   : > { %3360 = vrcp.f32 %v712_v24  ;;  %v4121_v4 = vand.u32 2147483647, %v4093_v37  ;;  %v4130_v12 = vmul.f32 0.70710677, %v4106_v45  ;;  %v4133_v17 = vadd.f32 %v3976_v41, %v500_v48 }
 0x189   : > { %v711_v36 = vadd.f32 1.0, %v687_v29  ;;  %v690_v2 = vmul.f32 0.3275911, %v4103_v42  ;;  %v7204_v24 = vmov -1.0   ;;  %v1047_v33 = vmul.f32 1.442695, %v1022_v1 }
 0x18a   : > { %v689_v19 = vmul.f32 0.3275911, %v4121_v4  ;;  %v4139_v43 = vsel %vm614_vm0, 1.0, %v7204_v24  ;;  %v4142_v47 = vand.u32 2147483647, %v4130_v12  ;;  %v999_v51 = vsub.f32 0.0, %v4058_v20  ;;  %vm4286_vm0 = vmand %vm1249_vm7, %vm1261_vm8 }
 0x18b   : > { %3362 = vrcp.f32 %v711_v36  ;;  %v714_v49 = vadd.f32 1.0, %v690_v2  ;;  %v4145_v28 = vmul.f32 0.70710677, %v4133_v17  ;;  %v4152_v40 = vsel %vm613_vm1, 1.0, %v7204_v24  ;;  %vm4336_vm7 = vmand %vm1250_vm10, %vm1262_vm11 }
 0x18c   : > { %v713_v58 = vadd.f32 1.0, %v689_v19  ;;  %v4155_v8 = vmul.f32 0.5, %v4005_v55  ;;  %v692_v48 = vmul.f32 0.3275911, %v4142_v47  ;;  %v1045_v56 = vmul.f32 1.442695, %v1021_v46 }
 0x18d   : > { %3364 = vrcp.f32 %v714_v49  ;;  %vm616_vm2 = vcmp.ge.f32.partialorder %v4022_v63, 0.0  ;;  %vm615_vm3 = vcmp.ge.f32.partialorder %v4042_v10, 0.0  ;;  %v4161_v1 = vand.u32 2147483647, %v4145_v28 }
 0x18e   : > { %v1051_v19 = vmul.f32 1.442695, %v1024_v27  ;;  %3366 = vrcp.f32 %v713_v58  ;;  %v716_v24 = vadd.f32 1.0, %v692_v48  ;;  %v1023_v62 = vmul.f32 %v999_v51, %v4058_v20 }
 0x18f   : > { %3368 = vpow2.f32 %v1047_v33  ;;  %v691_v46 = vmul.f32 0.3275911, %v4161_v1  ;;  %v4172_v57 = vsel %vm616_vm2, 1.0, %v7394_v50  ;;  %v4175_v53 = vmul.f32 0.5, %v4025_v0 }
 0x190   : > { %3370 = vrcp.f32 %v716_v24  ;;  %v4181_v51 = vsel %vm615_vm3, 1.0, %v7394_v50  ;;  %v4184_v48 = vmul.f32 0.5, %v4070_v25  ;;  %vm618_vm4 = vcmp.ge.f32.partialorder %v4087_v34, 0.0 }
 0x191   : > { %v4147_v29 = vpop.eup %3356  ;;  %3372 = vpow2.f32 %v1045_v56  ;;  %v715_v58 = vadd.f32 1.0, %v691_v46  ;;  %v1049_v56 = vmul.f32 1.442695, %v1023_v62  ;;  %vm617_vm5 = vcmp.ge.f32.partialorder %v4093_v37, 0.0 }
 0x192   : > { %v782_v36 = vmul.f32 1.0614054, %v4147_v29  ;;  %3374 = vpow2.f32 %v1051_v19  ;;  %7395 = vst [vmem:[#allocation55_spill] sm:$0xff] %v4184_v48  ;;  %v4199_v62 = vsel %vm618_vm4, 1.0, %v7394_v50  ;;  %v4202_v34 = vmul.f32 0.5, %v4080_v31 }
 0x193   : > { %v4163_v2 = vpop.eup %3358  ;;  %3376 = vrcp.f32 %v715_v58  ;;  %v1001_v38 = vsub.f32 0.0, %v4121_v4  ;;  %vm620_vm6 = vcmp.ge.f32.partialorder %v4130_v12, 0.0  ;;  %vm619_vm9 = vcmp.ge.f32.partialorder %v4145_v28, 0.0 }
 0x194   : > { %v2989_v49 = vadd.f32 -1.4531521, %v782_v36  ;;  %v781_v55 = vmul.f32 1.0614054, %v4163_v2  ;;  %v3168_v36 = vpop.f32.mrf.mxu0  ;;  %7396 = vst [vmem:[#allocation56_spill] sm:$0xff] %v4202_v34  ;;  %3378 = vpow2.f32 %v1049_v56  ;;  %v1004_v34 = vsub.f32 0.0, %v4142_v47 }
 0x195   : > { %v4168_v60 = vpop.eup %3360  ;;  %v4194_v10 = vadd.f32 %v3168_v36, %v3976_v41  ;;  %v4206_v36 = vsel %vm617_vm5, 1.0, %v7394_v50  ;;  %vm1392_vm1 = vcmp.ge.s32.totalorder %v4016_v61, 0  ;;  %vm1657_vm2 = vcmp.ge.s32.totalorder %v4032_v5, 0 }
 0x196   : > { %v830_v63 = vmul.f32 %v4147_v29, %v2989_v49  ;;  %v2988_v27 = vadd.f32 -1.4531521, %v781_v55  ;;  %v784_v33 = vmul.f32 1.0614054, %v4168_v60  ;;  %vm2105_vm3 = vcmp.lt.s32.totalorder %v4047_v14, 16  ;;  %v7442_v14 = vld [vmem:[#allocation48_spill] sm:$0xff] }
 0x197   : > { %vm2340_vm4 = vcmp.lt.s32.totalorder %v3981_v44, 6  ;;  %vm1251_vm8 = vcmp.ge.s32.totalorder %v4073_v26, 0 }
 0x198   : > { %v854_v20 = vadd.f32 1.4214138, %v830_v63  ;;  %v4186_v49 = vpop.eup %3362  ;;  %v829_v0 = vmul.f32 %v4163_v2, %v2988_v27  ;;  %v2991_v24 = vadd.f32 -1.4531521, %v784_v33  ;;  %v1002_v63 = vsub.f32 0.0, %v4103_v42 }
 0x199   : > { %v783_v19 = vmul.f32 1.0614054, %v4186_v49 }
 0x19a   : > { %v878_v55 = vmul.f32 %v4147_v29, %v854_v20  ;;  %v853_v46 = vadd.f32 1.4214138, %v829_v0  ;;  %v832_v25 = vmul.f32 %v4168_v60, %v2991_v24  ;;  %v4208_v0 = vpop.eup %3364 }
 0x19b   : > { %v2990_v33 = vadd.f32 -1.4531521, %v783_v19  ;;  %v4216_v19 = vmul.f32 0.70710677, %v4194_v10  ;;  %v786_v56 = vmul.f32 1.0614054, %v4208_v0 }
 0x19c   : > { %v3013_v27 = vadd.f32 -0.28449672, %v878_v55  ;;  %v877_v20 = vmul.f32 %v4163_v2, %v853_v46  ;;  %v856_v37 = vadd.f32 1.4214138, %v832_v25  ;;  %v4213_v55 = vmul.f32 0.5, %v4106_v45 }
 0x19d   : > { %v831_v58 = vmul.f32 %v4186_v49, %v2990_v33  ;;  %v1026_v25 = vmul.f32 %v1002_v63, %v4103_v42  ;;  %vm622_vm15 = vcmp.ge.f32.partialorder %v4216_v19, 0.0 }
 0x19e   : > { %v926_v24 = vmul.f32 %v4147_v29, %v3013_v27  ;;  %7397 = vst [vmem:[#allocation57_spill] sm:$0xff] %v4213_v55  ;;  %v3012_v31 = vadd.f32 -0.28449672, %v877_v20  ;;  %v880_v46 = vmul.f32 %v4168_v60, %v856_v37  ;;  %v4223_v27 = vpop.eup %3366  ;;  %v2993_v55 = vadd.f32 -1.4531521, %v786_v56 }
 0x19f   : > { %v855_v39 = vadd.f32 1.4214138, %v831_v58  ;;  %v4227_v20 = vmul.f32 0.5, %v4133_v17  ;;  %v3369_v37 = vpop.eup %3368  ;;  %v785_v63 = vmul.f32 1.0614054, %v4223_v27  ;;  %v4309_v28 = vsel %vm622_vm15, 1.0, %v7394_v50 }
 0x1a0   : > { %v950_v59 = vadd.f32 0.2548296, %v926_v24  ;;  %v925_v45 = vmul.f32 %v4163_v2, %v3012_v31  ;;  %v3015_v33 = vadd.f32 -0.28449672, %v880_v46  ;;  %v4233_v24 = vand.u32 2147483647, %v4216_v19  ;;  %v4235_v58 = vpop.eup %3370 }
 0x1a1   : > { %7398 = vst [vmem:[#allocation58_spill] sm:$0xff] %v4227_v20  ;;  %v879_v42 = vmul.f32 %v4186_v49, %v855_v39  ;;  %v834_v46 = vmul.f32 %v4208_v0, %v2993_v55  ;;  %v1055_v56 = vmul.f32 1.442695, %v1026_v25  ;;  %v3373_v17 = vpop.eup %3372  ;;  %v2992_v35 = vadd.f32 -1.4531521, %v785_v63 }
 0x1a2   : > { %v974_v32 = vmul.f32 %v4147_v29, %v950_v59  ;;  %v949_v30 = vadd.f32 0.2548296, %v925_v45  ;;  %v928_v31 = vmul.f32 %v4168_v60, %v3015_v33  ;;  %v788_v59 = vmul.f32 1.0614054, %v4235_v58  ;;  %v3375_v39 = vpop.eup %3374 }
 0x1a3   : > { %v3014_v54 = vadd.f32 -0.28449672, %v879_v42  ;;  %v858_v22 = vadd.f32 1.4214138, %v834_v46  ;;  %v833_v33 = vmul.f32 %v4223_v27, %v2992_v35  ;;  %v694_v55 = vmul.f32 0.3275911, %v4233_v24 }
 0x1a4   : > { %v1094_v20 = vmul.f32 %v3369_v37, %v974_v32  ;;  %v973_v29 = vmul.f32 %v4163_v2, %v949_v30  ;;  %v952_v23 = vadd.f32 0.2548296, %v928_v31  ;;  %v2995_v2 = vadd.f32 -1.4531521, %v788_v59  ;;  %v4249_v37 = vpop.eup %3376  ;;  %v510_v59 = vpop.f32.mrf.mxu0 }
 0x1a5   : > { %v927_v45 = vmul.f32 %v4186_v49, %v3014_v54  ;;  %v882_v30 = vmul.f32 %v4208_v0, %v858_v22  ;;  %3380 = vpow2.f32 %v1055_v56  ;;  %v1025_v54 = vmul.f32 %v1001_v38, %v4121_v4 }
 0x1a6   : > { %v1118_v48 = vsub.f32 1.0, %v1094_v20  ;;  %v1093_v32 = vmul.f32 %v3373_v17, %v973_v29  ;;  %v976_v25 = vmul.f32 %v4168_v60, %v952_v23  ;;  %v4255_v35 = vsel %vm620_vm6, 1.0, %v7394_v50  ;;  %v3379_v60 = vpop.eup %3378 }
 0x1a7   : > { %v951_v42 = vadd.f32 0.2548296, %v927_v45  ;;  %v857_v46 = vadd.f32 1.4214138, %v833_v33  ;;  %v3017_v23 = vadd.f32 -0.28449672, %v882_v30  ;;  %v1028_v17 = vmul.f32 %v1004_v34, %v4142_v47 }
 0x1a8   : > { %v1142_v20 = vmul.f32 %v1118_v48, %v4139_v43  ;;  %v1117_v63 = vsub.f32 1.0, %v1093_v32  ;;  %v1096_v31 = vmul.f32 %v3375_v39, %v976_v25  ;;  %v1003_v56 = vsub.f32 0.0, %v4161_v1 }
 0x1a9   : > { %v975_v22 = vmul.f32 %v4186_v49, %v951_v42  ;;  %v836_v4 = vmul.f32 %v4235_v58, %v2995_v2  ;;  %v787_v12 = vmul.f32 1.0614054, %v4249_v37  ;;  %v718_v29 = vadd.f32 1.0, %v694_v55 }
 0x1aa   : > { %v1141_v38 = vmul.f32 %v1117_v63, %v4152_v40  ;;  %v1120_v43 = vsub.f32 1.0, %v1096_v31  ;;  %v1053_v39 = vmul.f32 1.442695, %v1025_v54  ;;  %v1190_v45 = vadd.f32 1.0, %v1142_v20 }
 0x1ab   : > { %v1095_v48 = vmul.f32 %v3379_v60, %v975_v22  ;;  %v881_v33 = vmul.f32 %v4223_v27, %v857_v46  ;;  %v511_v47 = vadd.f32 %v3976_v41, %v510_v59  ;;  %v930_v34 = vmul.f32 %v4208_v0, %v3017_v23 }
 0x1ac   : > { %v1189_v49 = vadd.f32 1.0, %v1141_v38  ;;  %v1059_v32 = vmul.f32 1.442695, %v1028_v17  ;;  %v1027_v55 = vmul.f32 %v1003_v56, %v4161_v1  ;;  %v860_v25 = vadd.f32 1.4214138, %v836_v4 }
 0x1ad   : > { %v1119_v40 = vsub.f32 1.0, %v1095_v48  ;;  %v2994_v30 = vadd.f32 -1.4531521, %v787_v12  ;;  %3382 = vrcp.f32 %v718_v29  ;;  %v1006_v2 = vsub.f32 0.0, %v4233_v24 }
 0x1ae   : > { %v1213_v42 = vmul.f32 %v1189_v49, %v4127_v11  ;;  %v1144_v54 = vmul.f32 %v1120_v43, %v4172_v57  ;;  %3384 = vpow2.f32 %v1053_v39  ;;  %v1214_v1 = vmul.f32 %v1190_v45, %v4124_v6 }
 0x1af   : > { %v1143_v20 = vmul.f32 %v1119_v40, %v4181_v51  ;;  %v3016_v63 = vadd.f32 -0.28449672, %v881_v33  ;;  %v4280_v31 = vmul.f32 0.70710677, %v511_v47  ;;  %v954_v57 = vadd.f32 0.2548296, %v930_v34 }
 0x1b0   : > { %3386 = vpow2.f32 %v1059_v32  ;;  %v4296_v6 = vsel %vm619_vm9, 1.0, %v7394_v50  ;;  %v1057_v11 = vmul.f32 1.442695, %v1027_v55  ;;  %v4300_v51 = vsel %vm4286_vm0, %v1213_v42, 0.0 }
 0x1b1   : > { %7401 = vst [vmem:[#allocation59_spill] sm:$0xff] %v4300_v51  ;;  %v884_v60 = vmul.f32 %v4235_v58, %v860_v25  ;;  %v835_v22 = vmul.f32 %v4249_v37, %v2994_v30  ;;  %v1030_v23 = vmul.f32 %v1006_v2, %v4233_v24  ;;  %v1192_v17 = vadd.f32 1.0, %v1144_v54 }
 0x1b2   : > { %v4312_v56 = vmul.f32 0.5, %v4194_v10  ;;  %v4314_v59 = vmul.f32 0.5, %v511_v47  ;;  %v3381_v38 = vpop.eup %3380  ;;  %v4318_v4 = vsel %vm4286_vm0, %v1214_v1, 0.0  ;;  %v1191_v12 = vadd.f32 1.0, %v1143_v20 }
 0x1b3   : > { %7402 = vst [vmem:[#allocation60_spill] sm:$0xff] %v4318_v4  ;;  %v929_v29 = vmul.f32 %v4223_v27, %v3016_v63  ;;  %vm621_vm5 = vcmp.ge.f32.partialorder %v4280_v31, 0.0  ;;  %v1341_v24 = vrot.slane %v4300_v51, 6  ;;  %v1606_v19 = vrot.slane %v4300_v51, 7 }
 0x1b4   : > { %v2051_v43 = vrot.slane %v4300_v51, 1  ;;  %vm2370_vm6 = vcmp.lt.s32.totalorder %v4052_v16, 16  ;;  %v978_v10 = vmul.f32 %v4208_v0, %v954_v57  ;;  %v3019_v48 = vadd.f32 -0.28449672, %v884_v60 }
 0x1b5   : > { %v859_v39 = vadd.f32 1.4214138, %v835_v22  ;;  %3388 = vpow2.f32 %v1057_v11  ;;  %v1063_v45 = vmul.f32 1.442695, %v1030_v23  ;;  %v1353_v49 = vrot.slane %v4318_v4, 6 }
 0x1b6   : > { %v1618_v33 = vrot.slane %v4318_v4, 7  ;;  %v2063_v47 = vrot.slane %v4318_v4, 1  ;;  %v1216_v40 = vmul.f32 %v1192_v17, %v4155_v8  ;;  %v7221_v34 = vrot.slane %v4300_v51, 2 }
 0x1b7   : > { %v1215_v32 = vmul.f32 %v1191_v12, %v4175_v53  ;;  %v953_v55 = vadd.f32 0.2548296, %v929_v29  ;;  %v4344_v25 = vsel %vm621_vm5, 1.0, %v7394_v50  ;;  %v1378_v8 = vsel %vm1365_vm12, %v1353_v49, %v1341_v24 }
 0x1b8   : > { %v1643_v30 = vsel %vm1630_vm13, %v1618_v33, %v1606_v19  ;;  %v2088_v9 = vsel %vm2075_vm14, %v2063_v47, %v2051_v43  ;;  %v1098_v2 = vmul.f32 %v3381_v38, %v978_v10  ;;  %v4354_v42 = vmul.f32 %v4028_v3, %v4318_v4 }
 0x1b9   : > { %v7222_v53 = vrot.slane %v4318_v4, 2  ;;  %v932_v54 = vmul.f32 %v4235_v58, %v3019_v48  ;;  %3390 = vpow2.f32 %v1063_v45  ;;  %v1366_v20 = vsel %vm1365_vm12, %v1341_v24, %v1353_v49 }
 0x1ba   : > { %7405 = vst [vmem:[#allocation61_spill] sm:$0xff] %v4354_v42  ;;  %v4358_v1 = vpop.eup %3382  ;;  %v1631_v63 = vsel %vm1630_vm13, %v1606_v19, %v1618_v33  ;;  %v4366_v46 = vsel %vm4336_vm7, %v1216_v40, 0.0  ;;  %v883_v57 = vmul.f32 %v4249_v37, %v859_v39  ;;  %v1402_v60 = vsel %vm1392_vm1, %v1378_v8, 0.0 }
 0x1bb   : > { %7406 = vst [vmem:[#allocation62_spill] sm:$0xff] %v4366_v46  ;;  %v3385_v11 = vpop.eup %3384  ;;  %v1667_v22 = vsel %vm1657_vm2, %v1643_v30, 0.0  ;;  %v2076_v23 = vsel %vm2075_vm14, %v2051_v43, %v2063_v47  ;;  %v2113_v17 = vsel %vm2105_vm3, %v2088_v9, 0.0  ;;  %v2353_v38 = vsel %vm2340_vm4, %v7222_v53, %v7221_v34 }
 0x1bc   : > { %v4385_v12 = vsel %vm4336_vm7, %v1215_v32, 0.0  ;;  %v1122_v29 = vsub.f32 1.0, %v1098_v2  ;;  %v977_v24 = vmul.f32 %v4223_v27, %v953_v55  ;;  %v1431_v43 = vmul.f32 %v4035_v7, %v1366_v20 }
 0x1bd   : > { %7407 = vst [vmem:[#allocation63_spill] sm:$0xff] %v4385_v12  ;;  %v3387_v19 = vpop.eup %3386  ;;  %v4390_v10 = vmul.f32 %v4045_v13, %v1631_v63  ;;  %v4394_v48 = vmul.f32 %v4028_v3, %v4300_v51  ;;  %v790_v39 = vmul.f32 1.0614054, %v4358_v1  ;;  %v4398_v45 = vmul.f32 %v4035_v7, %v1402_v60 }
 0x1be   : > { %v4401_v49 = vmul.f32 %v4045_v13, %v1667_v22  ;;  %v4404_v27 = vmul.f32 %v4050_v15, %v2076_v23  ;;  %v1354_v33 = vrot.slane %v4366_v46, 6  ;;  %vm1263_vm9 = vcmp.lt.s32.totalorder %v4073_v26, 16 }
 0x1bf   : > { %7408 = vst [vmem:[#allocation64_spill] sm:$0xff] %v4390_v10  ;;  %7409 = vst [vmem:[#allocation65_spill] sm:$0xff] %v4394_v48  ;;  %v4410_v47 = vmul.f32 %v4050_v15, %v2113_v17  ;;  %v4414_v40 = vsel %vm2370_vm6, %v2353_v38, 0.0  ;;  %v1342_v0 = vrot.slane %v4385_v12, 6  ;;  %v1607_v32 = vrot.slane %v4385_v12, 7 }
 0x1c0   : > { %7410 = vst [vmem:[#allocation66_spill] sm:$0xff] %v4401_v49  ;;  %7411 = vst [vmem:[#allocation67_spill] sm:$0xff] %v4404_v27  ;;  %v1619_v55 = vrot.slane %v4366_v46, 7  ;;  %v1146_v8 = vmul.f32 %v1122_v29, %v4199_v62  ;;  %v1097_v30 = vmul.f32 %v3385_v11, %v977_v24  ;;  %v956_v9 = vadd.f32 0.2548296, %v932_v54 }
 0x1c1   : > { %7412 = vst [vmem:[#allocation68_spill] sm:$0xff] %v4410_v47  ;;  %7413 = vst [vmem:[#allocation69_spill] sm:$0xff] %v4414_v40  ;;  %v4422_v2 = vmul.f32 %v4028_v3, %v4366_v46  ;;  %v4426_v20 = vmul.f32 %v4055_v18, %v4366_v46  ;;  %v2064_v63 = vrot.slane %v4366_v46, 1  ;;  %v3018_v60 = vadd.f32 -0.28449672, %v883_v57  ;;  %v7419_v40 = vld [vmem:[#allocation56_spill] sm:$0xff] }
 0x1c2   : > { %v4429_v22 = vpop.eup %3388  ;;  %v2052_v23 = vrot.slane %v4385_v12, 1  ;;  %v1121_v17 = vsub.f32 1.0, %v1097_v30  ;;  %v980_v62 = vmul.f32 %v4235_v58, %v956_v9  ;;  %v4434_v54 = vand.u32 2147483647, %v4280_v31  ;;  %vm1275_vm10 = vmand %vm1251_vm8, %vm1263_vm9 }
 0x1c3   : > { %7414 = vst [vmem:[#allocation70_spill] sm:$0xff] %v4422_v2  ;;  %7415 = vst [vmem:[#allocation71_spill] sm:$0xff] %v4426_v20  ;;  %v1367_v11 = vsel %vm1365_vm12, %v1342_v0, %v1354_v33  ;;  %v1379_v38 = vsel %vm1365_vm12, %v1354_v33, %v1342_v0  ;;  %v1644_v29 = vsel %vm1630_vm13, %v1619_v55, %v1607_v32  ;;  %v2997_v57 = vadd.f32 -1.4531521, %v790_v39  ;;  %v7418_v0 = vld [vmem:[#allocation55_spill] sm:$0xff] }
 0x1c4   : > { %v1194_v24 = vadd.f32 1.0, %v1146_v8  ;;  %v1145_v34 = vmul.f32 %v1121_v17, %v4206_v36  ;;  %v931_v30 = vmul.f32 %v4249_v37, %v3018_v60  ;;  %v693_v58 = vmul.f32 0.3275911, %v4434_v54 }
 0x1c5   : > { %v4448_v9 = vmul.f32 %v4028_v3, %v4385_v12  ;;  %v4452_v33 = vmul.f32 %v4055_v18, %v4385_v12  ;;  %v1404_v36 = vsel %vm1392_vm1, %v1379_v38, 0.0  ;;  %v1100_v60 = vmul.f32 %v3387_v19, %v980_v62  ;;  %v3171_v19 = vpop.f32.mrf.mxu0 }
 0x1c6   : > { %v4455_v39 = vpop.eup %3390  ;;  %v1193_v8 = vadd.f32 1.0, %v1145_v34  ;;  %v717_v17 = vadd.f32 1.0, %v693_v58  ;;  %v1467_v31 = vmul.f32 %v4061_v21, %v1367_v11  ;;  %v1632_v53 = vsel %vm1630_vm13, %v1607_v32, %v1619_v55  ;;  %v7423_v58 = vld [vmem:[#allocation45_spill] sm:$0xff] }
 0x1c7   : > { %7416 = vst [vmem:[#allocation72_spill] sm:$0xff] %v4448_v9  ;;  %7417 = vst [vmem:[#allocation73_spill] sm:$0xff] %v4452_v33  ;;  %v1669_v2 = vsel %vm1657_vm2, %v1644_v29, 0.0  ;;  %v2089_v9 = vsel %vm2075_vm14, %v2064_v63, %v2052_v23  ;;  %v1218_v47 = vmul.f32 %v1194_v24, %v7418_v0  ;;  %v955_v20 = vadd.f32 0.2548296, %v931_v30 }
 0x1c8   : > { %v1217_v16 = vmul.f32 %v1193_v8, %v7419_v40  ;;  %v838_v34 = vmul.f32 %v4358_v1, %v2997_v57  ;;  %v4470_v62 = vmul.f32 %v4035_v7, %v1404_v36  ;;  %v4473_v38 = vmul.f32 %v4035_v7, %v1367_v11 }
 0x1c9   : > { %v1466_v32 = vmul.f32 %v4061_v21, %v1404_v36  ;;  %3392 = vrcp.f32 %v717_v17  ;;  %v4481_v40 = vmul.f32 %v4045_v13, %v1669_v2  ;;  %v2077_v55 = vsel %vm2075_vm14, %v2052_v23, %v2064_v63 }
 0x1ca   : > { %v4485_v29 = vsel %vm1275_vm10, %v1217_v16, 0.0  ;;  %v1124_v57 = vsub.f32 1.0, %v1100_v60  ;;  %v4487_v24 = vadd.f32 %v1467_v31, %v1431_v43  ;;  %v4490_v11 = vmul.f32 %v4045_v13, %v1632_v53 }
 0x1cb   : > { %7420 = vst [vmem:[#allocation55_spill] sm:$0xff] %v4481_v40  ;;  %7421 = vst [vmem:[#allocation56_spill] sm:$0xff] %v4485_v29  ;;  %v2115_v30 = vsel %vm2105_vm3, %v2089_v9, 0.0  ;;  %v526_v26 = vadd.f32 %v3171_v19, %v3976_v41  ;;  %v4496_v0 = vmul.f32 %v7423_v58, %v1669_v2  ;;  %v4498_v36 = vsel %vm1275_vm10, %v1218_v47, 0.0  ;;  %v7429_v2 = vld [vmem:[#allocation46_spill] sm:$0xff] }
 0x1cc   : > { %7422 = vst [vmem:[#allocation74_spill] sm:$0xff] %v4490_v11  ;;  %7425 = vst [vmem:[#allocation75_spill] sm:$0xff] %v4498_v36  ;;  %v979_v63 = vmul.f32 %v4249_v37, %v955_v20  ;;  %v862_v16 = vadd.f32 1.4214138, %v838_v34  ;;  %v4502_v23 = vadd.f32 %v1466_v32, %v4398_v45  ;;  %v4505_v43 = vmul.f32 %v7423_v58, %v1632_v53  ;;  %v7432_v20 = vld [vmem:[#allocation49_spill] sm:$0xff] }
 0x1cd   : > { %7424 = vst [vmem:[#allocation45_spill] sm:$0xff] %v4496_v0  ;;  %v4508_v31 = vmul.f32 %v4050_v15, %v2077_v55  ;;  %v1343_v9 = vrot.slane %v4485_v29, 6  ;;  %v4512_v8 = vmul.f32 %v4050_v15, %v2115_v30  ;;  %v4515_v47 = vmul.f32 %v7429_v2, %v2077_v55  ;;  %v4523_v53 = vld [vmem:[#allocation7 + $0x20] sm:$0x1f]  ;;  %v7433_v34 = vld [vmem:[#allocation33_spill] sm:$0xff] }
 0x1ce   : > { %7426 = vst [vmem:[#allocation76_spill] sm:$0xff] %v4505_v43  ;;  %v4518_v37 = vmul.f32 %v7429_v2, %v2115_v30  ;;  %v1148_v45 = vmul.f32 %v1124_v57, %v4255_v35  ;;  %vm1252_vm11 = vcmp.ge.s32.totalorder %v7432_v20, 0  ;;  %vm1264_vm15 = vcmp.lt.s32.totalorder %v7432_v20, 16 }
 0x1cf   : > { %7427 = vst [vmem:[#allocation77_spill] sm:$0xff] %v4508_v31  ;;  %7428 = vst [vmem:[#allocation78_spill] sm:$0xff] %v4512_v8  ;;  %v1355_v60 = vrot.slane %v4498_v36, 6  ;;  %v1005_v17 = vsub.f32 0.0, %v4434_v54  ;;  %v4529_v19 = vrot.slane %v4523_v53, %v7433_v34  ;;  %v4531_v32 = vmul.f32 0.5, %v526_v26 }
 0x1d0   : > { %7430 = vst [vmem:[#allocation79_spill] sm:$0xff] %v4515_v47  ;;  %7431 = vst [vmem:[#allocation80_spill] sm:$0xff] %v4518_v37  ;;  %v1620_v55 = vrot.slane %v4498_v36, 7  ;;  %v1608_v35 = vrot.slane %v4485_v29, 7  ;;  %v1099_v57 = vmul.f32 %v4429_v22, %v979_v63  ;;  %v886_v30 = vmul.f32 %v4358_v1, %v862_v16  ;;  %v7437_v37 = vld [vmem:[#allocation47_spill] sm:$0xff] }
 0x1d1   : > { %7434 = vst [vmem:[#allocation49_spill] sm:$0xff] %v4529_v19  ;;  %v4539_v8 = vmul.f32 %v4028_v3, %v4498_v36  ;;  %v4543_v31 = vmul.f32 %v4055_v18, %v4498_v36  ;;  %v1380_v34 = vsel %vm1365_vm12, %v1355_v60, %v1343_v9  ;;  %v4547_v11 = vmul.f32 0.70710677, %v526_v26  ;;  %vm1276_vm0 = vmand %vm1252_vm11, %vm1264_vm15 }
 0x1d2   : > { %v4551_v40 = vmul.f32 %v7437_v37, %v4498_v36  ;;  %v1368_v63 = vsel %vm1365_vm12, %v1343_v9, %v1355_v60  ;;  %v1196_v16 = vadd.f32 1.0, %v1148_v45  ;;  %v1029_v26 = vmul.f32 %v1005_v17, %v4434_v54 }
 0x1d3   : > { %7435 = vst [vmem:[#allocation33_spill] sm:$0xff] %v4539_v8  ;;  %7436 = vst [vmem:[#allocation81_spill] sm:$0xff] %v4543_v31  ;;  %v4558_v8 = vmul.f32 %v4028_v3, %v4485_v29  ;;  %v4562_v31 = vmul.f32 %v4055_v18, %v4485_v29  ;;  %v4566_v42 = vadd.s32 5, %v3999_v52  ;;  %v1406_v22 = vsel %vm1392_vm1, %v1380_v34, 0.0  ;;  %v7443_v34 = vld [vmem:[#allocation57_spill] sm:$0xff] }
 0x1d4   : > { %7438 = vst [vmem:[#allocation82_spill] sm:$0xff] %v4551_v40  ;;  %v1645_v9 = vsel %vm1630_vm13, %v1620_v55, %v1608_v35  ;;  %v1123_v45 = vsub.f32 1.0, %v1099_v57  ;;  %v3021_v60 = vadd.f32 -0.28449672, %v886_v30  ;;  %v1469_v40 = vmul.f32 %v4061_v21, %v1368_v63 }
 0x1d5   : > { %7439 = vst [vmem:[#allocation83_spill] sm:$0xff] %v4558_v8  ;;  %7440 = vst [vmem:[#allocation84_spill] sm:$0xff] %v4562_v31  ;;  %v4575_v8 = vmul.f32 %v7437_v37, %v4485_v29  ;;  %v672_v54 = vand.u32 2147483647, %v4547_v11  ;;  %v1503_v43 = vmul.f32 %v7442_v14, %v1368_v63  ;;  %v1220_v10 = vmul.f32 %v1196_v16, %v7443_v34 }
 0x1d6   : > { %v4579_v17 = vpop.eup %3392  ;;  %v1147_v12 = vmul.f32 %v1123_v45, %v4296_v6  ;;  %v934_v57 = vmul.f32 %v4358_v1, %v3021_v60  ;;  %v1468_v30 = vmul.f32 %v4061_v21, %v1406_v22  ;;  %v1671_v46 = vsel %vm1657_vm2, %v1645_v9, 0.0  ;;  %v520_v6 = vpop.f32.mrf.mxu0 }
 0x1d7   : > { %7441 = vst [vmem:[#allocation85_spill] sm:$0xff] %v4575_v8  ;;  %v789_v47 = vmul.f32 1.0614054, %v4579_v17  ;;  %v696_v31 = vmul.f32 0.3275911, %v672_v54  ;;  %v4590_v51 = vmul.f32 %v4035_v7, %v1368_v63  ;;  %v1502_v4 = vmul.f32 %v7442_v14, %v1406_v22 }
 0x1d8   : > { %v1633_v16 = vsel %vm1630_vm13, %v1608_v35, %v1620_v55  ;;  %v1195_v34 = vadd.f32 1.0, %v1147_v12  ;;  %v4596_v45 = vmul.f32 %v4035_v7, %v1406_v22  ;;  %v4599_v60 = vadd.f32 %v1469_v40, %v4473_v38  ;;  %v7445_v12 = vld [vmem:[#allocation58_spill] sm:$0xff] }
 0x1d9   : > { %v958_v63 = vadd.f32 0.2548296, %v934_v57  ;;  %v720_v9 = vadd.f32 1.0, %v696_v31  ;;  %v4606_v27 = vadd.f32 %v1503_v43, %v4487_v24  ;;  %v4609_v55 = vmul.f32 %v4045_v13, %v1671_v46 }
 0x1da   : > { %v1219_v35 = vmul.f32 %v1195_v34, %v7445_v12  ;;  %v2996_v22 = vadd.f32 -1.4531521, %v789_v47  ;;  %v4613_v8 = vadd.f32 %v1468_v30, %v4470_v62  ;;  %v4616_v38 = vmul.f32 %v4045_v13, %v1633_v16  ;;  %v3174_v34 = vpop.f32.mrf.mxu0 }
 0x1db   : > { %7444 = vst [vmem:[#allocation48_spill] sm:$0xff] %v4609_v55  ;;  %3394 = vrcp.f32 %v720_v9  ;;  %v521_v40 = vadd.f32 %v3976_v41, %v520_v6  ;;  %v4620_v31 = vadd.f32 %v1502_v4, %v4502_v23  ;;  %v4622_v24 = vsel %vm1276_vm0, %v1220_v10, 0.0  ;;  %v7451_v6 = vld [vmem:[#allocation50_spill] sm:$0xff] }
 0x1dc   : > { %7446 = vst [vmem:[#allocation57_spill] sm:$0xff] %v4616_v38  ;;  %7447 = vst [vmem:[#allocation58_spill] sm:$0xff] %v4622_v24  ;;  %v4624_v43 = vsel %vm1276_vm0, %v1219_v35, 0.0  ;;  %v1008_v20 = vsub.f32 0.0, %v672_v54  ;;  %v4627_v57 = vmul.f32 %v7423_v58, %v1671_v46  ;;  %v4630_v62 = vmul.f32 %v7423_v58, %v1633_v16 }
 0x1dd   : > { %7448 = vst [vmem:[#allocation86_spill] sm:$0xff] %v4624_v43  ;;  %v1344_v47 = vrot.slane %v4624_v43, 6  ;;  %v982_v30 = vmul.f32 %v4358_v1, %v958_v63  ;;  %v4635_v9 = vmul.f32 %v7451_v6, %v1671_v46  ;;  %v4638_v4 = vmul.f32 %v7451_v6, %v1633_v16 }
 0x1de   : > { %7449 = vst [vmem:[#allocation87_spill] sm:$0xff] %v4627_v57  ;;  %7450 = vst [vmem:[#allocation88_spill] sm:$0xff] %v4630_v62  ;;  %v837_v10 = vmul.f32 %v4579_v17, %v2996_v22  ;;  %v1061_v23 = vmul.f32 1.442695, %v1029_v26  ;;  %v7454_v12 = vrot.slane %v4485_v29, 1  ;;  %v7455_v35 = vrot.slane %v4498_v36, 1 }
 0x1df   : > { %7452 = vst [vmem:[#allocation50_spill] sm:$0xff] %v4635_v9  ;;  %7453 = vst [vmem:[#allocation89_spill] sm:$0xff] %v4638_v4  ;;  %v1356_v1 = vrot.slane %v4622_v24, 6  ;;  %v1621_v63 = vrot.slane %v4622_v24, 7  ;;  %v4651_v46 = vmul.f32 0.70710677, %v521_v40  ;;  %v4655_v16 = vmul.f32 %v4028_v3, %v4622_v24  ;;  %v530_v9 = vpop.f32.mrf.mxu0 }
 0x1e0   : > { %v4647_v38 = vsel %vm2075_vm14, %v7455_v35, %v7454_v12  ;;  %vm624_vm5 = vcmp.ge.f32.partialorder %v4547_v11, 0.0  ;;  %v1032_v26 = vmul.f32 %v1008_v20, %v672_v54  ;;  %v4659_v22 = vadd.f32 %v3174_v34, %v3976_v41 }
 0x1e1   : > { %7456 = vst [vmem:[#allocation90_spill] sm:$0xff] %v4647_v38  ;;  %7457 = vst [vmem:[#allocation91_spill] sm:$0xff] %v4655_v16  ;;  %v4663_v12 = vmul.f32 %v4055_v18, %v4622_v24  ;;  %v4667_v35 = vmul.f32 %v7437_v37, %v4622_v24  ;;  %v1381_v55 = vsel %vm1365_vm12, %v1356_v1, %v1344_v47  ;;  %v7460_v16 = vld [vmem:[#allocation51_spill] sm:$0xff]  ;;  %v1609_v41 = vrot.slane %v4624_v43, 7 }
 0x1e2   : > { %v1102_v62 = vmul.f32 %v4455_v39, %v982_v30  ;;  %v4674_v11 = vmul.f32 %v7460_v16, %v4622_v24  ;;  %v861_v54 = vadd.f32 1.4214138, %v837_v10  ;;  %3396 = vpow2.f32 %v1061_v23 }
 0x1e3   : > { %7458 = vst [vmem:[#allocation92_spill] sm:$0xff] %v4663_v12  ;;  %7459 = vst [vmem:[#allocation93_spill] sm:$0xff] %v4667_v35  ;;  %v4678_v20 = vsel %vm624_vm5, 1.0, %v7394_v50  ;;  %v4681_v34 = vand.u32 2147483647, %v4651_v46  ;;  %v4683_v12 = vmul.f32 0.5, %v521_v40  ;;  %v1369_v39 = vsel %vm1365_vm12, %v1344_v47, %v1356_v1 }
 0x1e4   : > { %7461 = vst [vmem:[#allocation51_spill] sm:$0xff] %v4674_v11  ;;  %v4686_v35 = vadd.s32 6, %v3999_v52  ;;  %v1408_v30 = vsel %vm1392_vm1, %v1381_v55, 0.0  ;;  %v4692_v57 = vmul.f32 1.442695, %v1032_v26  ;;  %v4699_v23 = vmul.f32 %v4028_v3, %v4624_v43 }
 0x1e5   : > { %v4695_v10 = vmul.f32 0.70710677, %v4659_v22  ;;  %v4703_v40 = vmul.f32 %v4055_v18, %v4624_v43  ;;  %v4707_v11 = vmul.f32 %v7437_v37, %v4624_v43  ;;  %v1126_v47 = vsub.f32 1.0, %v1102_v62  ;;  %v7467_v62 = vld [vmem:[#allocation54_spill] sm:$0xff] }
 0x1e6   : > { %7462 = vst [vmem:[#allocation94_spill] sm:$0xff] %v4686_v35  ;;  %7463 = vst [vmem:[#allocation95_spill] sm:$0xff] %v4699_v23  ;;  %v4711_v55 = vsel %vm1630_vm13, %v1609_v41, %v1621_v63  ;;  %v1646_v1 = vsel %vm1630_vm13, %v1621_v63, %v1609_v41  ;;  %v4717_v26 = vmul.f32 %v7460_v16, %v4624_v43  ;;  %vm1253_vm7 = vcmp.ge.s32.totalorder %v7467_v62, 0  ;;  %v7468_v41 = vld [vmem:[#allocation52_spill] sm:$0xff] }
 0x1e7   : > { %7464 = vst [vmem:[#allocation96_spill] sm:$0xff] %v4703_v40  ;;  %7465 = vst [vmem:[#allocation97_spill] sm:$0xff] %v4707_v11  ;;  %v885_v23 = vmul.f32 %v4579_v17, %v861_v54  ;;  %v1470_v40 = vmul.f32 %v4061_v21, %v1408_v30  ;;  %v1471_v38 = vmul.f32 %v4061_v21, %v1369_v39  ;;  %vm1265_vm8 = vcmp.lt.s32.totalorder %v7467_v62, 16 }
 0x1e8   : > { %7466 = vst [vmem:[#allocation98_spill] sm:$0xff] %v4717_v26  ;;  %v1505_v11 = vmul.f32 %v7442_v14, %v1369_v39  ;;  %v695_v4 = vmul.f32 0.3275911, %v4681_v34  ;;  %v4726_v33 = vpop.eup %3394  ;;  %v1504_v63 = vmul.f32 %v7442_v14, %v1408_v30  ;;  %v1538_v26 = vmul.f32 %v7468_v41, %v1408_v30  ;;  %vm4811_vm10 = vmand %vm1253_vm7, %vm1265_vm8 }
 0x1e9   : > { %v3020_v48 = vadd.f32 -0.28449672, %v885_v23  ;;  %v674_v54 = vand.u32 2147483647, %v4695_v10  ;;  %v1539_v29 = vmul.f32 %v7468_v41, %v1369_v39  ;;  %v1150_v36 = vmul.f32 %v1126_v47, %v4309_v28 }
 0x1ea   : > { %v792_v24 = vmul.f32 1.0614054, %v4726_v33  ;;  %v719_v0 = vadd.f32 1.0, %v695_v4  ;;  %v4735_v43 = vmul.f32 %v4035_v7, %v1408_v30  ;;  %v4738_v49 = vmul.f32 %v4035_v7, %v1369_v39 }
 0x1eb   : > { %v1673_v2 = vsel %vm1657_vm2, %v1646_v1, 0.0  ;;  %v933_v23 = vmul.f32 %v4579_v17, %v3020_v48  ;;  %v4744_v15 = vadd.f32 %v1470_v40, %v4596_v45  ;;  %v4747_v35 = vadd.f32 %v1471_v38, %v4590_v51  ;;  %v3177_v1 = vpop.f32.mrf.mxu0 }
 0x1ec   : > { %v4750_v28 = vadd.f32 %v1505_v11, %v4599_v60  ;;  %v2999_v4 = vadd.f32 -1.4531521, %v792_v24  ;;  %vm623_vm9 = vcmp.ge.f32.partialorder %v4651_v46, 0.0  ;;  %v4754_v39 = vadd.f32 %v1504_v63, %v4613_v8 }
 0x1ed   : > { %v957_v30 = vadd.f32 0.2548296, %v933_v23  ;;  %3398 = vrcp.f32 %v719_v0  ;;  %v698_v47 = vmul.f32 0.3275911, %v674_v54  ;;  %v4757_v48 = vadd.f32 %v1538_v26, %v4620_v31 }
 0x1ee   : > { %v4760_v45 = vadd.f32 %v1539_v29, %v4606_v27  ;;  %v4763_v51 = vmul.f32 %v4045_v13, %v1673_v2  ;;  %v1198_v60 = vadd.f32 1.0, %v1150_v36  ;;  %v4767_v38 = vmul.f32 %v4045_v13, %v4711_v55  ;;  %v4784_v36 = vld [vmem:[%s7191_s2] ss:$0 sm:$0xff] }
 0x1ef   : > { %7469 = vst [vmem:[#allocation54_spill] sm:$0xff] %v4757_v48  ;;  %v4770_v8 = vmul.f32 %v7423_v58, %v1673_v2  ;;  %v981_v0 = vmul.f32 %v4579_v17, %v957_v30  ;;  %v840_v24 = vmul.f32 %v4726_v33, %v2999_v4  ;;  %v3397_v31 = vpop.eup %3396  ;;  %v4776_v27 = vmul.f32 %v7423_v58, %v4711_v55 }
 0x1f0   : > { %7470 = vst [vmem:[#allocation99_spill] sm:$0xff] %v4763_v51  ;;  %7471 = vst [vmem:[#allocation100_spill] sm:$0xff] %v4767_v38  ;;  %v4779_v29 = vmul.f32 %v7451_v6, %v1673_v2  ;;  %v4787_v11 = vadd.f32 %v4784_v36, %v530_v9  ;;  %v4790_v17 = vadd.f32 %v4784_v36, %v3177_v1  ;;  %v1007_v63 = vsub.f32 0.0, %v4681_v34  ;;  %v7476_v1 = vld [vmem:[#allocation53_spill] sm:$0xff] }
 0x1f1   : > { %7472 = vst [vmem:[#allocation101_spill] sm:$0xff] %v4770_v8  ;;  %7473 = vst [vmem:[#allocation102_spill] sm:$0xff] %v4776_v27  ;;  %v1101_v40 = vmul.f32 %v3397_v31, %v981_v0  ;;  %v864_v26 = vadd.f32 1.4214138, %v840_v24  ;;  %v722_v23 = vadd.f32 1.0, %v698_v47  ;;  %v1222_v4 = vmul.f32 %v1198_v60, %v4312_v56 }
 0x1f2   : > { %7474 = vst [vmem:[#allocation103_spill] sm:$0xff] %v4779_v29  ;;  %v1010_v30 = vsub.f32 0.0, %v674_v54  ;;  %v4795_v38 = vmul.f32 0.70710677, %v4787_v11  ;;  %v4798_v51 = vmul.f32 0.70710677, %v4790_v17  ;;  %v4802_v9 = vmul.f32 %v7451_v6, %v4711_v55 }
 0x1f3   : > { %v4805_v27 = vmul.f32 %v7476_v1, %v1673_v2  ;;  %v1125_v47 = vsub.f32 1.0, %v1101_v40  ;;  %v888_v60 = vmul.f32 %v4726_v33, %v864_v26  ;;  %3400 = vpow2.f32 %v4692_v57 }
 0x1f4   : > { %7475 = vst [vmem:[#allocation104_spill] sm:$0xff] %v4802_v9  ;;  %vm626_vm11 = vcmp.ge.f32.partialorder %v4695_v10, 0.0  ;;  %v673_v0 = vand.u32 2147483647, %v4795_v38  ;;  %v676_v2 = vand.u32 2147483647, %v4798_v51  ;;  %v1031_v62 = vmul.f32 %v1007_v63, %v4681_v34 }
 0x1f5   : > { %7477 = vst [vmem:[#allocation105_spill] sm:$0xff] %v4805_v27  ;;  %v1149_v24 = vmul.f32 %v1125_v47, %v4344_v25  ;;  %v3023_v31 = vadd.f32 -0.28449672, %v888_v60  ;;  %3402 = vrcp.f32 %v722_v23  ;;  %v4824_v8 = vsel %vm4811_vm10, %v1222_v4, 0.0 }
 0x1f6   : > { %7480 = vst [vmem:[#allocation106_spill] sm:$0xff] %v4824_v8  ;;  %v1034_v40 = vmul.f32 %v1010_v30, %v674_v54  ;;  %v697_v26 = vmul.f32 0.3275911, %v673_v0  ;;  %v700_v9 = vmul.f32 0.3275911, %v676_v2  ;;  %v4828_v57 = vmul.f32 %v7476_v1, %v4711_v55 }
 0x1f7   : > { %v1197_v10 = vadd.f32 1.0, %v1149_v24  ;;  %v936_v29 = vmul.f32 %v4726_v33, %v3023_v31  ;;  %v4834_v25 = vsel %vm623_vm9, 1.0, %v7394_v50  ;;  %v4837_v34 = vsel %vm626_vm11, 1.0, %v7394_v50 }
 0x1f8   : > { %7481 = vst [vmem:[#allocation107_spill] sm:$0xff] %v4828_v57  ;;  %v4840_v63 = vmul.f32 0.5, %v4659_v22  ;;  %v721_v54 = vadd.f32 1.0, %v697_v26  ;;  %v724_v23 = vadd.f32 1.0, %v700_v9  ;;  %v1357_v4 = vrot.slane %v4824_v8, 6  ;;  %v540_v57 = vpop.f32.mrf.mxu0 }
 0x1f9   : > { %v1622_v55 = vrot.slane %v4824_v8, 7  ;;  %v1221_v30 = vmul.f32 %v1197_v10, %v4314_v59  ;;  %v1065_v47 = vmul.f32 1.442695, %v1031_v62  ;;  %v4849_v46 = vmul.f32 %v4028_v3, %v4824_v8 }
 0x1fa   : > { %7482 = vst [vmem:[#allocation108_spill] sm:$0xff] %v4840_v63  ;;  %v4845_v60 = vpop.eup %3398  ;;  %v1071_v24 = vmul.f32 1.442695, %v1034_v40  ;;  %3404 = vrcp.f32 %v721_v54  ;;  %v1009_v31 = vsub.f32 0.0, %v673_v0  ;;  %v960_v9 = vadd.f32 0.2548296, %v936_v29 }
 0x1fb   : > { %7483 = vst [vmem:[#allocation109_spill] sm:$0xff] %v4849_v46  ;;  %v4853_v22 = vsel %vm4811_vm10, %v1221_v30, 0.0  ;;  %3406 = vrcp.f32 %v724_v23  ;;  %v1012_v26 = vsub.f32 0.0, %v676_v2  ;;  %v4857_v59 = vmul.f32 %v4055_v18, %v4824_v8 }
 0x1fc   : > { %7484 = vst [vmem:[#allocation110_spill] sm:$0xff] %v4853_v22  ;;  %v4861_v62 = vmul.f32 %v7437_v37, %v4824_v8  ;;  %v4865_v40 = vmul.f32 %v7460_v16, %v4824_v8  ;;  %v1345_v56 = vrot.slane %v4853_v22, 6  ;;  %v791_v10 = vmul.f32 1.0614054, %v4845_v60 }
 0x1fd   : > { %7485 = vst [vmem:[#allocation111_spill] sm:$0xff] %v4857_v59  ;;  %3408 = vpow2.f32 %v1065_v47  ;;  %vm625_vm15 = vcmp.ge.f32.partialorder %v4795_v38, 0.0  ;;  %v4871_v29 = vadd.s32 7, %v3999_v52  ;;  %v1033_v23 = vmul.f32 %v1009_v31, %v673_v0 }
 0x1fe   : > { %7486 = vst [vmem:[#allocation112_spill] sm:$0xff] %v4861_v62  ;;  %7487 = vst [vmem:[#allocation113_spill] sm:$0xff] %v4865_v40  ;;  %v1382_v54 = vsel %vm1365_vm12, %v1357_v4, %v1345_v56  ;;  %vm628_vm0 = vcmp.ge.f32.partialorder %v4798_v51, 0.0  ;;  %v541_v30 = vadd.f32 %v4784_v36, %v540_v57  ;;  %v984_v59 = vmul.f32 %v4726_v33, %v960_v9 }
 0x1ff   : > { %7488 = vst [vmem:[#allocation114_spill] sm:$0xff] %v4871_v29  ;;  %v1410_v46 = vsel %vm1392_vm1, %v1382_v54, 0.0  ;;  %3410 = vpow2.f32 %v1071_v24  ;;  %v1036_v47 = vmul.f32 %v1012_v26, %v676_v2  ;;  %v1610_v40 = vrot.slane %v4853_v22, 7 }
 0x200   : > { %v1472_v62 = vmul.f32 %v4061_v21, %v1410_v46  ;;  %v4883_v27 = vmul.f32 0.5, %v4787_v11  ;;  %v4886_v0 = vmul.f32 0.5, %v4790_v17  ;;  %v3401_v51 = vpop.eup %3400  ;;  %v1370_v57 = vsel %vm1365_vm12, %v1345_v56, %v1357_v4 }
 0x201   : > { %v2998_v31 = vadd.f32 -1.4531521, %v791_v10  ;;  %v4893_v33 = vsel %vm625_vm15, 1.0, %v7394_v50  ;;  %v4896_v2 = vsel %vm628_vm0, 1.0, %v7394_v50  ;;  %v1069_v17 = vmul.f32 1.442695, %v1033_v23 }
 0x202   : > { %7489 = vst [vmem:[#allocation115_spill] sm:$0xff] %v4883_v27  ;;  %7490 = vst [vmem:[#allocation116_spill] sm:$0xff] %v4886_v0  ;;  %v4898_v24 = vpop.eup %3402  ;;  %v4901_v11 = vadd.f32 %v1472_v62, %v4735_v43  ;;  %v4903_v9 = vmul.f32 0.70710677, %v541_v30  ;;  %v4905_v26 = vmul.f32 0.5, %v541_v30  ;;  %v4909_v4 = vmul.f32 %v4028_v3, %v4853_v22 }
 0x203   : > { %7491 = vst [vmem:[#allocation117_spill] sm:$0xff] %v4896_v2  ;;  %v4913_v38 = vmul.f32 %v4055_v18, %v4853_v22  ;;  %v1104_v56 = vmul.f32 %v3401_v51, %v984_v59  ;;  %v4915_v10 = vmul.f32 1.442695, %v1036_v47  ;;  %v1473_v54 = vmul.f32 %v4061_v21, %v1370_v57 }
 0x204   : > { %7492 = vst [vmem:[#allocation118_spill] sm:$0xff] %v4901_v11  ;;  %7493 = vst [vmem:[#allocation119_spill] sm:$0xff] %v4905_v26  ;;  %v4920_v43 = vsel %vm1630_vm13, %v1610_v40, %v1622_v55  ;;  %v4924_v62 = vmul.f32 %v7437_v37, %v4853_v22  ;;  %v4928_v23 = vmul.f32 %v7460_v16, %v4853_v22  ;;  %v794_v51 = vmul.f32 1.0614054, %v4898_v24 }
 0x205   : > { %7494 = vst [vmem:[#allocation120_spill] sm:$0xff] %v4909_v4  ;;  %7495 = vst [vmem:[#allocation121_spill] sm:$0xff] %v4913_v38  ;;  %v4931_v30 = vmul.f32 %v4035_v7, %v1370_v57  ;;  %v1647_v59 = vsel %vm1630_vm13, %v1622_v55, %v1610_v40  ;;  %v839_v47 = vmul.f32 %v4845_v60, %v2998_v31  ;;  %v4943_v8 = vand.u32 2147483647, %v4903_v9 }
 0x206   : > { %7496 = vst [vmem:[#allocation122_spill] sm:$0xff] %v4920_v43  ;;  %7497 = vst [vmem:[#allocation123_spill] sm:$0xff] %v4924_v62  ;;  %v4938_v4 = vmul.f32 %v4035_v7, %v1410_v46  ;;  %v1506_v38 = vmul.f32 %v7442_v14, %v1410_v46  ;;  %v1507_v62 = vmul.f32 %v7442_v14, %v1370_v57  ;;  %v1128_v55 = vsub.f32 1.0, %v1104_v56 }
 0x207   : > { %7498 = vst [vmem:[#allocation124_spill] sm:$0xff] %v4928_v23  ;;  %7499 = vst [vmem:[#allocation125_spill] sm:$0xff] %v4931_v30  ;;  %v3180_v23 = vpop.f32.mrf.mxu0  ;;  %v4945_v22 = vpop.eup %3404  ;;  %v1540_v48 = vmul.f32 %v7468_v41, %v1410_v46  ;;  %v863_v40 = vadd.f32 1.4214138, %v839_v47  ;;  %v3001_v31 = vadd.f32 -1.4531521, %v794_v51  ;;  %v4951_v7 = vadd.f32 %v1473_v54, %v4738_v49 }
 0x208   : > { %7500 = vst [vmem:[#allocation126_spill] sm:$0xff] %v4938_v4  ;;  %v4948_v1 = vpop.eup %3406  ;;  %v1541_v26 = vmul.f32 %v7468_v41, %v1370_v57  ;;  %v793_v0 = vmul.f32 1.0614054, %v4945_v22  ;;  %v699_v30 = vmul.f32 0.3275911, %v4943_v8  ;;  %vm1254_vm5 = vcmp.ge.s32.totalorder %v4566_v42, 0 }
 0x209   : > { %7501 = vst [vmem:[#allocation127_spill] sm:$0xff] %v4951_v7  ;;  %vm1266_vm7 = vcmp.lt.s32.totalorder %v4566_v42, 16  ;;  %v887_v4 = vmul.f32 %v4845_v60, %v863_v40  ;;  %v842_v56 = vmul.f32 %v4898_v24, %v3001_v31  ;;  %v796_v47 = vmul.f32 1.0614054, %v4948_v1  ;;  %v550_v31 = vpop.f32.mrf.mxu0 }
 0x20a   : > { %v4962_v51 = vadd.f32 %v4784_v36, %v3180_v23  ;;  %v3409_v49 = vpop.eup %3408  ;;  %v4965_v54 = vadd.f32 %v1507_v62, %v4747_v35  ;;  %v4968_v29 = vmul.f32 %v4529_v19, %v1410_v46  ;;  %v3000_v2 = vadd.f32 -1.4531521, %v793_v0  ;;  %vm5026_vm9 = vmand %vm1254_vm5, %vm1266_vm7 }
 0x20b   : > { %v723_v7 = vadd.f32 1.0, %v699_v30  ;;  %v1152_v11 = vmul.f32 %v1128_v55, %v4678_v20  ;;  %v3022_v27 = vadd.f32 -0.28449672, %v887_v4  ;;  %v866_v40 = vadd.f32 1.4214138, %v842_v56 }
 0x20c   : > { %7502 = vst [vmem:[#allocation128_spill] sm:$0xff] %v4968_v29  ;;  %v3003_v21 = vadd.f32 -1.4531521, %v796_v47  ;;  %vm627_vm8 = vcmp.ge.f32.partialorder %v4903_v9, 0.0  ;;  %v3411_v63 = vpop.eup %3410  ;;  %v4973_v23 = vadd.f32 %v1506_v38, %v4744_v15  ;;  %v1575_v35 = vmul.f32 %v4529_v19, %v1370_v57 }
 0x20d   : > { %v841_v62 = vmul.f32 %v4945_v22, %v3000_v2  ;;  %3412 = vrcp.f32 %v723_v7  ;;  %v4978_v46 = vadd.f32 %v1540_v48, %v4754_v39  ;;  %v4981_v20 = vadd.f32 %v1541_v26, %v4750_v28 }
 0x20e   : > { %3414 = vpow2.f32 %v1069_v17  ;;  %v4984_v0 = vmul.f32 0.70710677, %v4962_v51  ;;  %v4988_v4 = vsel %vm1657_vm2, %v1647_v59, 0.0  ;;  %v935_v15 = vmul.f32 %v4845_v60, %v3022_v27 }
 0x20f   : > { %7503 = vst [vmem:[#allocation129_spill] sm:$0xff] %v4988_v4  ;;  %v890_v57 = vmul.f32 %v4898_v24, %v866_v40  ;;  %v4993_v7 = vadd.f32 %v4784_v36, %v550_v31  ;;  %v4997_v39 = vmul.f32 %v7423_v58, %v4920_v43  ;;  %v1200_v28 = vadd.f32 1.0, %v1152_v11 }
 0x210   : > { %v865_v48 = vadd.f32 1.4214138, %v841_v62  ;;  %v844_v2 = vmul.f32 %v4948_v1, %v3003_v21  ;;  %v5001_v17 = vadd.f32 %v1575_v35, %v4760_v45  ;;  %v5005_v26 = vmul.f32 %v7451_v6, %v4920_v43 }
 0x211   : > { %7504 = vst [vmem:[#allocation130_spill] sm:$0xff] %v4997_v39  ;;  %v959_v27 = vadd.f32 0.2548296, %v935_v15  ;;  %v3025_v38 = vadd.f32 -0.28449672, %v890_v57  ;;  %v1011_v55 = vsub.f32 0.0, %v4943_v8  ;;  %v5012_v11 = vmul.f32 %v7423_v58, %v4988_v4 }
 0x212   : > { %7505 = vst [vmem:[#allocation131_spill] sm:$0xff] %v5001_v17  ;;  %7506 = vst [vmem:[#allocation132_spill] sm:$0xff] %v5005_v26  ;;  %v889_v30 = vmul.f32 %v4945_v22, %v865_v48  ;;  %v868_v59 = vadd.f32 1.4214138, %v844_v2  ;;  %v678_v56 = vand.u32 2147483647, %v4984_v0  ;;  %v1224_v40 = vmul.f32 %v1200_v28, %v4531_v32 }
 0x213   : > { %7507 = vst [vmem:[#allocation133_spill] sm:$0xff] %v5012_v11  ;;  %v983_v21 = vmul.f32 %v4845_v60, %v959_v27  ;;  %v938_v45 = vmul.f32 %v4898_v24, %v3025_v38  ;;  %v5017_v47 = vmul.f32 0.70710677, %v4993_v7  ;;  %3416 = vpow2.f32 %v4915_v10  ;;  %v7512_v39 = vld [vmem:[#allocation32_spill] sm:$0xff] }
 0x214   : > { %v3024_v31 = vadd.f32 -0.28449672, %v889_v30  ;;  %v892_v35 = vmul.f32 %v4948_v1, %v868_v59  ;;  %v702_v57 = vmul.f32 0.3275911, %v678_v56  ;;  %v1035_v2 = vmul.f32 %v1011_v55, %v4943_v8 }
 0x215   : > { %v1103_v60 = vmul.f32 %v3409_v49, %v983_v21  ;;  %v962_v15 = vadd.f32 0.2548296, %v938_v45  ;;  %v677_v48 = vand.u32 2147483647, %v5017_v47  ;;  %v1014_v27 = vsub.f32 0.0, %v678_v56 }
 0x216   : > { %v937_v32 = vmul.f32 %v4945_v22, %v3024_v31  ;;  %v3027_v28 = vadd.f32 -0.28449672, %v892_v35  ;;  %v5035_v10 = vmul.f32 %v7451_v6, %v4988_v4  ;;  %v5041_v49 = vsel %vm627_vm8, 1.0, %v7394_v50 }
 0x217   : > { %v1127_v42 = vsub.f32 1.0, %v1103_v60  ;;  %v986_v38 = vmul.f32 %v4898_v24, %v962_v15  ;;  %v5045_v30 = vsel %vm5026_vm9, %v1224_v40, 0.0  ;;  %v5049_v55 = vadd.s32 8, %v3999_v52 }
 0x218   : > { %7510 = vst [vmem:[#allocation134_spill] sm:$0xff] %v5035_v10  ;;  %7511 = vst [vmem:[#allocation135_spill] sm:$0xff] %v5045_v30  ;;  %v961_v59 = vadd.f32 0.2548296, %v937_v32  ;;  %v940_v8 = vmul.f32 %v4948_v1, %v3027_v28  ;;  %v726_v31 = vadd.f32 1.0, %v702_v57  ;;  %v1038_v15 = vmul.f32 %v1014_v27, %v678_v56 }
 0x219   : > { %v1151_v21 = vmul.f32 %v1127_v42, %v4834_v25  ;;  %v1106_v45 = vmul.f32 %v3411_v63, %v986_v38  ;;  %v701_v24 = vmul.f32 0.3275911, %v677_v48  ;;  %v1073_v60 = vmul.f32 1.442695, %v1035_v2  ;;  %v7516_v42 = vld [vmem:[#allocation94_spill] sm:$0xff] }
 0x21a   : > { %v5052_v35 = vpop.eup %3412  ;;  %v985_v9 = vmul.f32 %v4945_v22, %v961_v59  ;;  %v5057_v40 = vrot.slane %v4523_v53, %v7512_v39  ;;  %v964_v26 = vadd.f32 0.2548296, %v940_v8  ;;  %v1358_v25 = vrot.slane %v5045_v30, 6 }
 0x21b   : > { %v3415_v32 = vpop.eup %3414  ;;  %v1199_v28 = vadd.f32 1.0, %v1151_v21  ;;  %v1130_v11 = vsub.f32 1.0, %v1106_v45  ;;  %v795_v10 = vmul.f32 1.0614054, %v5052_v35  ;;  %v1623_v63 = vrot.slane %v5045_v30, 7 }
 0x21c   : > { %7513 = vst [vmem:[#allocation32_spill] sm:$0xff] %v5057_v40  ;;  %v5064_v57 = vmul.f32 %v4028_v3, %v5045_v30  ;;  %v1105_v22 = vmul.f32 %v3415_v32, %v985_v9  ;;  %3418 = vrcp.f32 %v726_v31  ;;  %v725_v39 = vadd.f32 1.0, %v701_v24 }
 0x21d   : > { %v1223_v56 = vmul.f32 %v1199_v28, %v4683_v12  ;;  %v1013_v2 = vsub.f32 0.0, %v677_v48  ;;  %v5069_v27 = vmul.f32 %v4055_v18, %v5045_v30  ;;  %vm1255_vm10 = vcmp.ge.s32.totalorder %v7516_v42, 0 }
 0x21e   : > { %7514 = vst [vmem:[#allocation136_spill] sm:$0xff] %v5064_v57  ;;  %vm1267_vm11 = vcmp.lt.s32.totalorder %v7516_v42, 16  ;;  %vm630_vm15 = vcmp.ge.f32.partialorder %v4984_v0, 0.0  ;;  %v1079_v38 = vmul.f32 1.442695, %v1038_v15  ;;  %vm629_vm0 = vcmp.ge.f32.partialorder %v5017_v47, 0.0 }
 0x21f   : > { %7515 = vst [vmem:[#allocation137_spill] sm:$0xff] %v5069_v27  ;;  %v5077_v59 = vsel %vm5026_vm9, %v1223_v56, 0.0  ;;  %v1154_v12 = vmul.f32 %v1130_v11, %v4837_v34  ;;  %v988_v8 = vmul.f32 %v4948_v1, %v964_v26  ;;  %v3002_v21 = vadd.f32 -1.4531521, %v795_v10  ;;  %vm1279_vm5 = vmand %vm1255_vm10, %vm1267_vm11 }
 0x220   : > { %7517 = vst [vmem:[#allocation94_spill] sm:$0xff] %v5077_v59  ;;  %v5083_v45 = vmul.f32 %v7437_v37, %v5045_v30  ;;  %v1346_v31 = vrot.slane %v5077_v59, 6  ;;  %v1129_v24 = vsub.f32 1.0, %v1105_v22  ;;  %3420 = vpow2.f32 %v1073_v60  ;;  %v3417_v0 = vpop.eup %3416 }
 0x221   : > { %v5088_v9 = vmul.f32 %v7460_v16, %v5045_v30  ;;  %v5091_v62 = vsel %vm630_vm15, 1.0, %v7394_v50  ;;  %3422 = vrcp.f32 %v725_v39  ;;  %v1037_v34 = vmul.f32 %v1013_v2, %v677_v48  ;;  %v3183_v48 = vpop.f32.mrf.mxu0 }
 0x222   : > { %7518 = vst [vmem:[#allocation138_spill] sm:$0xff] %v5083_v45  ;;  %v1383_v1 = vsel %vm1365_vm12, %v1358_v25, %v1346_v31  ;;  %3424 = vpow2.f32 %v1079_v38  ;;  %v5096_v26 = vmul.f32 0.5, %v4962_v51  ;;  %v5101_v11 = vsel %vm629_vm0, 1.0, %v7394_v50 }
 0x223   : > { %7519 = vst [vmem:[#allocation139_spill] sm:$0xff] %v5088_v9  ;;  %v1202_v10 = vadd.f32 1.0, %v1154_v12  ;;  %v1108_v60 = vmul.f32 %v3417_v0, %v988_v8  ;;  %v843_v15 = vmul.f32 %v5052_v35, %v3002_v21  ;;  %v5105_v32 = vmul.f32 0.5, %v4993_v7 }
 0x224   : > { %v5109_v28 = vsel %vm1365_vm12, %v1346_v31, %v1358_v25  ;;  %v5113_v51 = vsel %vm1392_vm1, %v1383_v1, 0.0  ;;  %v1611_v47 = vrot.slane %v5077_v59, 7  ;;  %v1153_v22 = vmul.f32 %v1129_v24, %v4893_v33  ;;  %v7522_v25 = vld [vmem:[#allocation34_spill] sm:$0xff]  ;;  %v7527_v24 = vld [vmem:[#allocation108_spill] sm:$0xff] }
 0x225   : > { %v5117_v56 = vmul.f32 1.442695, %v1037_v34  ;;  %v5121_v39 = vmul.f32 %v4045_v13, %v4988_v4  ;;  %v5125_v7 = vmul.f32 %v4045_v13, %v4920_v43  ;;  %v5129_v2 = vrot.slane %v4523_v53, %v7522_v25  ;;  %v7537_v4 = vld [vmem:[#allocation117_spill] sm:$0xff] }
 0x226   : > { %v5133_v38 = vmul.f32 %v4028_v3, %v5077_v59  ;;  %v5137_v33 = vmul.f32 %v4055_v18, %v5077_v59  ;;  %v5141_v12 = vmul.f32 %v7437_v37, %v5077_v59  ;;  %v5144_v8 = vadd.f32 %v4784_v36, %v3183_v48 }
 0x227   : > { %7520 = vst [vmem:[#allocation140_spill] sm:$0xff] %v5121_v39  ;;  %7521 = vst [vmem:[#allocation141_spill] sm:$0xff] %v5125_v7  ;;  %v1508_v21 = vmul.f32 %v7442_v14, %v5113_v51  ;;  %v1509_v53 = vmul.f32 %v7442_v14, %v5109_v28  ;;  %v1543_v31 = vmul.f32 %v7468_v41, %v5109_v28  ;;  %v1201_v1 = vadd.f32 1.0, %v1153_v22  ;;  %v2629_v7 = vld [vmem:[#allocation9 + $0x48] sm:$0xff] }
 0x228   : > { %7523 = vst [vmem:[#allocation34_spill] sm:$0xff] %v5129_v2  ;;  %7524 = vst [vmem:[#allocation142_spill] sm:$0xff] %v5133_v38  ;;  %v1226_v0 = vmul.f32 %v1202_v10, %v7527_v24  ;;  %v1648_v34 = vsel %vm1630_vm13, %v1623_v63, %v1611_v47  ;;  %v1132_v25 = vsub.f32 1.0, %v1108_v60  ;;  %v867_v57 = vadd.f32 1.4214138, %v843_v15  ;;  %v7530_v60 = vld [vmem:[#allocation44_spill] sm:$0xff] }
 0x229   : > { %7525 = vst [vmem:[#allocation143_spill] sm:$0xff] %v5137_v33  ;;  %7526 = vst [vmem:[#allocation144_spill] sm:$0xff] %v5141_v12  ;;  %v1542_v48 = vmul.f32 %v7468_v41, %v5113_v51  ;;  %v1576_v27 = vmul.f32 %v4529_v19, %v5113_v51  ;;  %v5161_v33 = vsel %vm1630_vm13, %v1611_v47, %v1623_v63  ;;  %v5171_v10 = vpop.eup %3418  ;;  %v7531_v47 = vld [vmem:[#allocation115_spill] sm:$0xff]  ;;  %v7532_v12 = vld [vmem:[#allocation118_spill] sm:$0xff]  ;;  %3426 = vpow2.f32 %v5117_v56 }
 0x22a   : > { %7528 = vst [vmem:[#allocation108_spill] sm:$0xff] %v5161_v33  ;;  %v5165_v45 = vmul.f32 %v7460_v16, %v5077_v59  ;;  %v1474_v15 = vmul.f32 %v7530_v60, %v5113_v51  ;;  %v1475_v22 = vmul.f32 %v7530_v60, %v5109_v28  ;;  %v1577_v63 = vmul.f32 %v4529_v19, %v5109_v28 }
 0x22b   : > { %v1225_v24 = vmul.f32 %v1201_v1, %v7531_v47  ;;  %v5181_v9 = vadd.f32 %v1508_v21, %v7532_v12  ;;  %v5187_v42 = vadd.f32 %v1543_v31, %v4965_v54  ;;  %v5191_v59 = vsel %vm1657_vm2, %v1648_v34, 0.0 }
 0x22c   : > { %7529 = vst [vmem:[#allocation145_spill] sm:$0xff] %v5165_v45  ;;  %v7533_v45 = vld [vmem:[#allocation127_spill] sm:$0xff]  ;;  %7534 = vst [vmem:[#allocation44_spill] sm:$0xff] %v5191_v59  ;;  %v5193_v43 = vsel %vm1279_vm5, %v1226_v0, 0.0  ;;  %v1156_v29 = vmul.f32 %v1132_v25, %v7537_v4  ;;  %v891_v1 = vmul.f32 %v5052_v35, %v867_v57  ;;  %v5205_v54 = vadd.f32 %v1576_v27, %v4978_v46 }
 0x22d   : > { %v5184_v30 = vadd.f32 %v1509_v53, %v7533_v45  ;;  %7535 = vst [vmem:[#allocation115_spill] sm:$0xff] %v5193_v43  ;;  %v5195_v17 = vsel %vm1279_vm5, %v1225_v24, 0.0  ;;  %v5199_v12 = vpop.eup %3420  ;;  %v5202_v45 = vadd.f32 %v1542_v48, %v4973_v23  ;;  %v7539_v53 = vld [vmem:[#allocation114_spill] sm:$0xff]  ;;  %v798_v31 = vmul.f32 1.0614054, %v5171_v10  ;;  %v2635_v27 = vld [vmem:[#allocation9 + $0x78] sm:$0xff] }
 0x22e   : > { %7536 = vst [vmem:[#allocation118_spill] sm:$0xff] %v5195_v17  ;;  %7538 = vst [vmem:[#allocation127_spill] sm:$0xff] %v5205_v54  ;;  %v1347_v21 = vrot.slane %v5195_v17, 6  ;;  %vm1256_vm7 = vcmp.ge.s32.totalorder %v7539_v53, 0  ;;  %vm1268_vm8 = vcmp.lt.s32.totalorder %v7539_v53, 16  ;;  %v5211_v0 = vpop.eup %3422  ;;  %v5214_v4 = vadd.f32 %v1577_v63, %v4981_v20  ;;  %3190 = vmatprep.subr.mxu1 %v2635_v27 }
 0x22f   : > { %v5218_v23 = vmul.f32 %v7423_v58, %v5191_v59  ;;  %v5222_v46 = vmul.f32 %v7423_v58, %v5161_v33  ;;  %v5226_v57 = vmul.f32 %v7451_v6, %v5191_v59  ;;  %v5228_v34 = vpop.eup %3424  ;;  %v5232_v25 = vmul.f32 %v7451_v6, %v5161_v33  ;;  %3191 = vmatpush3.msra.mxu1 %v2635_v27  ;;  %v2633_v27 = vld [vmem:[#allocation9 + $0x68] sm:$0xff]  ;;  %vm5317_vm9 = vmand %vm1256_vm7, %vm1268_vm8 }
 0x230   : > { %7540 = vst [vmem:[#allocation117_spill] sm:$0xff] %v5214_v4  ;;  %v1359_v20 = vrot.slane %v5193_v43, 6  ;;  %v5238_v63 = vmul.f32 %v4055_v18, %v5193_v43  ;;  %v5242_v47 = vmul.f32 %v7437_v37, %v5193_v43  ;;  %v5246_v24 = vmul.f32 %v7460_v16, %v5193_v43 }
 0x231   : > { %7541 = vst [vmem:[#allocation114_spill] sm:$0xff] %v5218_v23  ;;  %7542 = vst [vmem:[#allocation146_spill] sm:$0xff] %v5222_v46  ;;  %v3026_v4 = vadd.f32 -0.28449672, %v891_v1  ;;  %v3005_v38 = vadd.f32 -1.4531521, %v798_v31  ;;  %v5263_v54 = vmul.f32 %v4055_v18, %v5195_v17  ;;  %v5267_v31 = vmul.f32 %v7437_v37, %v5195_v17 }
 0x232   : > { %7543 = vst [vmem:[#allocation147_spill] sm:$0xff] %v5226_v57  ;;  %7544 = vst [vmem:[#allocation148_spill] sm:$0xff] %v5232_v25  ;;  %v1204_v57 = vadd.f32 1.0, %v1156_v29  ;;  %v2634_v25 = vld [vmem:[#allocation9 + $0x70] sm:$0xff]  ;;  %v1384_v48 = vsel %vm1365_vm12, %v1359_v20, %v1347_v21  ;;  %v5271_v3 = vmul.f32 %v7460_v16, %v5195_v17  ;;  %vm1257_vm10 = vcmp.ge.s32.totalorder %v5049_v55, 0 }
 0x233   : > { %7545 = vst [vmem:[#allocation149_spill] sm:$0xff] %v5238_v63  ;;  %7546 = vst [vmem:[#allocation150_spill] sm:$0xff] %v5242_v47  ;;  %v797_v63 = vmul.f32 1.0614054, %v5211_v0  ;;  %3192 = vmatprep.subr.mxu1 %v2634_v25  ;;  %v5255_v47 = vsel %vm1365_vm12, %v1347_v21, %v1359_v20  ;;  %v7548_v29 = vld [vmem:[#allocation126_spill] sm:$0xff]  ;;  %v7552_v21 = vld [vmem:[#allocation125_spill] sm:$0xff]  ;;  %v846_v18 = vmul.f32 %v5171_v10, %v3005_v38 }
 0x234   : > { %7547 = vst [vmem:[#allocation151_spill] sm:$0xff] %v5246_v24  ;;  %v5259_v1 = vadd.f32 %v1474_v15, %v7548_v29  ;;  %3193 = vmatpush3.msra.mxu1 %v2634_v25  ;;  %7549 = vst [vmem:[#allocation126_spill] sm:$0xff] %v5263_v54  ;;  %v5274_v20 = vadd.f32 %v1475_v22, %v7552_v21  ;;  %v5278_v56 = vsel %vm1392_vm1, %v1384_v48, 0.0  ;;  %v7553_v25 = vld [vmem:[#allocation116_spill] sm:$0xff]  ;;  %v560_v54 = vpop.f32.mrf.mxu0  ;;  %v7554_v22 = vrot.slane %v5195_v17, 7 }
 0x235   : > { %7550 = vst [vmem:[#allocation152_spill] sm:$0xff] %v5267_v31  ;;  %7551 = vst [vmem:[#allocation153_spill] sm:$0xff] %v5271_v3  ;;  %3194 = vmatprep.subr.mxu1 %v2633_v27  ;;  %v1228_v29 = vmul.f32 %v1204_v57, %v7553_v25  ;;  %v939_v24 = vmul.f32 %v5052_v35, %v3026_v4  ;;  %v2632_v31 = vld [vmem:[#allocation9 + $0x60] sm:$0xff]  ;;  %v1545_v3 = vmul.f32 %v7468_v41, %v5255_v47 }
 0x236   : > { %3195 = vmatpush3.msra.mxu1 %v2633_v27  ;;  %v7555_v21 = vrot.slane %v5193_v43, 7  ;;  %v3004_v15 = vadd.f32 -1.4531521, %v797_v63  ;;  %v5294_v4 = vmul.f32 %v7442_v14, %v5255_v47  ;;  %v1579_v57 = vmul.f32 %v4529_v19, %v5255_v47 }
 0x237   : > { %3196 = vmatprep.subr.mxu1 %v2632_v31  ;;  %v963_v27 = vadd.f32 0.2548296, %v939_v24  ;;  %v5299_v25 = vmul.f32 0.70710677, %v5144_v8  ;;  %v1510_v17 = vmul.f32 %v7442_v14, %v5278_v56  ;;  %v5305_v63 = vadd.f32 %v4784_v36, %v560_v54 }
 0x238   : > { %v1649_v48 = vsel %vm1630_vm13, %v7555_v21, %v7554_v22  ;;  %3197 = vmatpush3.msra.mxu1 %v2632_v31  ;;  %v870_v22 = vadd.f32 1.4214138, %v846_v18  ;;  %v845_v38 = vmul.f32 %v5211_v0, %v3004_v15  ;;  %v2631_v21 = vld [vmem:[#allocation9 + $0x58] sm:$0xff]  ;;  %v1544_v43 = vmul.f32 %v7468_v41, %v5278_v56  ;;  %v2630_v15 = vld [vmem:[#allocation9 + $0x50] sm:$0xff] }
 0x239   : > { %v5311_v24 = vsel %vm1657_vm2, %v1649_v48, 0.0  ;;  %v987_v18 = vmul.f32 %v5052_v35, %v963_v27  ;;  %v680_v54 = vand.u32 2147483647, %v5299_v25  ;;  %3198 = vmatprep.subr.mxu1 %v2631_v21  ;;  %v5324_v23 = vadd.f32 %v1545_v3, %v5184_v30  ;;  %v7600_v5 = vld [vmem:[#allocation146_spill] sm:$0xff] }
 0x23a   : > { %7556 = vst [vmem:[#allocation125_spill] sm:$0xff] %v5311_v24  ;;  %v1578_v48 = vmul.f32 %v4529_v19, %v5278_v56  ;;  %v894_v46 = vmul.f32 %v5171_v10, %v870_v22  ;;  %v869_v39 = vadd.f32 1.4214138, %v845_v38  ;;  %3199 = vmatpush3.msra.mxu1 %v2631_v21  ;;  %v5330_v53 = vadd.f32 %v1579_v57, %v5187_v42 }
 0x23b   : > { %v1107_v2 = vmul.f32 %v5199_v12, %v987_v18  ;;  %v704_v35 = vmul.f32 0.3275911, %v680_v54  ;;  %v5334_v27 = vmul.f32 0.70710677, %v5305_v63  ;;  %3200 = vmatprep.subr.mxu1 %v2630_v15  ;;  %v5338_v3 = vmul.f32 %v7451_v6, %v5311_v24  ;;  %v2628_v18 = vld [vmem:[#allocation9 + $0x40] sm:$0xff] }
 0x23c   : > { %7559 = vst [vmem:[#allocation116_spill] sm:$0xff] %v5330_v53  ;;  %v5342_v30 = vsel %vm5317_vm9, %v1228_v29, 0.0  ;;  %v3029_v22 = vadd.f32 -0.28449672, %v894_v46  ;;  %v893_v42 = vmul.f32 %v5211_v0, %v869_v39  ;;  %3201 = vmatpush3.msra.mxu1 %v2630_v15  ;;  %v5346_v12 = vadd.f32 %v1544_v43, %v5181_v9  ;;  %v2627_v9 = vld [vmem:[#allocation9 + $0x38] sm:$0xff] }
 0x23d   : > { %7560 = vst [vmem:[#allocation154_spill] sm:$0xff] %v5338_v3  ;;  %7561 = vst [vmem:[#allocation155_spill] sm:$0xff] %v5342_v30  ;;  %v1131_v57 = vsub.f32 1.0, %v1107_v2  ;;  %v728_v38 = vadd.f32 1.0, %v704_v35  ;;  %v1016_v21 = vsub.f32 0.0, %v680_v54  ;;  %3202 = vmatprep.subr.mxu1 %v2629_v7  ;;  %v5349_v53 = vadd.f32 %v1578_v48, %v5202_v45  ;;  %v3427_v2 = vpop.eup %3426 }
 0x23e   : > { %v942_v3 = vmul.f32 %v5171_v10, %v3029_v22  ;;  %v3028_v40 = vadd.f32 -0.28449672, %v893_v42  ;;  %v679_v29 = vand.u32 2147483647, %v5334_v27  ;;  %3203 = vmatpush3.msra.mxu1 %v2629_v7  ;;  %v5358_v45 = vmul.f32 %v7437_v37, %v5342_v30 }
 0x23f   : > { %7562 = vst [vmem:[#allocation156_spill] sm:$0xff] %v5349_v53  ;;  %v1155_v43 = vmul.f32 %v1131_v57, %v5041_v49  ;;  %3428 = vrcp.f32 %v728_v38  ;;  %3204 = vmatprep.subr.mxu1 %v2628_v18  ;;  %v5363_v7 = vmul.f32 %v7460_v16, %v5342_v30  ;;  %v1040_v42 = vmul.f32 %v1016_v21, %v680_v54  ;;  %v2626_v57 = vld [vmem:[#allocation9 + $0x30] sm:$0xff]  ;;  %v3186_v54 = vpop.f32.mrf.mxu0 }
 0x240   : > { %7563 = vst [vmem:[#allocation157_spill] sm:$0xff] %v5358_v45  ;;  %v966_v15 = vadd.f32 0.2548296, %v942_v3  ;;  %v941_v48 = vmul.f32 %v5211_v0, %v3028_v40  ;;  %v703_v35 = vmul.f32 0.3275911, %v679_v29  ;;  %3205 = vmatpush3.msra.mxu1 %v2628_v18  ;;  %v5368_v39 = vadd.f32 %v1510_v17, %v5259_v1  ;;  %v7565_v40 = vld [vmem:[#allocation119_spill] sm:$0xff] }
 0x241   : > { %7564 = vst [vmem:[#allocation158_spill] sm:$0xff] %v5363_v7  ;;  %v1203_v49 = vadd.f32 1.0, %v1155_v43  ;;  %3206 = vmatprep.subr.mxu1 %v2627_v9  ;;  %vm1269_vm11 = vcmp.lt.s32.totalorder %v5049_v55, 16  ;;  %v5375_v43 = vadd.f32 %v5294_v4, %v5274_v20  ;;  %vm632_vm15 = vcmp.ge.f32.partialorder %v5299_v25, 0.0  ;;  %v2625_v17 = vld [vmem:[#allocation9 + $0x28] sm:$0xff]  ;;  %v2624_v4 = vld [vmem:[#allocation9 + $0x20] sm:$0xff] }
 0x242   : > { %v990_v38 = vmul.f32 %v5171_v10, %v966_v15  ;;  %v965_v46 = vadd.f32 0.2548296, %v941_v48  ;;  %v727_v3 = vadd.f32 1.0, %v703_v35  ;;  %3207 = vmatpush3.msra.mxu1 %v2627_v9  ;;  %v5379_v10 = vmul.f32 0.5, %v5144_v8  ;;  %vm5464_vm5 = vmand %vm1257_vm10, %vm1269_vm11 }
 0x243   : > { %v1227_v18 = vmul.f32 %v1203_v49, %v7565_v40  ;;  %3208 = vmatprep.subr.mxu1 %v2626_v57  ;;  %v1015_v9 = vsub.f32 0.0, %v679_v29  ;;  %v1083_v20 = vmul.f32 1.442695, %v1040_v42  ;;  %vm631_vm0 = vcmp.ge.f32.partialorder %v5334_v27, 0.0  ;;  %v7567_v49 = vld [vmem:[#allocation39_spill] sm:$0xff] }
 0x244   : > { %v1110_v1 = vmul.f32 %v5228_v34, %v990_v38  ;;  %v989_v21 = vmul.f32 %v5211_v0, %v965_v46  ;;  %3430 = vrcp.f32 %v727_v3  ;;  %3209 = vmatpush3.msra.mxu1 %v2626_v57  ;;  %v1476_v8 = vmul.f32 %v7530_v60, %v5278_v56  ;;  %v2623_v57 = vld [vmem:[#allocation9 + $0x18] sm:$0xff] }
 0x245   : > { %v5385_v15 = vsel %vm5317_vm9, %v1227_v18, 0.0  ;;  %3210 = vmatprep.subr.mxu1 %v2625_v17  ;;  %v5392_v34 = vadd.s32 9, %v3999_v52  ;;  %v1477_v0 = vmul.f32 %v7530_v60, %v5255_v47  ;;  %v5397_v31 = vadd.f32 %v4784_v36, %v3186_v54 }
 0x246   : > { %7566 = vst [vmem:[#allocation119_spill] sm:$0xff] %v5385_v15  ;;  %v1348_v48 = vrot.slane %v5385_v15, 6  ;;  %3211 = vmatpush3.msra.mxu1 %v2625_v17  ;;  %v1134_v46 = vsub.f32 1.0, %v1110_v1  ;;  %v1109_v35 = vmul.f32 %v3427_v2, %v989_v21  ;;  %v5402_v27 = vsel %vm632_vm15, 1.0, %v7394_v50  ;;  %v2622_v17 = vld [vmem:[#allocation9 + $0x10] sm:$0xff] }
 0x247   : > { %v1440_v42 = vmul.f32 %v7567_v49, %v5113_v51  ;;  %3212 = vmatprep.subr.mxu1 %v2624_v4  ;;  %v5407_v38 = vsel %vm631_vm0, 1.0, %v7394_v50  ;;  %v1039_v3 = vmul.f32 %v1015_v9, %v679_v29  ;;  %v5410_v40 = vmul.f32 0.5, %v5305_v63 }
 0x248   : > { %v1441_v2 = vmul.f32 %v7567_v49, %v5109_v28  ;;  %3213 = vmatpush3.msra.mxu1 %v2624_v4  ;;  %v7568_v25 = vrot.slane %v5342_v30, 6  ;;  %v1158_v51 = vmul.f32 %v1134_v46, %v5091_v62  ;;  %3432 = vpow2.f32 %v1083_v20  ;;  %v2621_v4 = vld [vmem:[#allocation9 + $0x8] sm:$0xff] }
 0x249   : > { %v1492_v54 = vadd.f32 %v1476_v8, %v1440_v42  ;;  %3214 = vmatprep.subr.mxu1 %v2623_v57  ;;  %v1133_v1 = vsub.f32 1.0, %v1109_v35  ;;  %v5421_v63 = vmul.f32 %v4045_v13, %v5191_v59  ;;  %v5424_v28 = vmul.f32 0.70710677, %v5397_v31 }
 0x24a   : > { %v1385_v18 = vsel %vm1365_vm12, %v7568_v25, %v1348_v48  ;;  %v1493_v29 = vadd.f32 %v1477_v0, %v1441_v2  ;;  %3215 = vmatpush3.msra.mxu1 %v2623_v57  ;;  %v7570_v21 = vmov %v7568_v25  ;;  %v7273_v62 = vrot.slane %v5385_v15, 7 }
 0x24b   : > { %7569 = vst [vmem:[#allocation39_spill] sm:$0xff] %v5421_v63  ;;  %v5430_v9 = vsel %vm1365_vm12, %v1348_v48, %v7570_v21  ;;  %v1206_v20 = vadd.f32 1.0, %v1158_v51  ;;  %v5435_v8 = vmul.f32 %v4045_v13, %v5161_v33  ;;  %3216 = vmatprep.subr.mxu1 %v2622_v17  ;;  %v5441_v46 = vsel %vm1392_vm1, %v1385_v18, 0.0  ;;  %v2620_v18 = vld [vmem:[#allocation9] sm:$0xff] }
 0x24c   : > { %v5437_v0 = vpop.eup %3428  ;;  %v1157_v35 = vmul.f32 %v1133_v1, %v5101_v11  ;;  %v1081_v42 = vmul.f32 1.442695, %v1039_v3  ;;  %v5446_v48 = vmul.f32 %v7423_v58, %v5311_v24  ;;  %3217 = vmatpush3.msra.mxu1 %v2622_v17  ;;  %v5450_v57 = vmul.f32 %v7460_v16, %v5385_v15 }
 0x24d   : > { %7571 = vst [vmem:[#allocation159_spill] sm:$0xff] %v5435_v8  ;;  %v1230_v2 = vmul.f32 %v1206_v20, %v5096_v26  ;;  %v800_v25 = vmul.f32 1.0614054, %v5437_v0  ;;  %v5455_v51 = vadd.s32 10, %v3999_v52  ;;  %3218 = vmatprep.subr.mxu1 %v2621_v4  ;;  %v1581_v11 = vmul.f32 %v4529_v19, %v5430_v9 }
 0x24e   : > { %7572 = vst [vmem:[#allocation160_spill] sm:$0xff] %v5446_v48  ;;  %7573 = vst [vmem:[#allocation161_spill] sm:$0xff] %v5450_v57  ;;  %v1205_v26 = vadd.f32 1.0, %v1157_v35  ;;  %v5469_v1 = vand.u32 2147483647, %v5424_v28  ;;  %3219 = vmatpush3.msra.mxu1 %v2621_v4  ;;  %v1580_v21 = vmul.f32 %v4529_v19, %v5441_v46  ;;  %v7576_v20 = vrot.slane %v5342_v30, 7 }
 0x24f   : > { %v1546_v55 = vmul.f32 %v7468_v41, %v5441_v46  ;;  %v3007_v22 = vadd.f32 -1.4531521, %v800_v25  ;;  %3220 = vmatprep.subr.mxu1 %v2620_v18  ;;  %v1547_v35 = vmul.f32 %v7468_v41, %v5430_v9  ;;  %3434 = vpow2.f32 %v1081_v42 }
 0x250   : > { %v1650_v3 = vsel %vm1630_vm13, %v7576_v20, %v7273_v62  ;;  %v1512_v4 = vmul.f32 %v7442_v14, %v5441_v46  ;;  %v5487_v45 = vmul.f32 %v7437_v37, %v5385_v15  ;;  %3221 = vmatpush3.msra.mxu1 %v2620_v18  ;;  %v5493_v20 = vsel %vm5464_vm5, %v1230_v2, 0.0 }
 0x251   : > { %v5489_v7 = vpop.eup %3430  ;;  %7578 = vst [vmem:[#allocation163_spill] sm:$0xff] %v5493_v20  ;;  %v1229_v25 = vmul.f32 %v1205_v26, %v5105_v32  ;;  %v848_v62 = vmul.f32 %v5437_v0, %v3007_v22  ;;  %v1513_v42 = vmul.f32 %v7442_v14, %v5430_v9  ;;  %v5500_v57 = vadd.f32 %v1581_v11, %v5324_v23 }
 0x252   : > { %7577 = vst [vmem:[#allocation162_spill] sm:$0xff] %v5487_v45  ;;  %v5504_v53 = vsel %vm1657_vm2, %v1650_v3, 0.0  ;;  %v799_v18 = vmul.f32 1.0614054, %v5489_v7  ;;  %v706_v33 = vmul.f32 0.3275911, %v5469_v1  ;;  %v5509_v2 = vadd.f32 %v1580_v21, %v5346_v12 }
 0x253   : > { %7579 = vst [vmem:[#allocation164_spill] sm:$0xff] %v5500_v57  ;;  %7580 = vst [vmem:[#allocation165_spill] sm:$0xff] %v5504_v53  ;;  %v5513_v32 = vsel %vm5464_vm5, %v1229_v25, 0.0  ;;  %v1562_v22 = vadd.f32 %v1546_v55, %v5368_v39  ;;  %v872_v26 = vadd.f32 1.4214138, %v848_v62  ;;  %v1361_v23 = vrot.slane %v5493_v20, 6 }
 0x254   : > { %7581 = vst [vmem:[#allocation166_spill] sm:$0xff] %v5509_v2  ;;  %7582 = vst [vmem:[#allocation167_spill] sm:$0xff] %v5513_v32  ;;  %v1349_v11 = vrot.slane %v5513_v32, 6  ;;  %v1563_v3 = vadd.f32 %v1547_v35, %v5375_v43  ;;  %vm634_vm7 = vcmp.ge.f32.partialorder %v5424_v28, 0.0  ;;  %v3006_v59 = vadd.f32 -1.4531521, %v799_v18  ;;  %v570_v2 = vpop.f32.mrf.mxu0 }
 0x255   : > { %v896_v57 = vmul.f32 %v5437_v0, %v872_v26  ;;  %v1528_v12 = vadd.f32 %v1512_v4, %v1492_v54  ;;  %v1529_v21 = vadd.f32 %v1513_v42, %v1493_v29  ;;  %v3433_v17 = vpop.eup %3432  ;;  %v1614_v62 = vrot.slane %v5513_v32, 7 }
 0x256   : > { %v5523_v25 = vsel %vm1365_vm12, %v1349_v11, %v1361_v23  ;;  %v1386_v39 = vsel %vm1365_vm12, %v1361_v23, %v1349_v11  ;;  %v730_v55 = vadd.f32 1.0, %v706_v33  ;;  %v5536_v29 = vmul.f32 %v7451_v6, %v5504_v53  ;;  %v7588_v23 = vld [vmem:[#allocation32_spill] sm:$0xff] }
 0x257   : > { %v5530_v43 = vsel %vm1392_vm1, %v1386_v39, 0.0  ;;  %v1583_v54 = vmul.f32 %v4529_v19, %v5523_v25  ;;  %v5539_v28 = vsel %vm634_vm7, 1.0, %v7394_v50  ;;  %v1626_v35 = vrot.slane %v5493_v20, 7 }
 0x258   : > { %7583 = vst [vmem:[#allocation168_spill] sm:$0xff] %v5536_v29  ;;  %7584 = vst [vmem:[#allocation169_spill] sm:$0xff] %v5539_v28  ;;  %v3031_v4 = vadd.f32 -0.28449672, %v896_v57  ;;  %v5543_v42 = vmul.f32 0.5, %v5397_v31  ;;  %v5546_v33 = vadd.f32 %v4784_v36, %v570_v2  ;;  %v5550_v18 = vmul.f32 %v7437_v37, %v5493_v20 }
 0x259   : > { %v5554_v26 = vmul.f32 %v7460_v16, %v5493_v20  ;;  %v5558_v11 = vmul.f32 %v7588_v23, %v5493_v20  ;;  %v847_v57 = vmul.f32 %v5489_v7, %v3006_v59  ;;  %v1582_v31 = vmul.f32 %v4529_v19, %v5530_v43 }
 0x25a   : > { %7585 = vst [vmem:[#allocation170_spill] sm:$0xff] %v5543_v42  ;;  %7586 = vst [vmem:[#allocation171_spill] sm:$0xff] %v5550_v18  ;;  %v1651_v36 = vsel %vm1630_vm13, %v1626_v35, %v1614_v62  ;;  %v944_v2 = vmul.f32 %v5437_v0, %v3031_v4  ;;  %3436 = vrcp.f32 %v730_v55  ;;  %v1599_v18 = vadd.f32 %v1583_v54, %v1563_v3 }
 0x25b   : > { %7587 = vst [vmem:[#allocation172_spill] sm:$0xff] %v5554_v26  ;;  %7589 = vst [vmem:[#allocation32_spill] sm:$0xff] %v5558_v11  ;;  %v871_v45 = vadd.f32 1.4214138, %v847_v57  ;;  %v1018_v26 = vsub.f32 0.0, %v5469_v1  ;;  %v5570_v11 = vsel %vm1630_vm13, %v1614_v62, %v1626_v35  ;;  %v5574_v59 = vmul.f32 %v7460_v16, %v5513_v32 }
 0x25c   : > { %v968_v42 = vadd.f32 0.2548296, %v944_v2  ;;  %v609_v8 = vmul.f32 0.70710677, %v5546_v33  ;;  %v3435_v28 = vpop.eup %3434  ;;  %v5579_v55 = vsel %vm1657_vm2, %v1651_v36, 0.0  ;;  %v5583_v3 = vmul.f32 %v7588_v23, %v5513_v32  ;;  %v7592_v2 = vld [vmem:[#allocation141_spill] sm:$0xff] }
 0x25d   : > { %7590 = vst [vmem:[#allocation173_spill] sm:$0xff] %v5574_v59  ;;  %v895_v62 = vmul.f32 %v5489_v7, %v871_v45  ;;  %v1598_v35 = vadd.f32 %v1582_v31, %v1562_v22  ;;  %vm1258_vm8 = vcmp.ge.s32.totalorder %v5392_v34, 0  ;;  %vm1270_vm9 = vcmp.lt.s32.totalorder %v5392_v34, 16 }
 0x25e   : > { %7591 = vst [vmem:[#allocation174_spill] sm:$0xff] %v5583_v3  ;;  %v992_v4 = vmul.f32 %v5437_v0, %v968_v42  ;;  %v1548_v57 = vmul.f32 %v7468_v41, %v5530_v43  ;;  %v1549_v36 = vmul.f32 %v7468_v41, %v5523_v25  ;;  %v1720_v39 = vadd.f32 %v7592_v2, %v1599_v18  ;;  %v7593_v3 = vld [vmem:[#allocation53_spill] sm:$0xff]  ;;  %v7595_v0 = vld [vmem:[#allocation34_spill] sm:$0xff]  ;;  %vm5653_vm11 = vmand %vm1258_vm8, %vm1270_vm9 }
 0x25f   : > { %v5597_v54 = vmul.f32 %v7593_v3, %v5570_v11  ;;  %v3030_v45 = vadd.f32 -0.28449672, %v895_v62  ;;  %v681_v22 = vand.u32 2147483647, %v609_v8  ;;  %v5601_v42 = vmul.f32 %v7595_v0, %v5579_v55 }
 0x260   : > { %v5605_v31 = vmul.f32 %v7595_v0, %v5570_v11  ;;  %v1112_v20 = vmul.f32 %v3433_v17, %v992_v4  ;;  %v1042_v59 = vmul.f32 %v1018_v26, %v5469_v1  ;;  %v5611_v18 = vmul.f32 %v7593_v3, %v5579_v55 }
 0x261   : > { %7594 = vst [vmem:[#allocation141_spill] sm:$0xff] %v5597_v54  ;;  %7596 = vst [vmem:[#allocation53_spill] sm:$0xff] %v5601_v42  ;;  %v943_v41 = vmul.f32 %v5489_v7, %v3030_v45  ;;  %v705_v2 = vmul.f32 0.3275911, %v681_v22  ;;  %v1017_v62 = vsub.f32 0.0, %v681_v22  ;;  %v7599_v54 = vld [vmem:[#allocation140_spill] sm:$0xff]  ;;  %v5614_v63 = vadd.f32 %v1548_v57, %v1528_v12 }
 0x262   : > { %7597 = vst [vmem:[#allocation175_spill] sm:$0xff] %v5605_v31  ;;  %7598 = vst [vmem:[#allocation176_spill] sm:$0xff] %v5611_v18  ;;  %v1719_v29 = vadd.f32 %v7599_v54, %v1598_v35  ;;  %v1136_v48 = vsub.f32 1.0, %v1112_v20  ;;  %v5616_v42 = vadd.f32 %v1549_v36, %v1529_v21  ;;  %v1756_v31 = vadd.f32 %v7600_v5, %v1720_v39 }
 0x263   : > { %v967_v17 = vadd.f32 0.2548296, %v943_v41  ;;  %v729_v4 = vadd.f32 1.0, %v705_v2  ;;  %v1478_v1 = vmul.f32 %v7530_v60, %v5441_v46  ;;  %v1087_v45 = vmul.f32 1.442695, %v1042_v59 }
 0x264   : > { %v1160_v26 = vmul.f32 %v1136_v48, %v5402_v27  ;;  %v1442_v18 = vmul.f32 %v7567_v49, %v5278_v56  ;;  %v1479_v20 = vmul.f32 %v7530_v60, %v5430_v9  ;;  %vm633_vm10 = vcmp.ge.f32.partialorder %v609_v8, 0.0  ;;  %v7601_v56 = vld [vmem:[#allocation114_spill] sm:$0xff] }
 0x265   : > { %v991_v12 = vmul.f32 %v5489_v7, %v967_v17  ;;  %3438 = vrcp.f32 %v729_v4  ;;  %v1041_v21 = vmul.f32 %v1017_v62, %v681_v22  ;;  %v1443_v41 = vmul.f32 %v7567_v49, %v5255_v47  ;;  %v7603_v22 = vld [vmem:[#allocation115_spill] sm:$0xff]  ;;  %v7605_v62 = vld [vmem:[#allocation118_spill] sm:$0xff] }
 0x266   : > { %v1208_v5 = vadd.f32 1.0, %v1160_v26  ;;  %v1514_v39 = vmul.f32 %v7442_v14, %v5530_v43  ;;  %v1515_v27 = vmul.f32 %v7442_v14, %v5523_v25  ;;  %v5636_v59 = vadd.f32 %v7601_v56, %v1719_v29 }
 0x267   : > { %v5633_v48 = vpop.eup %3436  ;;  %v1111_v54 = vmul.f32 %v3435_v28, %v991_v12  ;;  %v5639_v7 = vmul.f32 0.5, %v5546_v33  ;;  %v1494_v35 = vadd.f32 %v1478_v1, %v1442_v18  ;;  %v1495_v36 = vadd.f32 %v1479_v20, %v1443_v41 }
 0x268   : > { %7602 = vst [vmem:[#allocation140_spill] sm:$0xff] %v5636_v59  ;;  %v1232_v57 = vmul.f32 %v1208_v5, %v5379_v10  ;;  %v802_v47 = vmul.f32 1.0614054, %v5633_v48  ;;  %v7604_v2 = vrot.slane %v7603_v22, 7  ;;  %v7606_v17 = vrot.slane %v7605_v62, 7 }
 0x269   : > { %v1135_v28 = vsub.f32 1.0, %v1111_v54  ;;  %3440 = vpow2.f32 %v1087_v45  ;;  %v5659_v10 = vsel %vm633_vm10, 1.0, %v7394_v50  ;;  %v1085_v33 = vmul.f32 1.442695, %v1041_v21 }
 0x26a   : > { %v1637_v4 = vsel %vm1630_vm13, %v7606_v17, %v7604_v2  ;;  %v3009_v18 = vadd.f32 -1.4531521, %v802_v47  ;;  %v5661_v1 = vadd.f32 %v1514_v39, %v1494_v35  ;;  %v5663_v26 = vadd.f32 %v1515_v27, %v1495_v36 }
 0x26b   : > { %v7609_v20 = vrot.slane %v5342_v30, 7  ;;  %v7610_v34 = vrot.slane %v5385_v15, 7  ;;  %v5675_v45 = vmul.f32 %v4045_v13, %v5311_v24  ;;  %v5678_v8 = vmul.f32 %v4045_v13, %v1637_v4  ;;  %v7637_v24 = vld [vmem:[#allocation43_spill] sm:$0xff] }
 0x26c   : > { %v5681_v21 = vmul.f32 %v7423_v58, %v1637_v4  ;;  %v5685_v5 = vmul.f32 %v7423_v58, %v5504_v53  ;;  %v5689_v41 = vsel %vm5653_vm11, %v1232_v57, 0.0  ;;  %v1159_v39 = vmul.f32 %v1135_v28, %v5407_v38 }
 0x26d   : > { %v5671_v12 = vsel %vm1630_vm13, %v7610_v34, %v7609_v20  ;;  %7612 = vst [vmem:[#allocation114_spill] sm:$0xff] %v5675_v45  ;;  %7613 = vst [vmem:[#allocation177_spill] sm:$0xff] %v5678_v8  ;;  %v850_v27 = vmul.f32 %v5633_v48, %v3009_v18  ;;  %v1776_v56 = vmul.f32 %v7451_v6, %v1637_v4  ;;  %3442 = vpow2.f32 %v1085_v33  ;;  %v3189_v20 = vpop.f32.mrf.mxu0 }
 0x26e   : > { %7611 = vst [vmem:[#allocation146_spill] sm:$0xff] %v5671_v12  ;;  %7614 = vst [vmem:[#allocation178_spill] sm:$0xff] %v5685_v5  ;;  %v5696_v54 = vmul.f32 %v7423_v58, %v5671_v12  ;;  %v5700_v35 = vmul.f32 %v7451_v6, %v5671_v12  ;;  %v5704_v47 = vmul.f32 %v7451_v6, %v5579_v55  ;;  %v1207_v57 = vadd.f32 1.0, %v1159_v39 }
 0x26f   : > { %7615 = vst [vmem:[#allocation179_spill] sm:$0xff] %v5689_v41  ;;  %v874_v36 = vadd.f32 1.4214138, %v850_v27  ;;  %v5708_v38 = vmul.f32 %v7451_v6, %v5570_v11  ;;  %v5710_v2 = vadd.f32 %v1776_v56, %v1756_v31  ;;  %v1362_v17 = vrot.slane %v5689_v41, 6 }
 0x270   : > { %7616 = vst [vmem:[#allocation180_spill] sm:$0xff] %v5696_v54  ;;  %7617 = vst [vmem:[#allocation181_spill] sm:$0xff] %v5700_v35  ;;  %v5714_v28 = vmul.f32 %v7593_v3, %v1637_v4  ;;  %v5718_v33 = vmul.f32 %v7593_v3, %v5671_v12  ;;  %v5721_v18 = vmul.f32 %v7595_v0, %v1637_v4  ;;  %v1627_v34 = vrot.slane %v5689_v41, 7  ;;  %v3453_v4 = vld [vmem:[%s7191_s2] ss:$0 sm:$0xff] }
 0x271   : > { %7618 = vst [vmem:[#allocation182_spill] sm:$0xff] %v5704_v47  ;;  %7619 = vst [vmem:[#allocation183_spill] sm:$0xff] %v5708_v38  ;;  %v5726_v39 = vmul.f32 %v7437_v37, %v5689_v41  ;;  %v1231_v31 = vmul.f32 %v1207_v57, %v5410_v40  ;;  %v898_v27 = vmul.f32 %v5633_v48, %v874_v36  ;;  %v7630_v36 = vrot.slane %v7603_v22, 1  ;;  %v7644_v47 = vld [vmem:[#allocation36_spill] sm:$0xff]  ;;  %v580_v38 = vpop.f32.mrf.mxu0 }
 0x272   : > { %7620 = vst [vmem:[#allocation184_spill] sm:$0xff] %v5710_v2  ;;  %7621 = vst [vmem:[#allocation185_spill] sm:$0xff] %v5714_v28  ;;  %v5732_v56 = vmul.f32 %v7460_v16, %v5689_v41  ;;  %v5736_v35 = vmul.f32 %v7588_v23, %v5689_v41  ;;  %v5743_v59 = vpop.eup %3438  ;;  %v586_v28 = vadd.f32 %v3453_v4, %v3189_v20  ;;  %vm1259_vm15 = vcmp.ge.s32.totalorder %v5455_v51, 0 }
 0x273   : > { %7622 = vst [vmem:[#allocation186_spill] sm:$0xff] %v5718_v33  ;;  %7623 = vst [vmem:[#allocation187_spill] sm:$0xff] %v5721_v18  ;;  %v7627_v33 = vld [vmem:[#allocation37_spill] sm:$0xff]  ;;  %v5747_v40 = vsel %vm5653_vm11, %v1231_v31, 0.0  ;;  %v3033_v57 = vadd.f32 -0.28449672, %v898_v27 }
 0x274   : > { %7624 = vst [vmem:[#allocation188_spill] sm:$0xff] %v5726_v39  ;;  %7625 = vst [vmem:[#allocation189_spill] sm:$0xff] %v5732_v56  ;;  %v5741_v2 = vmul.f32 %v7627_v33, %v7605_v62  ;;  %v7631_v56 = vrot.slane %v7605_v62, 1  ;;  %v1350_v18 = vrot.slane %v5747_v40, 6  ;;  %v1615_v29 = vrot.slane %v5747_v40, 7 }
 0x275   : > { %7626 = vst [vmem:[#allocation190_spill] sm:$0xff] %v5736_v35  ;;  %7629 = vst [vmem:[#allocation191_spill] sm:$0xff] %v5747_v40  ;;  %v5764_v31 = vmul.f32 %v7627_v33, %v7603_v22  ;;  %v7634_v27 = vrot.slane %v5342_v30, 1  ;;  %v7635_v62 = vrot.slane %v5385_v15, 1  ;;  %v801_v20 = vmul.f32 1.0614054, %v5743_v59 }
 0x276   : > { %7628 = vst [vmem:[#allocation37_spill] sm:$0xff] %v5741_v2  ;;  %v5755_v35 = vsel %vm2075_vm14, %v7631_v56, %v7630_v36  ;;  %v946_v36 = vmul.f32 %v5633_v48, %v3033_v57  ;;  %v5778_v39 = vmul.f32 %v7637_v24, %v5385_v15  ;;  %v5782_v22 = vmul.f32 %v7637_v24, %v5342_v30  ;;  %v3441_v5 = vpop.eup %3440 }
 0x277   : > { %7632 = vst [vmem:[#allocation192_spill] sm:$0xff] %v5755_v35  ;;  %7633 = vst [vmem:[#allocation193_spill] sm:$0xff] %v5764_v31  ;;  %v5772_v56 = vsel %vm2075_vm14, %v7635_v62, %v7634_v27  ;;  %v1387_v31 = vsel %vm1365_vm12, %v1362_v17, %v1350_v18  ;;  %v5788_v2 = vmul.f32 %v7437_v37, %v5513_v32  ;;  %v7641_v62 = vld [vmem:[#allocation41_spill] sm:$0xff]  ;;  %v5794_v27 = vld [vmem:[#allocation7 + $0x18] sm:$0x1f]  ;;  %vm1271_vm0 = vcmp.lt.s32.totalorder %v5455_v51, 16 }
 0x278   : > { %7636 = vst [vmem:[#allocation194_spill] sm:$0xff] %v5772_v56  ;;  %7638 = vst [vmem:[#allocation195_spill] sm:$0xff] %v5778_v39  ;;  %v5792_v57 = vmul.f32 %v7641_v62, %v5755_v35  ;;  %v5798_v39 = vrot.slane %v5794_v27, %v7644_v47  ;;  %v5806_v54 = vsel %vm1392_vm1, %v1387_v31, 0.0  ;;  %v970_v45 = vadd.f32 0.2548296, %v946_v36  ;;  %v7659_v37 = vld [vmem:[#allocation176_spill] sm:$0xff] }
 0x279   : > { %7639 = vst [vmem:[#allocation196_spill] sm:$0xff] %v5782_v22  ;;  %7640 = vst [vmem:[#allocation197_spill] sm:$0xff] %v5788_v2  ;;  %v5802_v22 = vsel %vm1365_vm12, %v1350_v18, %v1362_v17  ;;  %v7646_v2 = vld [vmem:[#allocation46_spill] sm:$0xff]  ;;  %v3008_v8 = vadd.f32 -1.4531521, %v801_v20  ;;  %v5818_v17 = vmul.f32 0.5, %v586_v28  ;;  %v5823_v31 = vadd.f32 %v3453_v4, %v580_v38 }
 0x27a   : > { %7642 = vst [vmem:[#allocation198_spill] sm:$0xff] %v5792_v57  ;;  %7643 = vst [vmem:[#allocation199_spill] sm:$0xff] %v5794_v27  ;;  %v5810_v35 = vmul.f32 %v7646_v2, %v5772_v56  ;;  %v5812_v57 = vmul.f32 0.70710677, %v586_v28  ;;  %v1584_v27 = vmul.f32 %v4529_v19, %v5806_v54  ;;  %v5821_v18 = vadd.s32 11, %v3999_v52  ;;  %v3443_v38 = vpop.eup %3442 }
 0x27b   : > { %7645 = vst [vmem:[#allocation200_spill] sm:$0xff] %v5798_v39  ;;  %v1652_v39 = vsel %vm1630_vm13, %v1627_v34, %v1615_v29  ;;  %7648 = vst [vmem:[#allocation202_spill] sm:$0xff] %v5818_v17  ;;  %v5832_v47 = vsel %vm1630_vm13, %v1615_v29, %v1627_v34  ;;  %v994_v36 = vmul.f32 %v5633_v48, %v970_v45  ;;  %v7652_v45 = vld [vmem:[#allocation39_spill] sm:$0xff]  ;;  %v611_v17 = vmul.f32 0.70710677, %v5823_v31 }
 0x27c   : > { %7647 = vst [vmem:[#allocation201_spill] sm:$0xff] %v5810_v35  ;;  %7649 = vst [vmem:[#allocation203_spill] sm:$0xff] %v5821_v18  ;;  %v5827_v35 = vmul.f32 %v7567_v49, %v5441_v46  ;;  %v1600_v61 = vadd.f32 %v1584_v27, %v5614_v63  ;;  %v849_v52 = vmul.f32 %v5743_v59, %v3008_v8  ;;  %v5842_v4 = vsel %vm1657_vm2, %v1652_v39, 0.0  ;;  %v7655_v18 = vld [vmem:[#allocation160_spill] sm:$0xff] }
 0x27d   : > { %v1585_v28 = vmul.f32 %v4529_v19, %v5802_v22  ;;  %v5846_v63 = vmul.f32 %v7588_v23, %v5747_v40  ;;  %v1114_v29 = vmul.f32 %v3441_v5, %v994_v36  ;;  %v684_v8 = vand.u32 2147483647, %v5812_v57  ;;  %v7656_v19 = vld [vmem:[#allocation168_spill] sm:$0xff]  ;;  %vm5888_vm7 = vmand %vm1259_vm15, %vm1271_vm0 }
 0x27e   : > { %v1721_v34 = vadd.f32 %v7652_v45, %v1600_v61  ;;  %v873_v20 = vadd.f32 1.4214138, %v849_v52  ;;  %v5853_v27 = vmul.f32 %v7595_v0, %v5832_v47  ;;  %v5857_v39 = vmul.f32 %v7460_v16, %v5747_v40 }
 0x27f   : > { %7651 = vst [vmem:[#allocation204_spill] sm:$0xff] %v5846_v63  ;;  %vm636_vm5 = vcmp.ge.f32.partialorder %v5812_v57, 0.0  ;;  %v1138_v46 = vsub.f32 1.0, %v1114_v29  ;;  %v708_v5 = vmul.f32 0.3275911, %v684_v8  ;;  %v1601_v36 = vadd.f32 %v1585_v28, %v5616_v42  ;;  %v7658_v63 = vld [vmem:[#allocation52_spill] sm:$0xff] }
 0x280   : > { %7653 = vst [vmem:[#allocation39_spill] sm:$0xff] %v5853_v27  ;;  %7654 = vst [vmem:[#allocation205_spill] sm:$0xff] %v5857_v39  ;;  %v1757_v48 = vadd.f32 %v7655_v18, %v1721_v34  ;;  %v897_v61 = vmul.f32 %v5743_v59, %v873_v20  ;;  %v1849_v52 = vmul.f32 %v7595_v0, %v5842_v4  ;;  %v1020_v45 = vsub.f32 0.0, %v684_v8  ;;  %v7657_v39 = vld [vmem:[#allocation169_spill] sm:$0xff]  ;;  %v7660_v0 = vld [vmem:[#allocation159_spill] sm:$0xff] }
 0x281   : > { %v683_v27 = vand.u32 2147483647, %v611_v17  ;;  %v1162_v62 = vmul.f32 %v1138_v46, %v7657_v39  ;;  %v732_v41 = vadd.f32 1.0, %v708_v5  ;;  %v1550_v18 = vmul.f32 %v7658_v63, %v5806_v54 }
 0x282   : > { %v1793_v2 = vadd.f32 %v7656_v19, %v1757_v48  ;;  %v3032_v56 = vadd.f32 -0.28449672, %v897_v61  ;;  %v1044_v34 = vmul.f32 %v1020_v45, %v684_v8  ;;  %v1722_v24 = vadd.f32 %v7660_v0, %v1601_v36  ;;  %v7661_v8 = vld [vmem:[#allocation170_spill] sm:$0xff] }
 0x283   : > { %v707_v29 = vmul.f32 0.3275911, %v683_v27  ;;  %v1019_v20 = vsub.f32 0.0, %v683_v27  ;;  %v1210_v42 = vadd.f32 1.0, %v1162_v62  ;;  %3444 = vrcp.f32 %v732_v41  ;;  %v7699_v0 = vld [vmem:[#allocation46_spill] sm:$0xff] }
 0x284   : > { %v1829_v40 = vadd.f32 %v7659_v37, %v1793_v2  ;;  %v945_v28 = vmul.f32 %v5743_v59, %v3032_v56  ;;  %v1551_v19 = vmul.f32 %v7658_v63, %v5802_v22  ;;  %v5877_v46 = vmul.f32 %v7593_v3, %v5842_v4  ;;  %v7664_v56 = vld [vmem:[#allocation142_spill] sm:$0xff] }
 0x285   : > { %v731_v48 = vadd.f32 1.0, %v707_v29  ;;  %v1234_v61 = vmul.f32 %v1210_v42, %v7661_v8  ;;  %v5882_v37 = vmul.f32 %v7593_v3, %v5832_v47  ;;  %v5893_v41 = vadd.f32 %v1550_v18, %v5661_v1 }
 0x286   : > { %v1865_v39 = vadd.f32 %v1849_v52, %v1829_v40  ;;  %v969_v5 = vadd.f32 0.2548296, %v945_v28  ;;  %vm635_vm8 = vcmp.ge.f32.partialorder %v611_v17, 0.0  ;;  %v1043_v2 = vmul.f32 %v1019_v20, %v683_v27  ;;  %v7666_v17 = vld [vmem:[#allocation126_spill] sm:$0xff] }
 0x287   : > { %v1480_v40 = vmul.f32 %v7530_v60, %v5530_v43  ;;  %v1091_v52 = vmul.f32 1.442695, %v1044_v34  ;;  %3446 = vrcp.f32 %v731_v48  ;;  %v5900_v51 = vadd.f32 %v1551_v19, %v5663_v26 }
 0x288   : > { %v1901_v62 = vadd.f32 %v7664_v56, %v1865_v39  ;;  %v993_v36 = vmul.f32 %v5743_v59, %v969_v5  ;;  %v5903_v45 = vadd.f32 %v5681_v21, %v1722_v24  ;;  %v5908_v1 = vsel %vm636_vm5, 1.0, %v7394_v50  ;;  %v7676_v56 = vld [vmem:[#allocation128_spill] sm:$0xff] }
 0x289   : > { %v1481_v43 = vmul.f32 %v7530_v60, %v5523_v25  ;;  %v5915_v59 = vsel %vm5888_vm7, %v1234_v61, 0.0  ;;  %v5918_v26 = vmul.f32 0.5, %v5823_v31  ;;  %v5921_v24 = vsel %vm635_vm8, 1.0, %v7394_v50  ;;  %v7668_v25 = vld [vmem:[#allocation162_spill] sm:$0xff] }
 0x28a   : > { %7665 = vst [vmem:[#allocation160_spill] sm:$0xff] %v5903_v45  ;;  %v1937_v27 = vadd.f32 %v7666_v17, %v1901_v62  ;;  %7667 = vst [vmem:[#allocation168_spill] sm:$0xff] %v5915_v59  ;;  %v1113_v18 = vmul.f32 %v3443_v38, %v993_v36  ;;  %v1089_v21 = vmul.f32 1.442695, %v1043_v2  ;;  %v1445_v57 = vmul.f32 %v7567_v49, %v5430_v9  ;;  %v7678_v36 = vld [vmem:[#allocation163_spill] sm:$0xff] }
 0x28b   : > { %v1516_v60 = vmul.f32 %v7442_v14, %v5806_v54  ;;  %3448 = vpow2.f32 %v1091_v52  ;;  %v1496_v20 = vadd.f32 %v1480_v40, %v5827_v35  ;;  %v1363_v38 = vrot.slane %v5915_v59, 6  ;;  %v7675_v40 = vld [vmem:[#allocation54_spill] sm:$0xff] }
 0x28c   : > { %v1973_v34 = vadd.f32 %v7668_v25, %v1937_v27  ;;  %v1137_v29 = vsub.f32 1.0, %v1113_v18  ;;  %v1497_v42 = vadd.f32 %v1481_v43, %v1445_v57  ;;  %v1517_v50 = vmul.f32 %v7442_v14, %v5802_v22  ;;  %v7671_v22 = vld [vmem:[#allocation173_spill] sm:$0xff]  ;;  %v7686_v27 = vld [vmem:[#allocation191_spill] sm:$0xff]  ;;  %v7689_v57 = vld [vmem:[#allocation204_spill] sm:$0xff] }
 0x28d   : > { %v5935_v49 = vmul.f32 %v7460_v16, %v5915_v59  ;;  %v5939_v9 = vmul.f32 %v7588_v23, %v5915_v59  ;;  %3450 = vpow2.f32 %v1089_v21  ;;  %v5943_v28 = vadd.f32 %v1516_v60, %v1496_v20  ;;  %v7687_v18 = vld [vmem:[#allocation47_spill] sm:$0xff] }
 0x28e   : > { %v1161_v35 = vmul.f32 %v1137_v29, %v5659_v10  ;;  %v5947_v19 = vmul.f32 %v4045_v13, %v5504_v53  ;;  %v5951_v14 = vmul.f32 %v4045_v13, %v5671_v12  ;;  %v2009_v48 = vadd.f32 %v7671_v22, %v1973_v34  ;;  %v7692_v34 = vld [vmem:[#allocation179_spill] sm:$0xff]  ;;  %v7696_v22 = vld [vmem:[#allocation194_spill] sm:$0xff] }
 0x28f   : > { %7669 = vst [vmem:[#allocation169_spill] sm:$0xff] %v5935_v49  ;;  %7670 = vst [vmem:[#allocation52_spill] sm:$0xff] %v5939_v9  ;;  %v5956_v8 = vmul.f32 %v7423_v58, %v5579_v55  ;;  %v5960_v10 = vmul.f32 %v7423_v58, %v5570_v11  ;;  %v5964_v5 = vadd.f32 %v1517_v50, %v1497_v42  ;;  %v7679_v52 = vrot.slane %v7678_v36, 1  ;;  %v7705_v9 = vld [vmem:[#allocation110_spill] sm:$0xff] }
 0x290   : > { %v1209_v39 = vadd.f32 1.0, %v1161_v35  ;;  %v5962_v61 = vpop.eup %3444  ;;  %v5968_v2 = vmul.f32 %v7451_v6, %v5842_v4  ;;  %v5972_v13 = vmul.f32 %v7451_v6, %v5832_v47  ;;  %v1590_v55 = vadd.f32 %v7676_v56, %v7675_v40  ;;  %v7701_v56 = vld [vmem:[#allocation66_spill] sm:$0xff] }
 0x291   : > { %7672 = vst [vmem:[#allocation176_spill] sm:$0xff] %v5956_v8  ;;  %v804_v58 = vmul.f32 1.0614054, %v5962_v61  ;;  %v5980_v11 = vmul.f32 %v7627_v33, %v5385_v15  ;;  %v7680_v4 = vrot.slane %v5513_v32, 1  ;;  %v5992_v6 = vmul.f32 %v7627_v33, %v5342_v30 }
 0x292   : > { %7673 = vst [vmem:[#allocation159_spill] sm:$0xff] %v5968_v2  ;;  %7674 = vst [vmem:[#allocation170_spill] sm:$0xff] %v5972_v13  ;;  %v1233_v62 = vmul.f32 %v1209_v39, %v5639_v7  ;;  %v7683_v7 = vld [vmem:[#allocation43_spill] sm:$0xff]  ;;  %v6004_v21 = vmul.f32 %v7687_v18, %v7686_v27  ;;  %v6007_v60 = vadd.f32 %v7689_v57, %v2009_v48  ;;  %v7693_v29 = vrot.slane %v7692_v34, 1  ;;  %v7697_v48 = vld [vmem:[#allocation41_spill] sm:$0xff] }
 0x293   : > { %7677 = vst [vmem:[#allocation142_spill] sm:$0xff] %v5980_v11  ;;  %v5988_v43 = vsel %vm2075_vm14, %v7680_v4, %v7679_v52  ;;  %7682 = vst [vmem:[#allocation162_spill] sm:$0xff] %v5992_v6  ;;  %v5996_v47 = vmul.f32 %v7683_v7, %v5513_v32  ;;  %v6000_v17 = vmul.f32 %v7683_v7, %v7678_v36  ;;  %v3011_v33 = vadd.f32 -1.4531521, %v804_v58  ;;  %v6034_v52 = vld [vmem:[#allocation7 + $0x10] sm:$0x1f] }
 0x294   : > { %7681 = vst [vmem:[#allocation126_spill] sm:$0xff] %v5988_v43  ;;  %7688 = vst [vmem:[#allocation128_spill] sm:$0xff] %v6004_v21  ;;  %v6011_v25 = vsel %vm5888_vm7, %v1233_v62, 0.0  ;;  %v7694_v20 = vrot.slane %v7686_v27, 1  ;;  %v6021_v50 = vpop.eup %3446  ;;  %v6026_v39 = vmul.f32 %v7697_v48, %v7696_v22  ;;  %v6030_v40 = vmul.f32 %v7699_v0, %v5988_v43  ;;  %v7702_v4 = vld [vmem:[#allocation36_spill] sm:$0xff]  ;;  %v7708_v36 = vld [vmem:[#allocation86_spill] sm:$0xff] }
 0x295   : > { %7684 = vst [vmem:[#allocation173_spill] sm:$0xff] %v5996_v47  ;;  %7685 = vst [vmem:[#allocation54_spill] sm:$0xff] %v6000_v17  ;;  %v1351_v35 = vrot.slane %v6011_v25, 6  ;;  %v1711_v62 = vadd.f32 %v7701_v56, %v1590_v55  ;;  %v1616_v58 = vrot.slane %v6011_v25, 7  ;;  %v6038_v7 = vrot.slane %v6034_v52, %v7702_v4  ;;  %v6040_v18 = vld [vmem:[#allocation7 + $0x20] sm:$0x1f] }
 0x296   : > { %7690 = vst [vmem:[#allocation43_spill] sm:$0xff] %v6007_v60  ;;  %7691 = vst [vmem:[#allocation47_spill] sm:$0xff] %v6011_v25  ;;  %v6019_v42 = vsel %vm2075_vm14, %v7694_v20, %v7693_v29  ;;  %v6044_v57 = vrot.slane %v6040_v18, %v7702_v4  ;;  %v7703_v29 = vld [vmem:[#allocation129_spill] sm:$0xff]  ;;  %v7704_v20 = vld [vmem:[#allocation34_spill] sm:$0xff]  ;;  %v852_v31 = vmul.f32 %v5962_v61, %v3011_v33  ;;  %v803_v43 = vmul.f32 1.0614054, %v6021_v50 }
 0x297   : > { %7695 = vst [vmem:[#allocation204_spill] sm:$0xff] %v6019_v42  ;;  %7698 = vst [vmem:[#allocation206_spill] sm:$0xff] %v6026_v39  ;;  %v1839_v54 = vmul.f32 %v7704_v20, %v7703_v29  ;;  %v1376_v55 = vsel %vm1365_vm12, %v1351_v35, %v1363_v38  ;;  %v1388_v56 = vsel %vm1365_vm12, %v1363_v38, %v1351_v35  ;;  %v7707_v4 = vld [vmem:[#allocation49_spill] sm:$0xff]  ;;  %v7713_v39 = vld [vmem:[#allocation106_spill] sm:$0xff] }
 0x298   : > { %7700 = vst [vmem:[#allocation46_spill] sm:$0xff] %v6030_v40  ;;  %v6055_v34 = vmul.f32 %v7588_v23, %v7705_v9  ;;  %v1422_v45 = vsel %vm1392_vm1, %v1388_v56, 0.0  ;;  %v1587_v60 = vmul.f32 %v7707_v4, %v1376_v55  ;;  %v3449_v12 = vpop.eup %3448  ;;  %v6065_v38 = vmul.f32 %v6038_v7, %v6019_v42  ;;  %v7710_v33 = vld [vmem:[#allocation45_spill] sm:$0xff]  ;;  %v7712_v40 = vld [vmem:[#allocation58_spill] sm:$0xff]  ;;  %v7723_v2 = vld [vmem:[#allocation180_spill] sm:$0xff] }
 0x299   : > { %v1586_v22 = vmul.f32 %v7707_v4, %v1422_v45  ;;  %v1747_v35 = vadd.f32 %v7710_v33, %v1711_v62  ;;  %v7711_v56 = vrot.slane %v5915_v59, 7  ;;  %v6079_v42 = vmul.f32 %v7460_v16, %v6011_v25  ;;  %v7715_v33 = vld [vmem:[#allocation75_spill] sm:$0xff]  ;;  %v7721_v47 = vld [vmem:[#allocation114_spill] sm:$0xff] }
 0x29a   : > { %7709 = vst [vmem:[#allocation66_spill] sm:$0xff] %v6065_v38  ;;  %v1603_v15 = vadd.f32 %v1587_v60, %v5900_v51  ;;  %v876_v62 = vadd.f32 1.4214138, %v852_v31  ;;  %v7716_v30 = vrot.slane %v7715_v33, 1  ;;  %v7717_v38 = vld [vmem:[#allocation56_spill] sm:$0xff]  ;;  %v6087_v17 = vpop.eup %3450  ;;  %v2061_v16 = vrot.slane %v6011_v25, 1 }
 0x29b   : > { %v1653_v53 = vsel %vm1630_vm13, %v7711_v56, %v1616_v58  ;;  %v1602_v21 = vadd.f32 %v1586_v22, %v5893_v41  ;;  %7714 = vst [vmem:[#allocation36_spill] sm:$0xff] %v6079_v42  ;;  %v7718_v51 = vrot.slane %v7717_v38, 1  ;;  %v1641_v49 = vsel %vm1630_vm13, %v1616_v58, %v7711_v56  ;;  %v7719_v41 = vld [vmem:[#allocation177_spill] sm:$0xff]  ;;  %v7724_v56 = vld [vmem:[#allocation178_spill] sm:$0xff]  ;;  %v6377_v31 = vld [vmem:[%s7193_s4] ss:$0 sm:$0xff] }
 0x29c   : > { %v1724_v22 = vadd.f32 %v7719_v41, %v1603_v15  ;;  %v3010_v32 = vadd.f32 -1.4531521, %v803_v43  ;;  %v1687_v42 = vsel %vm1657_vm2, %v1653_v53, 0.0  ;;  %v900_v29 = vmul.f32 %v5962_v61, %v876_v62  ;;  %v7726_v62 = vld [vmem:[#allocation183_spill] sm:$0xff] }
 0x29d   : > { %v2078_v60 = vsel %vm2075_vm14, %v7718_v51, %v7716_v30  ;;  %v1723_v11 = vadd.f32 %v7721_v47, %v1602_v21  ;;  %v7722_v30 = vld [vmem:[#allocation50_spill] sm:$0xff]  ;;  %v1553_v6 = vmul.f32 %v7658_v63, %v1376_v55  ;;  %v6104_v58 = vmul.f32 %v7588_v23, %v6011_v25  ;;  %v7725_v47 = vld [vmem:[#allocation105_spill] sm:$0xff] }
 0x29e   : > { %v1783_v51 = vadd.f32 %v7722_v30, %v1747_v35  ;;  %v1760_v13 = vadd.f32 %v7723_v2, %v1724_v22  ;;  %v851_v15 = vmul.f32 %v6021_v50, %v3010_v32  ;;  %v1552_v43 = vmul.f32 %v7658_v63, %v1422_v45  ;;  %v7727_v22 = vld [vmem:[#allocation182_spill] sm:$0xff] }
 0x29f   : > { %v1759_v53 = vadd.f32 %v7724_v56, %v1723_v11  ;;  %v3035_v41 = vadd.f32 -0.28449672, %v900_v29  ;;  %v6112_v35 = vmul.f32 %v7593_v3, %v1687_v42  ;;  %v6115_v2 = vmul.f32 %v7593_v3, %v1641_v49 }
 0x2a0   : > { %v1819_v21 = vadd.f32 %v7725_v47, %v1783_v51  ;;  %v1796_v8 = vadd.f32 %v7726_v62, %v1760_v13  ;;  %v875_v55 = vadd.f32 1.4214138, %v851_v15  ;;  %v7728_v32 = vrot.slane %v5915_v59, 1 }
 0x2a1   : > { %v1795_v30 = vadd.f32 %v7727_v22, %v1759_v53  ;;  %v948_v45 = vmul.f32 %v5962_v61, %v3035_v41  ;;  %v1851_v29 = vmul.f32 %v7704_v20, %v1687_v42  ;;  %v1852_v51 = vmul.f32 %v7704_v20, %v1641_v49  ;;  %v7732_v22 = vld [vmem:[#allocation65_spill] sm:$0xff] }
 0x2a2   : > { %v6122_v63 = vsel %vm2075_vm14, %v2061_v16, %v7728_v32  ;;  %v1855_v11 = vadd.f32 %v1839_v54, %v1819_v21  ;;  %v1832_v13 = vadd.f32 %v5882_v37, %v1796_v8  ;;  %v899_v56 = vmul.f32 %v6021_v50, %v875_v55  ;;  %v7733_v54 = vld [vmem:[#allocation200_spill] sm:$0xff] }
 0x2a3   : > { %7729 = vst [vmem:[#allocation34_spill] sm:$0xff] %v6122_v63  ;;  %v1831_v15 = vadd.f32 %v5877_v46, %v1795_v30  ;;  %v7730_v53 = vmov %v7728_v32  ;;  %v972_v62 = vadd.f32 0.2548296, %v948_v45  ;;  %v6139_v37 = vmul.f32 %v7733_v54, %v6122_v63  ;;  %v7737_v32 = vld [vmem:[#allocation203_spill] sm:$0xff]  ;;  %v7738_v45 = vld [vmem:[#allocation73_spill] sm:$0xff] }
 0x2a4   : > { %v6134_v47 = vsel %vm2075_vm14, %v7730_v53, %v2061_v16  ;;  %v1891_v41 = vadd.f32 %v7732_v22, %v1855_v11  ;;  %v3034_v8 = vadd.f32 -0.28449672, %v899_v56  ;;  %v6142_v49 = vadd.f32 %v1552_v43, %v5943_v28 }
 0x2a5   : > { %7731 = vst [vmem:[#allocation35_spill] sm:$0xff] %v6134_v47  ;;  %7734 = vst [vmem:[#allocation49_spill] sm:$0xff] %v6139_v37  ;;  %v7735_v42 = vrot.slane %v7712_v40, 1  ;;  %v7736_v46 = vrot.slane %v7708_v36, 1  ;;  %v1867_v16 = vadd.f32 %v1851_v29, %v1831_v15  ;;  %v1868_v55 = vadd.f32 %v1852_v51, %v1832_v13  ;;  %v7743_v29 = vld [vmem:[#allocation37_spill] sm:$0xff] }
 0x2a6   : > { %v996_v30 = vmul.f32 %v5962_v61, %v972_v62  ;;  %vm1260_vm9 = vcmp.ge.s32.totalorder %v7737_v32, 0  ;;  %vm1272_vm10 = vcmp.lt.s32.totalorder %v7737_v32, 16  ;;  %v1927_v11 = vadd.f32 %v7738_v45, %v1891_v41  ;;  %v7744_v62 = vld [vmem:[#allocation85_spill] sm:$0xff] }
 0x2a7   : > { %v6150_v21 = vsel %vm2075_vm14, %v7736_v46, %v7735_v42  ;;  %v947_v28 = vmul.f32 %v6021_v50, %v3034_v8  ;;  %v6158_v43 = vadd.f32 %v1553_v6, %v5964_v5  ;;  %v7739_v56 = vrot.slane %v7713_v39, 1  ;;  %v7746_v46 = vld [vmem:[#allocation193_spill] sm:$0xff]  ;;  %vm6229_vm11 = vmand %vm1260_vm9, %vm1272_vm10 }
 0x2a8   : > { %v7740_v53 = vrot.slane %v7705_v9, 1  ;;  %v6169_v61 = vmul.f32 %v7697_v48, %v2078_v60  ;;  %v1903_v51 = vadd.f32 %v7743_v29, %v1867_v16  ;;  %v1116_v15 = vmul.f32 %v3449_v12, %v996_v30  ;;  %v7748_v30 = vld [vmem:[#allocation98_spill] sm:$0xff] }
 0x2a9   : > { %v1963_v22 = vadd.f32 %v7744_v62, %v1927_v11  ;;  %v6175_v5 = vmul.f32 %v7697_v48, %v6150_v21  ;;  %v971_v6 = vadd.f32 0.2548296, %v947_v28  ;;  %v6178_v41 = vmul.f32 %v7699_v0, %v2078_v60 }
 0x2aa   : > { %v6166_v13 = vsel %vm2075_vm14, %v7740_v53, %v7739_v56  ;;  %7742 = vst [vmem:[#allocation75_spill] sm:$0xff] %v6169_v61  ;;  %v2212_v8 = vmul.f32 %v6038_v7, %v2078_v60  ;;  %v2248_v42 = vmul.f32 %v7733_v54, %v6150_v21  ;;  %v1904_v45 = vadd.f32 %v7746_v46, %v1868_v55  ;;  %v7747_v56 = vld [vmem:[#allocation195_spill] sm:$0xff]  ;;  %v7749_v60 = vld [vmem:[#allocation197_spill] sm:$0xff]  ;;  %v7750_v46 = vld [vmem:[#allocation196_spill] sm:$0xff] }
 0x2ab   : > { %7741 = vst [vmem:[#allocation45_spill] sm:$0xff] %v6166_v13  ;;  %7745 = vst [vmem:[#allocation56_spill] sm:$0xff] %v6175_v5  ;;  %v1939_v16 = vadd.f32 %v7747_v56, %v1903_v51  ;;  %v1140_v12 = vsub.f32 1.0, %v1116_v15  ;;  %v1999_v11 = vadd.f32 %v7748_v30, %v1963_v22  ;;  %v995_v53 = vmul.f32 %v6021_v50, %v971_v6  ;;  %v7751_v30 = vld [vmem:[#allocation205_spill] sm:$0xff]  ;;  %v7755_v51 = vld [vmem:[#allocation59_spill] sm:$0xff] }
 0x2ac   : > { %v2284_v28 = vmul.f32 %v6044_v57, %v6166_v13  ;;  %v2403_v62 = vsub.s32 4, %v3981_v44  ;;  %v1940_v56 = vadd.f32 %v7750_v46, %v1904_v45  ;;  %v3457_v22 = vld [vmem:[#allocation7] sm:$0x1f]  ;;  %v7757_v6 = vld [vmem:[#allocation202_spill] sm:$0xff]  ;;  %v7774_v63 = vrot.slane %v7705_v9, 2 }
 0x2ad   : > { %v1975_v37 = vadd.f32 %v7749_v60, %v1939_v16  ;;  %v1164_v47 = vmul.f32 %v1140_v12, %v5908_v1  ;;  %v2035_v55 = vadd.f32 %v6055_v34, %v1999_v11  ;;  %v1115_v15 = vmul.f32 %v6087_v17, %v995_v53  ;;  %v7752_v16 = vld [vmem:[#allocation67_spill] sm:$0xff]  ;;  %v7753_v12 = vld [vmem:[#allocation60_spill] sm:$0xff] }
 0x2ae   : > { %v7754_v11 = vrot.slane %v7753_v12, 2  ;;  %v7756_v17 = vrot.slane %v7755_v51, 2  ;;  %v6209_v50 = vrot.slane %v3457_v22, %v2403_v62  ;;  %v7758_v46 = vld [vmem:[#allocation79_spill] sm:$0xff]  ;;  %v7763_v12 = vrot.slane %v7715_v33, 2 }
 0x2af   : > { %v2011_v29 = vadd.f32 %v7751_v30, %v1975_v37  ;;  %v1212_v59 = vadd.f32 1.0, %v1164_v47  ;;  %v2156_v60 = vadd.f32 %v7752_v16, %v2035_v55  ;;  %v1139_v1 = vsub.f32 1.0, %v1115_v15  ;;  %v7759_v47 = vld [vmem:[#allocation62_spill] sm:$0xff]  ;;  %v7761_v55 = vld [vmem:[#allocation63_spill] sm:$0xff] }
 0x2b0   : > { %v2341_v53 = vsel %vm2340_vm4, %v7756_v17, %v7754_v11  ;;  %v7760_v30 = vrot.slane %v7759_v47, 2  ;;  %v7762_v15 = vrot.slane %v7761_v55, 2  ;;  %v7764_v51 = vrot.slane %v7717_v38, 2 }
 0x2b1   : > { %v1236_v45 = vmul.f32 %v1212_v59, %v7757_v6  ;;  %v2192_v37 = vadd.f32 %v7758_v46, %v2156_v60  ;;  %v1163_v22 = vmul.f32 %v1139_v1, %v5921_v24  ;;  %v7767_v6 = vrot.slane %v7712_v40, 2  ;;  %v3458_v46 = vld [vmem:[#allocation7 + $0x8] sm:$0x1f] }
 0x2b2   : > { %v2342_v16 = vsel %vm2340_vm4, %v7762_v15, %v7760_v30  ;;  %v2343_v11 = vsel %vm2340_vm4, %v7764_v51, %v7763_v12  ;;  %v7768_v60 = vrot.slane %v7708_v36, 2  ;;  %v6242_v30 = vrot.slane %v3458_v46, %v2403_v62  ;;  %v7769_v15 = vld [vmem:[#allocation131_spill] sm:$0xff]  ;;  %v7770_v12 = vld [vmem:[#allocation64_spill] sm:$0xff] }
 0x2b3   : > { %v1712_v32 = vadd.f32 %v7770_v12, %v7769_v15  ;;  %v7771_v51 = vld [vmem:[#allocation171_spill] sm:$0xff]  ;;  %v2047_v25 = vadd.f32 %v6104_v58, %v2011_v29  ;;  %v2228_v24 = vadd.f32 %v2212_v8, %v2192_v37  ;;  %v7773_v1 = vrot.slane %v7713_v39, 2 }
 0x2b4   : > { %v6240_v17 = vsel %vm2340_vm4, %v7768_v60, %v7767_v6  ;;  %v6247_v34 = vadd.f32 %v7771_v51, %v1940_v56  ;;  %v2405_v60 = vmul.f32 %v6209_v50, %v2341_v53  ;;  %v6260_v46 = vrot.slane %v6034_v52, %v2403_v62  ;;  %v7775_v15 = vld [vmem:[#allocation199_spill] sm:$0xff]  ;;  %v7776_v56 = vld [vmem:[#allocation122_spill] sm:$0xff] }
 0x2b5   : > { %v6256_v6 = vsel %vm2340_vm4, %v7774_v63, %v7773_v1  ;;  %v6263_v12 = vrot.slane %v7775_v15, %v2403_v62  ;;  %v1840_v58 = vmul.f32 %v7704_v20, %v7776_v56  ;;  %v6269_v8 = vsel %vm6229_vm11, %v1236_v45, 0.0  ;;  %v7781_v1 = vld [vmem:[#allocation76_spill] sm:$0xff] }
 0x2b6   : > { %7772 = vst [vmem:[#allocation177_spill] sm:$0xff] %v6247_v34  ;;  %7777 = vst [vmem:[#allocation38_spill] sm:$0xff] %v6269_v8  ;;  %v1211_v29 = vadd.f32 1.0, %v1163_v22  ;;  %v2264_v37 = vadd.f32 %v2248_v42, %v2228_v24  ;;  %v6272_v63 = vmul.f32 %v6209_v50, %v2342_v16  ;;  %v6275_v53 = vmul.f32 %v6209_v50, %v2343_v11  ;;  %v7782_v34 = vld [vmem:[#allocation198_spill] sm:$0xff] }
 0x2b7   : > { %v6279_v52 = vmul.f32 %v6209_v50, %v6240_v17  ;;  %v2441_v51 = vmul.f32 %v6242_v30, %v2342_v16  ;;  %v1748_v15 = vadd.f32 %v7781_v1, %v1712_v32  ;;  %v2168_v5 = vadd.f32 %v7782_v34, %v2047_v25 }
 0x2b8   : > { %7778 = vst [vmem:[#allocation114_spill] sm:$0xff] %v6272_v63  ;;  %7779 = vst [vmem:[#allocation50_spill] sm:$0xff] %v6275_v53  ;;  %v1235_v45 = vmul.f32 %v1211_v29, %v5918_v26  ;;  %v2300_v22 = vadd.f32 %v2284_v28, %v2264_v37  ;;  %v6286_v42 = vmul.f32 %v6242_v30, %v2343_v11  ;;  %v1364_v24 = vrot.slane %v6269_v8, 6  ;;  %v7787_v37 = vld [vmem:[#allocation201_spill] sm:$0xff] }
 0x2b9   : > { %7780 = vst [vmem:[#allocation180_spill] sm:$0xff] %v6279_v52  ;;  %v2477_v53 = vmul.f32 %v6260_v46, %v2343_v11  ;;  %v2513_v61 = vmul.f32 %v6263_v12, %v6240_v17  ;;  %v7784_v52 = vld [vmem:[#allocation89_spill] sm:$0xff]  ;;  %v1629_v16 = vrot.slane %v6269_v8, 7  ;;  %v6296_v25 = vmul.f32 %v7588_v23, %v6269_v8 }
 0x2ba   : > { %7783 = vst [vmem:[#allocation178_spill] sm:$0xff] %v6286_v42  ;;  %v1784_v48 = vadd.f32 %v7784_v52, %v1748_v15  ;;  %v6300_v26 = vsel %vm6229_vm11, %v1235_v45, 0.0  ;;  %v2421_v28 = vadd.f32 %v2405_v60, %v2300_v22  ;;  %v2074_v34 = vrot.slane %v6269_v8, 1 }
 0x2bb   : > { %7785 = vst [vmem:[#allocation105_spill] sm:$0xff] %v6296_v25  ;;  %7786 = vst [vmem:[#allocation183_spill] sm:$0xff] %v6300_v26  ;;  %v1352_v11 = vrot.slane %v6300_v26, 6  ;;  %v1617_v32 = vrot.slane %v6300_v26, 7  ;;  %v6306_v29 = vrot.slane %v6040_v18, %v2403_v62  ;;  %v6309_v52 = vadd.f32 %v7787_v37, %v2168_v5  ;;  %v7793_v62 = vld [vmem:[#allocation107_spill] sm:$0xff] }
 0x2bc   : > { %v2457_v1 = vadd.f32 %v2441_v51, %v2421_v28  ;;  %v7789_v15 = vrot.slane %v7708_v36, 1  ;;  %v7790_v59 = vrot.slane %v7712_v40, 1  ;;  %v7791_v45 = vrot.slane %v7705_v9, 1  ;;  %v7794_v28 = vld [vmem:[#allocation90_spill] sm:$0xff] }
 0x2bd   : > { %7788 = vst [vmem:[#allocation182_spill] sm:$0xff] %v6309_v52  ;;  %v7792_v22 = vrot.slane %v7713_v39, 1  ;;  %v1377_v18 = vsel %vm1365_vm12, %v1352_v11, %v1364_v24  ;;  %v1389_v5 = vsel %vm1365_vm12, %v1364_v24, %v1352_v11  ;;  %v1820_v51 = vadd.f32 %v7793_v62, %v1784_v48 }
 0x2be   : > { %v2091_v60 = vsel %vm2075_vm14, %v7790_v59, %v7789_v15  ;;  %v6331_v52 = vsel %vm2105_vm3, %v7794_v28, 0.0  ;;  %v1424_v59 = vsel %vm1392_vm1, %v1389_v5, 0.0  ;;  %v1654_v48 = vsel %vm1630_vm13, %v1629_v16, %v1617_v32  ;;  %v7799_v15 = vld [vmem:[#allocation170_spill] sm:$0xff] }
 0x2bf   : > { %v2092_v25 = vsel %vm2075_vm14, %v7792_v22, %v7791_v45  ;;  %v1589_v45 = vmul.f32 %v7707_v4, %v1377_v18  ;;  %v2020_v22 = vmul.f32 %v7588_v23, %v7713_v39  ;;  %v1588_v42 = vmul.f32 %v7707_v4, %v1424_v59 }
 0x2c0   : > { %v2549_v24 = vmul.f32 %v6306_v29, %v6256_v6  ;;  %v6346_v11 = vsel %vm2105_vm3, %v2091_v60, 0.0  ;;  %v2493_v5 = vadd.f32 %v2477_v53, %v2457_v1  ;;  %v6351_v18 = vsel %vm2105_vm3, %v2092_v25, 0.0 }
 0x2c1   : > { %v1605_v27 = vadd.f32 %v1589_v45, %v6158_v43  ;;  %v6355_v4 = vmul.f32 %v6038_v7, %v6331_v52  ;;  %v1604_v62 = vadd.f32 %v1588_v42, %v6142_v49  ;;  %v1642_v28 = vsel %vm1630_vm13, %v1617_v32, %v1629_v16 }
 0x2c2   : > { %v2062_v59 = vrot.slane %v6300_v26, 1  ;;  %v1856_v60 = vadd.f32 %v1840_v58, %v1820_v51  ;;  %v1689_v43 = vsel %vm1657_vm2, %v1654_v48, 0.0  ;;  %v2529_v1 = vadd.f32 %v2513_v61, %v2493_v5  ;;  %v7796_v58 = vld [vmem:[#allocation61_spill] sm:$0xff]  ;;  %v7797_v51 = vld [vmem:[#allocation176_spill] sm:$0xff] }
 0x2c3   : > { %v1726_v53 = vadd.f32 %v5951_v14, %v1605_v27  ;;  %v6366_v25 = vmul.f32 %v7733_v54, %v6346_v11  ;;  %v1725_v45 = vadd.f32 %v5947_v19, %v1604_v62  ;;  %v6371_v49 = vmul.f32 %v7588_v23, %v6300_v26  ;;  %v7798_v62 = vld [vmem:[#allocation71_spill] sm:$0xff]  ;;  %v7831_v26 = vld [vmem:[#allocation54_spill] sm:$0xff] }
 0x2c4   : > { %v1892_v14 = vadd.f32 %v7796_v58, %v1856_v60  ;;  %v1854_v16 = vmul.f32 %v7704_v20, %v1642_v28  ;;  %v2565_v32 = vadd.f32 %v2549_v24, %v2529_v1  ;;  %v6384_v19 = vmul.f32 %v6044_v57, %v6351_v18  ;;  %v7803_v58 = vld [vmem:[#allocation82_spill] sm:$0xff] }
 0x2c5   : > { %v1762_v61 = vadd.f32 %v5960_v10, %v1726_v53  ;;  %v1761_v48 = vadd.f32 %v7797_v51, %v1725_v45  ;;  %v1853_v27 = vmul.f32 %v7704_v20, %v1689_v43  ;;  %v2087_v5 = vsel %vm2075_vm14, %v2062_v59, %v2074_v34  ;;  %v7802_v43 = vld [vmem:[#allocation159_spill] sm:$0xff] }
 0x2c6   : > { %v1928_v42 = vadd.f32 %v7798_v62, %v1892_v14  ;;  %v2099_v10 = vsel %vm2075_vm14, %v2074_v34, %v2062_v59  ;;  %v2588_v24 = vadd.f32 %v6377_v31, %v2565_v32  ;;  %v7800_v28 = vrot.slane %v7761_v55, 2 }
 0x2c7   : > { %v1798_v60 = vadd.f32 %v7799_v15, %v1762_v61  ;;  %v7801_v53 = vrot.slane %v7759_v47, 2  ;;  %v1797_v45 = vadd.f32 %v7802_v43, %v1761_v48  ;;  %v7804_v14 = vrot.slane %v7717_v38, 2 }
 0x2c8   : > { %v1964_v51 = vadd.f32 %v7803_v58, %v1928_v42  ;;  %v7805_v15 = vrot.slane %v7715_v33, 2  ;;  %v7806_v59 = vrot.slane %v7708_v36, 2  ;;  %v7807_v55 = vrot.slane %v7712_v40, 2 }
 0x2c9   : > { %v2354_v1 = vsel %vm2340_vm4, %v7801_v53, %v7800_v28  ;;  %v1834_v61 = vadd.f32 %v6115_v2, %v1798_v60  ;;  %v2604_v32 = vmul.f32 %v2588_v24, %v7717_v38  ;;  %v7808_v42 = vrot.slane %v7705_v9, 2  ;;  %v7810_v28 = vld [vmem:[#allocation127_spill] sm:$0xff]  ;;  %v7833_v9 = vld [vmem:[#allocation128_spill] sm:$0xff] }
 0x2ca   : > { %v2355_v34 = vsel %vm2340_vm4, %v7805_v15, %v7804_v14  ;;  %v2356_v47 = vsel %vm2340_vm4, %v7807_v55, %v7806_v59  ;;  %v7809_v48 = vrot.slane %v7713_v39, 2  ;;  %v7811_v53 = vld [vmem:[#allocation55_spill] sm:$0xff]  ;;  %v1833_v58 = vadd.f32 %v6112_v35, %v1797_v45 }
 0x2cb   : > { %v1713_v43 = vadd.f32 %v7811_v53, %v7810_v28  ;;  %v6428_v14 = vsel %vm2105_vm3, %v2099_v10, 0.0  ;;  %v6431_v2 = vmul.f32 %v6044_v57, %v2087_v5  ;;  %v7814_v38 = vld [vmem:[#allocation51_spill] sm:$0xff]  ;;  %v1870_v24 = vadd.f32 %v1854_v16, %v1834_v61  ;;  %3222 = vmatprep.mubr.f32.mxu1 %v2604_v32  ;;  %v7822_v28 = vld [vmem:[#allocation129_spill] sm:$0xff] }
 0x2cc   : > { %v2357_v62 = vsel %vm2340_vm4, %v7809_v48, %v7808_v42  ;;  %7812 = vst [vmem:[#allocation65_spill] sm:$0xff] %v6428_v14  ;;  %v2000_v60 = vadd.f32 %v7814_v38, %v1964_v51  ;;  %v6436_v59 = vsel %vm2370_vm6, %v2354_v1, 0.0  ;;  %v6440_v55 = vsel %vm2370_vm6, %v2355_v34, 0.0  ;;  %v7816_v35 = vld [vmem:[#allocation87_spill] sm:$0xff]  ;;  %v7819_v51 = vld [vmem:[#allocation162_spill] sm:$0xff]  ;;  %v7820_v1 = vld [vmem:[#allocation69_spill] sm:$0xff] }
 0x2cd   : > { %7813 = vst [vmem:[#allocation200_spill] sm:$0xff] %v6431_v2  ;;  %v1749_v45 = vadd.f32 %v7816_v35, %v1713_v43  ;;  %v1869_v42 = vadd.f32 %v1853_v27, %v1833_v58  ;;  %v6445_v5 = vsel %vm2370_vm6, %v2356_v47, 0.0  ;;  %v6449_v16 = vsel %vm2370_vm6, %v2357_v62, 0.0  ;;  %v7821_v48 = vld [vmem:[#allocation103_spill] sm:$0xff]  ;;  %v7823_v27 = vld [vmem:[#allocation142_spill] sm:$0xff]  ;;  %v7824_v43 = vld [vmem:[#allocation68_spill] sm:$0xff] }
 0x2ce   : > { %v2036_v10 = vadd.f32 %v2020_v22, %v2000_v60  ;;  %7817 = vst [vmem:[#allocation203_spill] sm:$0xff] %v6445_v5  ;;  %7818 = vst [vmem:[#allocation73_spill] sm:$0xff] %v6449_v16  ;;  %v1906_v61 = vadd.f32 %v7819_v51, %v1870_v24  ;;  %v2406_v32 = vmul.f32 %v6209_v50, %v7820_v1  ;;  %v7825_v24 = vld [vmem:[#allocation44_spill] sm:$0xff]  ;;  %v7827_v1 = vld [vmem:[#allocation173_spill] sm:$0xff] }
 0x2cf   : > { %v1785_v34 = vadd.f32 %v7821_v48, %v1749_v45  ;;  %v1805_v53 = vmul.f32 %v7593_v3, %v7822_v28  ;;  %v1905_v22 = vadd.f32 %v7823_v27, %v1869_v42  ;;  %v2442_v47 = vmul.f32 %v6242_v30, %v6436_v59  ;;  %v7826_v45 = vld [vmem:[#allocation94_spill] sm:$0xff]  ;;  %v7828_v42 = vld [vmem:[#allocation80_spill] sm:$0xff]  ;;  %v7829_v27 = vld [vmem:[#allocation117_spill] sm:$0xff] }
 0x2d0   : > { %v2157_v58 = vadd.f32 %v7824_v43, %v2036_v10  ;;  %v2478_v62 = vmul.f32 %v6260_v46, %v6440_v55  ;;  %v2514_v38 = vmul.f32 %v6263_v12, %v6445_v5  ;;  %v1841_v35 = vmul.f32 %v7704_v20, %v7825_v24  ;;  %v7830_v43 = vld [vmem:[#allocation74_spill] sm:$0xff]  ;;  %v7832_v39 = vld [vmem:[#allocation135_spill] sm:$0xff] }
 0x2d1   : > { %v1821_v60 = vadd.f32 %v1805_v53, %v1785_v34  ;;  %v2056_v51 = vrot.slane %v7826_v45, 1  ;;  %v1941_v48 = vadd.f32 %v7827_v1, %v1905_v22  ;;  %v2550_v10 = vmul.f32 %v6306_v29, %v6449_v16  ;;  %v7092_v15 = vld [vmem:[%s7195_s6] ss:$0 sm:$0xff] }
 0x2d2   : > { %v2193_v28 = vadd.f32 %v7828_v42, %v2157_v58  ;;  %v1714_v14 = vadd.f32 %v7830_v43, %v7829_v27  ;;  %v1942_v8 = vadd.f32 %v7831_v26, %v1906_v61  ;;  %v2068_v34 = vrot.slane %v7832_v39, 1  ;;  %v7834_v58 = vld [vmem:[#allocation88_spill] sm:$0xff] }
 0x2d3   : > { %v1857_v2 = vadd.f32 %v1841_v35, %v1821_v60  ;;  %v2321_v53 = vrot.slane %v7826_v45, 2  ;;  %v1977_v40 = vadd.f32 %v7833_v9, %v1941_v48  ;;  %v2021_v22 = vmul.f32 %v7588_v23, %v7826_v45  ;;  %v7835_v42 = vld [vmem:[#allocation72_spill] sm:$0xff] }
 0x2d4   : > { %v2229_v36 = vadd.f32 %v6355_v4, %v2193_v28  ;;  %v1750_v1 = vadd.f32 %v7834_v58, %v1714_v14  ;;  %v6485_v27 = vsel %vm2075_vm14, %v2056_v51, %v2068_v34  ;;  %v2214_v26 = vmul.f32 %v6038_v7, %v6150_v21  ;;  %v7837_v60 = vld [vmem:[#allocation36_spill] sm:$0xff] }
 0x2d5   : > { %v1893_v63 = vadd.f32 %v7835_v42, %v1857_v2  ;;  %7836 = vst [vmem:[#allocation37_spill] sm:$0xff] %v6485_v27  ;;  %v2333_v61 = vrot.slane %v7832_v39, 2  ;;  %v2013_v9 = vadd.f32 %v7837_v60, %v1977_v40  ;;  %v7838_v35 = vld [vmem:[#allocation104_spill] sm:$0xff]  ;;  %v1806_v14 = vmul.f32 %v7593_v3, %v7776_v56 }
 0x2d6   : > { %v2265_v4 = vadd.f32 %v6366_v25, %v2229_v36  ;;  %v1786_v48 = vadd.f32 %v7838_v35, %v1750_v1  ;;  %v7839_v28 = vld [vmem:[#allocation188_spill] sm:$0xff]  ;;  %v2250_v42 = vmul.f32 %v7733_v54, %v6166_v13  ;;  %v2093_v56 = vsel %vm2075_vm14, %v2068_v34, %v2056_v51  ;;  %v7842_v1 = vld [vmem:[#allocation97_spill] sm:$0xff] }
 0x2d7   : > { %v1978_v2 = vadd.f32 %v7839_v28, %v1942_v8  ;;  %v7840_v43 = vld [vmem:[#allocation84_spill] sm:$0xff]  ;;  %v6501_v45 = vsel %vm2340_vm4, %v2321_v53, %v2333_v61  ;;  %v2049_v8 = vadd.f32 %v6371_v49, %v2013_v9  ;;  %v2286_v35 = vmul.f32 %v6044_v57, %v6485_v27  ;;  %v7845_v49 = vld [vmem:[#allocation169_spill] sm:$0xff] }
 0x2d8   : > { %v1929_v58 = vadd.f32 %v7840_v43, %v1893_v63  ;;  %v2301_v40 = vadd.f32 %v6384_v19, %v2265_v4  ;;  %v1822_v60 = vadd.f32 %v1806_v14, %v1786_v48  ;;  %v7841_v36 = vld [vmem:[#allocation108_spill] sm:$0xff]  ;;  %v6514_v28 = vmul.f32 %v6260_v46, %v6240_v17 }
 0x2d9   : > { %v1842_v25 = vmul.f32 %v7704_v20, %v7841_v36  ;;  %v6518_v19 = vmul.f32 %v6263_v12, %v6256_v6  ;;  %v6522_v4 = vmul.f32 %v6306_v29, %v6501_v45  ;;  %v6525_v34 = vadd.f32 %v7845_v49, %v1978_v2  ;;  %v7847_v9 = vld [vmem:[#allocation124_spill] sm:$0xff]  ;;  %v7851_v2 = vld [vmem:[#allocation206_spill] sm:$0xff] }
 0x2da   : > { %v1965_v63 = vadd.f32 %v7842_v1, %v1929_v58  ;;  %v2422_v43 = vadd.f32 %v2406_v32, %v2301_v40  ;;  %v2022_v14 = vmul.f32 %v7588_v23, %v7832_v39  ;;  %v6532_v32 = vsel %vm2105_vm3, %v2093_v56, 0.0  ;;  %v7848_v40 = vld [vmem:[#allocation70_spill] sm:$0xff]  ;;  %v7852_v39 = vld [vmem:[#allocation81_spill] sm:$0xff] }
 0x2db   : > { %7843 = vst [vmem:[#allocation85_spill] sm:$0xff] %v6518_v19  ;;  %7844 = vst [vmem:[#allocation193_spill] sm:$0xff] %v6522_v4  ;;  %v1858_v51 = vadd.f32 %v1842_v25, %v1822_v60  ;;  %v2358_v19 = vsel %vm2340_vm4, %v2333_v61, %v2321_v53  ;;  %v7849_v4 = vld [vmem:[#allocation156_spill] sm:$0xff]  ;;  %v2170_v49 = vadd.f32 %v7851_v2, %v2049_v8  ;;  %v7854_v61 = vld [vmem:[#allocation77_spill] sm:$0xff] }
 0x2dc   : > { %7846 = vst [vmem:[#allocation195_spill] sm:$0xff] %v6525_v34  ;;  %v2001_v48 = vadd.f32 %v7847_v9, %v1965_v63  ;;  %v2458_v58 = vadd.f32 %v2442_v47, %v2422_v43  ;;  %v7850_v60 = vld [vmem:[#allocation48_spill] sm:$0xff]  ;;  %v2179_v63 = vmul.f32 %v7699_v0, %v6331_v52  ;;  %v2215_v9 = vmul.f32 %v6038_v7, %v6346_v11 }
 0x2dd   : > { %v1894_v1 = vadd.f32 %v7848_v40, %v1858_v51  ;;  %v1715_v25 = vadd.f32 %v7850_v60, %v7849_v4  ;;  %v2251_v43 = vmul.f32 %v7733_v54, %v6351_v18  ;;  %v7853_v51 = vld [vmem:[#allocation101_spill] sm:$0xff]  ;;  %v2287_v8 = vmul.f32 %v6044_v57, %v6532_v32 }
 0x2de   : > { %v2037_v34 = vadd.f32 %v2021_v22, %v2001_v48  ;;  %v2494_v56 = vadd.f32 %v2478_v62, %v2458_v58  ;;  %v6553_v22 = vsel %vm2370_vm6, %v2358_v19, 0.0  ;;  %v6557_v4 = vmul.f32 %v6209_v50, %v6436_v59  ;;  %v7857_v58 = vld [vmem:[#allocation134_spill] sm:$0xff] }
 0x2df   : > { %v1930_v47 = vadd.f32 %v7852_v39, %v1894_v1  ;;  %v1751_v53 = vadd.f32 %v7853_v51, %v1715_v25  ;;  %7855 = vst [vmem:[#allocation98_spill] sm:$0xff] %v6553_v22  ;;  %v7856_v39 = vld [vmem:[#allocation93_spill] sm:$0xff]  ;;  %v1807_v60 = vmul.f32 %v7593_v3, %v7825_v24  ;;  %v6567_v19 = vmul.f32 %v6242_v30, %v6440_v55 }
 0x2e0   : > { %v2158_v40 = vadd.f32 %v7854_v61, %v2037_v34  ;;  %v2530_v62 = vadd.f32 %v2514_v38, %v2494_v56  ;;  %v7858_v34 = vld [vmem:[#allocation46_spill] sm:$0xff]  ;;  %v6571_v59 = vmul.f32 %v6260_v46, %v6445_v5  ;;  %v7859_v56 = vld [vmem:[#allocation113_spill] sm:$0xff] }
 0x2e1   : > { %v1966_v48 = vadd.f32 %v7856_v39, %v1930_v47  ;;  %v1787_v1 = vadd.f32 %v7857_v58, %v1751_v53  ;;  %v2206_v25 = vadd.f32 %v7858_v34, %v2170_v49  ;;  %v7860_v53 = vld [vmem:[#allocation125_spill] sm:$0xff]  ;;  %v6578_v49 = vmul.f32 %v6263_v12, %v6449_v16  ;;  %v7866_v34 = vld [vmem:[#allocation66_spill] sm:$0xff] }
 0x2e2   : > { %v2194_v2 = vadd.f32 %v6178_v41, %v2158_v40  ;;  %v2566_v38 = vadd.f32 %v2550_v10, %v2530_v62  ;;  %v1843_v61 = vmul.f32 %v7704_v20, %v7860_v53  ;;  %v6582_v41 = vmul.f32 %v6306_v29, %v6553_v22  ;;  %v7863_v40 = vld [vmem:[#allocation116_spill] sm:$0xff]  ;;  %v7864_v39 = vld [vmem:[#allocation57_spill] sm:$0xff]  ;;  %v7869_v22 = vld [vmem:[#allocation78_spill] sm:$0xff] }
 0x2e3   : > { %v2002_v47 = vadd.f32 %v7859_v56, %v1966_v48  ;;  %v1823_v51 = vadd.f32 %v1807_v60, %v1787_v1  ;;  %7861 = vst [vmem:[#allocation197_spill] sm:$0xff] %v6578_v49  ;;  %v1716_v58 = vadd.f32 %v7864_v39, %v7863_v40  ;;  %v7865_v1 = vld [vmem:[#allocation118_spill] sm:$0xff]  ;;  %v7870_v40 = vld [vmem:[#allocation83_spill] sm:$0xff] }
 0x2e4   : > { %v2230_v24 = vadd.f32 %v2214_v26, %v2194_v2  ;;  %7862 = vst [vmem:[#allocation196_spill] sm:$0xff] %v6582_v41  ;;  %v2589_v10 = vadd.f32 %v6377_v31, %v2566_v38  ;;  %v2023_v60 = vmul.f32 %v7588_v23, %v7865_v1  ;;  %v6590_v26 = vadd.f32 %v7866_v34, %v2206_v25  ;;  %v7868_v49 = vld [vmem:[#allocation102_spill] sm:$0xff] }
 0x2e5   : > { %v2038_v62 = vadd.f32 %v2022_v14, %v2002_v47  ;;  %v1859_v48 = vadd.f32 %v1843_v61, %v1823_v51  ;;  %v2322_v56 = vrot.slane %v7865_v1, 2  ;;  %v1752_v16 = vadd.f32 %v7868_v49, %v1716_v58  ;;  %v7871_v47 = vld [vmem:[#allocation115_spill] sm:$0xff]  ;;  %v7872_v61 = vld [vmem:[#allocation132_spill] sm:$0xff] }
 0x2e6   : > { %7867 = vst [vmem:[#allocation205_spill] sm:$0xff] %v6590_v26  ;;  %v2266_v2 = vadd.f32 %v2250_v42, %v2230_v24  ;;  %v2605_v41 = vmul.f32 %v2589_v10, %v7715_v33  ;;  %v2180_v14 = vmul.f32 %v7699_v0, %v6150_v21  ;;  %v2334_v51 = vrot.slane %v7871_v47, 2  ;;  %v7873_v49 = vld [vmem:[#allocation96_spill] sm:$0xff]  ;;  %v7874_v10 = vld [vmem:[#allocation114_spill] sm:$0xff] }
 0x2e7   : > { %v2159_v5 = vadd.f32 %v7869_v22, %v2038_v62  ;;  %v1895_v39 = vadd.f32 %v7870_v40, %v1859_v48  ;;  %v1788_v25 = vadd.f32 %v7872_v61, %v1752_v16  ;;  %v1808_v42 = vmul.f32 %v7593_v3, %v7841_v36 }
 0x2e8   : > { %v2302_v38 = vadd.f32 %v2286_v35, %v2266_v2  ;;  %3223 = vmatmul.mubr.f32.vlgmr.msra.gmra.mxu1 %v2605_v41  ;;  %v2216_v33 = vmul.f32 %v6038_v7, %v6166_v13  ;;  %v2252_v22 = vmul.f32 %v7733_v54, %v6485_v27  ;;  %v7875_v35 = vld [vmem:[#allocation192_spill] sm:$0xff]  ;;  %v6613_v16 = vsel %vm2340_vm4, %v2322_v56, %v2334_v51 }
 0x2e9   : > { %v2195_v24 = vadd.f32 %v2179_v63, %v2159_v5  ;;  %v1931_v58 = vadd.f32 %v7873_v49, %v1895_v39  ;;  %v2288_v62 = vmul.f32 %v6044_v57, %v7875_v35  ;;  %v1824_v36 = vadd.f32 %v1808_v42, %v1788_v25  ;;  %v7876_v5 = vld [vmem:[#allocation123_spill] sm:$0xff]  ;;  %v7879_v39 = vld [vmem:[#allocation178_spill] sm:$0xff] }
 0x2ea   : > { %v2423_v21 = vadd.f32 %v7874_v10, %v2302_v38  ;;  %v6618_v48 = vmul.f32 %v6242_v30, %v6240_v17  ;;  %v7877_v34 = vrot.slane %v7865_v1, 1  ;;  %v7878_v2 = vrot.slane %v7871_v47, 1  ;;  %v7880_v25 = vld [vmem:[#allocation187_spill] sm:$0xff] }
 0x2eb   : > { %v2231_v41 = vadd.f32 %v2215_v9, %v2195_v24  ;;  %v1967_v63 = vadd.f32 %v7876_v5, %v1931_v58  ;;  %v6629_v61 = vmul.f32 %v6260_v46, %v6256_v6  ;;  %v6633_v9 = vmul.f32 %v6263_v12, %v6501_v45  ;;  %v7881_v24 = vld [vmem:[#allocation145_spill] sm:$0xff] }
 0x2ec   : > { %v2094_v40 = vsel %vm2075_vm14, %v7878_v2, %v7877_v34  ;;  %v2459_v38 = vadd.f32 %v7879_v39, %v2423_v21  ;;  %v1860_v17 = vadd.f32 %v7880_v25, %v1824_v36  ;;  %v6639_v58 = vmul.f32 %v6306_v29, %v6613_v16  ;;  %v7882_v5 = vld [vmem:[#allocation33_spill] sm:$0xff]  ;;  %v7883_v39 = vld [vmem:[#allocation166_spill] sm:$0xff]  ;;  %v7884_v36 = vld [vmem:[#allocation99_spill] sm:$0xff] }
 0x2ed   : > { %v2267_v42 = vadd.f32 %v2251_v43, %v2231_v41  ;;  %v2003_v49 = vadd.f32 %v7881_v24, %v1967_v63  ;;  %v2024_v10 = vmul.f32 %v7588_v23, %v7871_v47  ;;  %v6647_v2 = vsel %vm2105_vm3, %v2094_v40, 0.0  ;;  %v7885_v25 = vld [vmem:[#allocation41_spill] sm:$0xff] }
 0x2ee   : > { %v2495_v21 = vadd.f32 %v6514_v28, %v2459_v38  ;;  %v1896_v34 = vadd.f32 %v7882_v5, %v1860_v17  ;;  %v1717_v43 = vadd.f32 %v7884_v36, %v7883_v39  ;;  %v2145_v24 = vmul.f32 %v7885_v25, %v6331_v52  ;;  %v7886_v47 = vld [vmem:[#allocation85_spill] sm:$0xff]  ;;  %v7887_v28 = vld [vmem:[#allocation92_spill] sm:$0xff]  ;;  %v7889_v39 = vld [vmem:[#allocation75_spill] sm:$0xff] }
 0x2ef   : > { %v2303_v41 = vadd.f32 %v2287_v8, %v2267_v42  ;;  %v2039_v63 = vadd.f32 %v2023_v60, %v2003_v49  ;;  %v2181_v26 = vmul.f32 %v7699_v0, %v6346_v11  ;;  %v2359_v17 = vsel %vm2340_vm4, %v2334_v51, %v2322_v56  ;;  %v7888_v40 = vld [vmem:[#allocation133_spill] sm:$0xff] }
 0x2f0   : > { %v2531_v1 = vadd.f32 %v7886_v47, %v2495_v21  ;;  %v1932_v38 = vadd.f32 %v7887_v28, %v1896_v34  ;;  %v1753_v5 = vadd.f32 %v7888_v40, %v1717_v43  ;;  %v2217_v60 = vmul.f32 %v6038_v7, %v6351_v18  ;;  %v7890_v42 = vld [vmem:[#allocation193_spill] sm:$0xff]  ;;  %v7891_v47 = vld [vmem:[#allocation112_spill] sm:$0xff]  ;;  %v7892_v34 = vld [vmem:[#allocation147_spill] sm:$0xff] }
 0x2f1   : > { %v2424_v37 = vadd.f32 %v6557_v4, %v2303_v41  ;;  %v2160_v8 = vadd.f32 %v7889_v39, %v2039_v63  ;;  %v2253_v52 = vmul.f32 %v7733_v54, %v6532_v32  ;;  %v1809_v56 = vmul.f32 %v7593_v3, %v7860_v53  ;;  %v7895_v40 = vld [vmem:[#allocation165_spill] sm:$0xff] }
 0x2f2   : > { %v2567_v49 = vadd.f32 %v7890_v42, %v2531_v1  ;;  %v1968_v21 = vadd.f32 %v7891_v47, %v1932_v38  ;;  %v1789_v36 = vadd.f32 %v7892_v34, %v1753_v5  ;;  %v2289_v43 = vmul.f32 %v6044_v57, %v6647_v2  ;;  %v7894_v1 = vld [vmem:[#allocation139_spill] sm:$0xff]  ;;  %v7898_v47 = vld [vmem:[#allocation73_spill] sm:$0xff] }
 0x2f3   : > { %v2460_v51 = vadd.f32 %v6567_v19, %v2424_v37  ;;  %v2196_v4 = vadd.f32 %v2180_v14, %v2160_v8  ;;  %v6676_v41 = vsel %vm2370_vm6, %v2359_v17, 0.0  ;;  %v1845_v5 = vmul.f32 %v7704_v20, %v7895_v40  ;;  %v7896_v19 = vld [vmem:[#allocation203_spill] sm:$0xff]  ;;  %v7897_v8 = vld [vmem:[#allocation86_spill] sm:$0xff]  ;;  %v7899_v34 = vld [vmem:[#allocation197_spill] sm:$0xff] }
 0x2f4   : > { %7893 = vst [vmem:[#allocation67_spill] sm:$0xff] %v6676_v41  ;;  %v2590_v63 = vadd.f32 %v6377_v31, %v2567_v49  ;;  %v2004_v28 = vadd.f32 %v7894_v1, %v1968_v21  ;;  %v1825_v38 = vadd.f32 %v1809_v56, %v1789_v36  ;;  %v2410_v37 = vmul.f32 %v6209_v50, %v6440_v55  ;;  %v7900_v1 = vld [vmem:[#allocation98_spill] sm:$0xff] }
 0x2f5   : > { %v2496_v53 = vadd.f32 %v6571_v59, %v2460_v51  ;;  %v2232_v39 = vadd.f32 %v2216_v33, %v2196_v4  ;;  %v2446_v14 = vmul.f32 %v6242_v30, %v7896_v19  ;;  %v6690_v49 = vmul.f32 %v6260_v46, %v7898_v47  ;;  %v7903_v51 = vld [vmem:[#allocation95_spill] sm:$0xff] }
 0x2f6   : > { %v2606_v17 = vmul.f32 %v2590_v63, %v7897_v8  ;;  %v2040_v42 = vadd.f32 %v2024_v10, %v2004_v28  ;;  %v1861_v21 = vadd.f32 %v1845_v5, %v1825_v38  ;;  %v6695_v59 = vmul.f32 %v6263_v12, %v7900_v1  ;;  %v7904_v4 = vld [vmem:[#allocation119_spill] sm:$0xff]  ;;  %v7905_v28 = vld [vmem:[#allocation164_spill] sm:$0xff] }
 0x2f7   : > { %v2532_v36 = vadd.f32 %v7899_v34, %v2496_v53  ;;  %v2268_v56 = vadd.f32 %v2252_v22, %v2232_v39  ;;  %v6699_v55 = vmul.f32 %v6306_v29, %v6676_v41  ;;  %v2323_v63 = vrot.slane %v7904_v4, 2  ;;  %v7906_v8 = vld [vmem:[#allocation100_spill] sm:$0xff] }
 0x2f8   : > { %7901 = vst [vmem:[#allocation60_spill] sm:$0xff] %v6695_v59  ;;  %3225 = vmatprep.mubr.f32.mxu1 %v2606_v17  ;;  %v2161_v33 = vadd.f32 %v2145_v24, %v2040_v42  ;;  %v1897_v10 = vadd.f32 %v7903_v51, %v1861_v21  ;;  %v1718_v38 = vadd.f32 %v7906_v8, %v7905_v28  ;;  %v7907_v5 = vld [vmem:[#allocation196_spill] sm:$0xff]  ;;  %v7909_v24 = vld [vmem:[#allocation155_spill] sm:$0xff]  ;;  %v7910_v21 = vld [vmem:[#allocation130_spill] sm:$0xff] }
 0x2f9   : > { %7902 = vst [vmem:[#allocation59_spill] sm:$0xff] %v6699_v55  ;;  %v2568_v53 = vadd.f32 %v7907_v5, %v2532_v36  ;;  %v2304_v22 = vadd.f32 %v2288_v62, %v2268_v56  ;;  %v2025_v39 = vmul.f32 %v7588_v23, %v7904_v4  ;;  %v2182_v34 = vmul.f32 %v7699_v0, %v6166_v13  ;;  %v7908_v55 = vld [vmem:[#allocation121_spill] sm:$0xff]  ;;  %v7911_v59 = vld [vmem:[#allocation50_spill] sm:$0xff]  ;;  %v7912_v8 = vld [vmem:[#allocation144_spill] sm:$0xff] }
 0x2fa   : > { %v2197_v41 = vadd.f32 %v2181_v26, %v2161_v33  ;;  %v1933_v17 = vadd.f32 %v7908_v55, %v1897_v10  ;;  %v2335_v42 = vrot.slane %v7909_v24, 2  ;;  %v1754_v51 = vadd.f32 %v7910_v21, %v1718_v38  ;;  %v7913_v55 = vld [vmem:[#allocation148_spill] sm:$0xff]  ;;  %v7914_v10 = vld [vmem:[#allocation58_spill] sm:$0xff] }
 0x2fb   : > { %v2591_v1 = vadd.f32 %v6377_v31, %v2568_v53  ;;  %v2425_v28 = vadd.f32 %v7911_v59, %v2304_v22  ;;  %v2218_v62 = vmul.f32 %v6038_v7, %v6485_v27  ;;  %v2254_v36 = vmul.f32 %v7733_v54, %v7875_v35  ;;  %v7915_v59 = vld [vmem:[#allocation194_spill] sm:$0xff] }
 0x2fc   : > { %v2233_v56 = vadd.f32 %v2217_v60, %v2197_v41  ;;  %v1969_v5 = vadd.f32 %v7912_v8, %v1933_v17  ;;  %v6722_v26 = vsel %vm2340_vm4, %v2323_v63, %v2335_v42  ;;  %v1790_v33 = vadd.f32 %v7913_v55, %v1754_v51  ;;  %v7916_v41 = vld [vmem:[#allocation153_spill] sm:$0xff]  ;;  %v7918_v27 = vld [vmem:[#allocation146_spill] sm:$0xff] }
 0x2fd   : > { %v2607_v38 = vmul.f32 %v2591_v1, %v7914_v10  ;;  %v2461_v53 = vadd.f32 %v6618_v48, %v2425_v28  ;;  %v2290_v22 = vmul.f32 %v6044_v57, %v7915_v59  ;;  %v6731_v21 = vmul.f32 %v6242_v30, %v6256_v6  ;;  %v7917_v8 = vld [vmem:[#allocation185_spill] sm:$0xff] }
 0x2fe   : > { %v2269_v60 = vadd.f32 %v2253_v52, %v2233_v56  ;;  %v2005_v17 = vadd.f32 %v7916_v41, %v1969_v5  ;;  %v1826_v35 = vadd.f32 %v7917_v8, %v1790_v33  ;;  %v1846_v13 = vmul.f32 %v7704_v20, %v7918_v27 }
 0x2ff   : > { %3226 = vmatmul.mubr.f32.gmra.mxu1 %v2607_v38  ;;  %v2497_v1 = vadd.f32 %v6629_v61, %v2461_v53  ;;  %v6740_v48 = vmul.f32 %v6260_v46, %v6501_v45  ;;  %v6744_v51 = vmul.f32 %v6263_v12, %v6613_v16  ;;  %v6748_v52 = vmul.f32 %v6306_v29, %v6722_v26  ;;  %v7921_v38 = vld [vmem:[#allocation140_spill] sm:$0xff]  ;;  %v7922_v53 = vld [vmem:[#allocation154_spill] sm:$0xff] }
 0x300   : > { %v2305_v28 = vadd.f32 %v2289_v43, %v2269_v60  ;;  %v2041_v56 = vadd.f32 %v2025_v39, %v2005_v17  ;;  %v1862_v5 = vadd.f32 %v1846_v13, %v1826_v35  ;;  %v7919_v20 = vrot.slane %v7904_v4, 1  ;;  %v7923_v13 = vld [vmem:[#allocation56_spill] sm:$0xff]  ;;  %v7924_v60 = vld [vmem:[#allocation91_spill] sm:$0xff] }
 0x301   : > { %v7920_v27 = vrot.slane %v7909_v24, 1  ;;  %v2533_v55 = vadd.f32 %v6633_v9, %v2497_v1  ;;  %v2026_v33 = vmul.f32 %v7588_v23, %v7909_v24  ;;  %v2360_v10 = vsel %vm2340_vm4, %v2335_v42, %v2323_v63  ;;  %v7945_v24 = vld [vmem:[#allocation175_spill] sm:$0xff] }
 0x302   : > { %v1791_v43 = vadd.f32 %v7922_v53, %v7921_v38  ;;  %v2426_v39 = vadd.f32 %v2410_v37, %v2305_v28  ;;  %v2162_v35 = vadd.f32 %v7923_v13, %v2041_v56  ;;  %v1898_v41 = vadd.f32 %v7924_v60, %v1862_v5  ;;  %v7926_v28 = vld [vmem:[#allocation111_spill] sm:$0xff]  ;;  %v7930_v38 = vld [vmem:[#allocation110_spill] sm:$0xff] }
 0x303   : > { %v2095_v61 = vsel %vm2075_vm14, %v7920_v27, %v7919_v20  ;;  %v1811_v17 = vmul.f32 %v7593_v3, %v7895_v40  ;;  %v2569_v8 = vadd.f32 %v6639_v58, %v2533_v55  ;;  %v2147_v23 = vmul.f32 %v7885_v25, %v6346_v11 }
 0x304   : > { %v6770_v1 = vsel %vm2105_vm3, %v2095_v61, 0.0  ;;  %v2183_v63 = vmul.f32 %v7699_v0, %v6351_v18  ;;  %v2462_v37 = vadd.f32 %v2446_v14, %v2426_v39  ;;  %v2198_v42 = vadd.f32 %v2182_v34, %v2162_v35  ;;  %v7928_v14 = vld [vmem:[#allocation138_spill] sm:$0xff]  ;;  %v7929_v61 = vld [vmem:[#allocation53_spill] sm:$0xff] }
 0x305   : > { %v1934_v56 = vadd.f32 %v7926_v28, %v1898_v41  ;;  %v1827_v5 = vadd.f32 %v1811_v17, %v1791_v43  ;;  %v2592_v20 = vadd.f32 %v6377_v31, %v2569_v8  ;;  %v2219_v3 = vmul.f32 %v6038_v7, %v6532_v32  ;;  %v7933_v41 = vld [vmem:[#allocation120_spill] sm:$0xff]  ;;  %v7934_v8 = vld [vmem:[#allocation98_spill] sm:$0xff] }
 0x306   : > { %v2255_v58 = vmul.f32 %v7733_v54, %v6647_v2  ;;  %v6784_v40 = vsel %vm2370_vm6, %v2360_v10, 0.0  ;;  %v2498_v11 = vadd.f32 %v6690_v49, %v2462_v37  ;;  %v2234_v27 = vadd.f32 %v2218_v62, %v2198_v42  ;;  %v7931_v10 = vld [vmem:[#allocation60_spill] sm:$0xff]  ;;  %v7932_v62 = vld [vmem:[#allocation151_spill] sm:$0xff] }
 0x307   : > { %7927 = vst [vmem:[#allocation202_spill] sm:$0xff] %v6784_v40  ;;  %v1970_v34 = vadd.f32 %v7928_v14, %v1934_v56  ;;  %v1863_v55 = vadd.f32 %v7929_v61, %v1827_v5  ;;  %v2608_v53 = vmul.f32 %v2592_v20, %v7930_v38  ;;  %v2291_v43 = vmul.f32 %v6044_v57, %v6770_v1  ;;  %v7935_v42 = vld [vmem:[#allocation67_spill] sm:$0xff]  ;;  %v7938_v56 = vld [vmem:[#allocation184_spill] sm:$0xff]  ;;  %v7939_v5 = vld [vmem:[#allocation186_spill] sm:$0xff] }
 0x308   : > { %v2412_v39 = vmul.f32 %v6209_v50, %v7896_v19  ;;  %v6796_v13 = vmul.f32 %v6242_v30, %v7898_v47  ;;  %v2534_v35 = vadd.f32 %v7931_v10, %v2498_v11  ;;  %v2270_v49 = vadd.f32 %v2254_v36, %v2234_v27  ;;  %v7940_v20 = vld [vmem:[#allocation59_spill] sm:$0xff] }
 0x309   : > { %v2006_v60 = vadd.f32 %v7932_v62, %v1970_v34  ;;  %v1899_v17 = vadd.f32 %v7933_v41, %v1863_v55  ;;  %3228 = vmatprep.mubr.f32.mxu1 %v2608_v53  ;;  %v6803_v37 = vmul.f32 %v6260_v46, %v7934_v8  ;;  %v6807_v28 = vmul.f32 %v6263_v12, %v7935_v42  ;;  %v7941_v34 = vld [vmem:[#allocation143_spill] sm:$0xff]  ;;  %v7942_v55 = vld [vmem:[#allocation45_spill] sm:$0xff]  ;;  %v7951_v42 = vld [vmem:[#allocation106_spill] sm:$0xff] }
 0x30a   : > { %v6811_v19 = vmul.f32 %v6306_v29, %v6784_v40  ;;  %v1828_v36 = vadd.f32 %v7939_v5, %v7938_v56  ;;  %v2570_v11 = vadd.f32 %v7940_v20, %v2534_v35  ;;  %v2306_v27 = vadd.f32 %v2290_v22, %v2270_v49  ;;  %v7943_v53 = vld [vmem:[#allocation37_spill] sm:$0xff]  ;;  %v7944_v62 = vld [vmem:[#allocation167_spill] sm:$0xff]  ;;  %v7947_v35 = vld [vmem:[#allocation152_spill] sm:$0xff] }
 0x30b   : > { %7936 = vst [vmem:[#allocation79_spill] sm:$0xff] %v6807_v28  ;;  %v2042_v14 = vadd.f32 %v2026_v33, %v2006_v60  ;;  %v1935_v61 = vadd.f32 %v7941_v34, %v1899_v17  ;;  %v2148_v38 = vmul.f32 %v7885_v25, %v7942_v55  ;;  %v2184_v10 = vmul.f32 %v7699_v0, %v7943_v53  ;;  %v7948_v33 = vld [vmem:[#allocation192_spill] sm:$0xff]  ;;  %v7949_v17 = vld [vmem:[#allocation163_spill] sm:$0xff]  ;;  %v7950_v34 = vld [vmem:[#allocation109_spill] sm:$0xff] }
 0x30c   : > { %7937 = vst [vmem:[#allocation62_spill] sm:$0xff] %v6811_v19  ;;  %v2324_v41 = vrot.slane %v7944_v62, 2  ;;  %v1864_v4 = vadd.f32 %v7945_v24, %v1828_v36  ;;  %v2593_v40 = vadd.f32 %v6377_v31, %v2570_v11  ;;  %v7946_v19 = vld [vmem:[#allocation180_spill] sm:$0xff]  ;;  %v2220_v49 = vmul.f32 %v6038_v7, %v7948_v33  ;;  %v7952_v11 = vld [vmem:[#allocation161_spill] sm:$0xff] }
 0x30d   : > { %v2427_v56 = vadd.f32 %v7946_v19, %v2306_v27  ;;  %v2163_v5 = vadd.f32 %v2147_v23, %v2042_v14  ;;  %v1971_v22 = vadd.f32 %v7947_v35, %v1935_v61  ;;  %v2256_v60 = vmul.f32 %v7733_v54, %v7915_v59  ;;  %v7953_v23 = vld [vmem:[#allocation126_spill] sm:$0xff]  ;;  %v7954_v35 = vld [vmem:[#allocation137_spill] sm:$0xff] }
 0x30e   : > { %v2336_v20 = vrot.slane %v7949_v17, 2  ;;  %v1900_v55 = vadd.f32 %v7950_v34, %v1864_v4  ;;  %v2609_v28 = vmul.f32 %v2593_v40, %v7951_v42  ;;  %v2292_v27 = vmul.f32 %v6044_v57, %v7953_v23 }
 0x30f   : > { %v2463_v24 = vadd.f32 %v6731_v21, %v2427_v56  ;;  %v2199_v36 = vadd.f32 %v2183_v63, %v2163_v5  ;;  %v2007_v19 = vadd.f32 %v7952_v11, %v1971_v22  ;;  %v2413_v61 = vmul.f32 %v6209_v50, %v6256_v6  ;;  %v7955_v21 = vld [vmem:[#allocation174_spill] sm:$0xff] }
 0x310   : > { %v6839_v14 = vsel %vm2340_vm4, %v2324_v41, %v2336_v20  ;;  %v1936_v8 = vadd.f32 %v7954_v35, %v1900_v55  ;;  %3229 = vmatmul.mubr.f32.gmra.mxu1 %v2609_v28  ;;  %v7956_v42 = vrot.slane %v7944_v62, 1  ;;  %v7957_v56 = vrot.slane %v7949_v17, 1  ;;  %v7959_v11 = vld [vmem:[#allocation158_spill] sm:$0xff] }
 0x311   : > { %v2499_v4 = vadd.f32 %v6740_v48, %v2463_v24  ;;  %v2235_v40 = vadd.f32 %v2219_v3, %v2199_v36  ;;  %v2043_v63 = vadd.f32 %v7955_v21, %v2007_v19  ;;  %v2449_v22 = vmul.f32 %v6242_v30, %v6501_v45  ;;  %v7958_v48 = vld [vmem:[#allocation150_spill] sm:$0xff] }
 0x312   : > { %v2096_v5 = vsel %vm2075_vm14, %v7957_v56, %v7956_v42  ;;  %v2485_v6 = vmul.f32 %v6260_v46, %v6613_v16  ;;  %v6858_v28 = vmul.f32 %v6263_v12, %v6722_v26  ;;  %v1972_v3 = vadd.f32 %v7958_v48, %v1936_v8  ;;  %v7961_v56 = vld [vmem:[#allocation43_spill] sm:$0xff] }
 0x313   : > { %v2535_v34 = vadd.f32 %v6744_v51, %v2499_v4  ;;  %v2271_v55 = vadd.f32 %v2255_v58, %v2235_v40  ;;  %v2164_v24 = vadd.f32 %v2148_v38, %v2043_v63  ;;  %v6864_v36 = vmul.f32 %v6306_v29, %v6839_v14  ;;  %v7960_v40 = vld [vmem:[#allocation32_spill] sm:$0xff] }
 0x314   : > { %v2008_v19 = vadd.f32 %v7959_v11, %v1972_v3  ;;  %v6869_v35 = vsel %vm2105_vm3, %v2096_v5, 0.0  ;;  %v2149_v21 = vmul.f32 %v7885_v25, %v6351_v18  ;;  %v2150_v8 = vmul.f32 %v7885_v25, %v7943_v53 }
 0x315   : > { %v2571_v51 = vadd.f32 %v6748_v52, %v2535_v34  ;;  %v2307_v58 = vadd.f32 %v2291_v43, %v2271_v55  ;;  %v2200_v38 = vadd.f32 %v2184_v10, %v2164_v24  ;;  %v2185_v4 = vmul.f32 %v7699_v0, %v6532_v32  ;;  %v7962_v24 = vld [vmem:[#allocation94_spill] sm:$0xff] }
 0x316   : > { %v2044_v63 = vadd.f32 %v7960_v40, %v2008_v19  ;;  %v2221_v42 = vmul.f32 %v6038_v7, %v6647_v2  ;;  %v2166_v5 = vadd.f32 %v2150_v8, %v7961_v56  ;;  %v2186_v18 = vmul.f32 %v7699_v0, %v7948_v33  ;;  %v7966_v56 = vld [vmem:[#allocation181_spill] sm:$0xff] }
 0x317   : > { %v2594_v48 = vadd.f32 %v6377_v31, %v2571_v51  ;;  %v2428_v53 = vadd.f32 %v2412_v39, %v2307_v58  ;;  %v2236_v3 = vadd.f32 %v2220_v49, %v2200_v38  ;;  %v2361_v52 = vsel %vm2340_vm4, %v2336_v20, %v2324_v41 }
 0x318   : > { %v2165_v43 = vadd.f32 %v2149_v21, %v2044_v63  ;;  %v2257_v10 = vmul.f32 %v7733_v54, %v6770_v1  ;;  %v2202_v34 = vadd.f32 %v2186_v18, %v2166_v5  ;;  %v2222_v55 = vmul.f32 %v6038_v7, %v7915_v59  ;;  %v7965_v63 = vld [vmem:[#allocation160_spill] sm:$0xff]  ;;  %v7967_v18 = vld [vmem:[#allocation79_spill] sm:$0xff] }
 0x319   : > { %v2610_v11 = vmul.f32 %v2594_v48, %v7962_v24  ;;  %v2464_v19 = vadd.f32 %v6796_v13, %v2428_v53  ;;  %v2272_v33 = vadd.f32 %v2256_v60, %v2236_v3  ;;  %v2293_v39 = vmul.f32 %v6044_v57, %v6869_v35  ;;  %v7963_v60 = vld [vmem:[#allocation98_spill] sm:$0xff]  ;;  %v7968_v3 = vld [vmem:[#allocation67_spill] sm:$0xff] }
 0x31a   : > { %v2201_v49 = vadd.f32 %v2185_v4, %v2165_v43  ;;  %v6897_v41 = vsel %vm2370_vm6, %v2361_v52, 0.0  ;;  %v2238_v20 = vadd.f32 %v2222_v55, %v2202_v34  ;;  %v2258_v21 = vmul.f32 %v7733_v54, %v7953_v23  ;;  %v7964_v4 = vld [vmem:[#allocation204_spill] sm:$0xff]  ;;  %v7970_v34 = vld [vmem:[#allocation141_spill] sm:$0xff]  ;;  %v7971_v24 = vld [vmem:[#allocation62_spill] sm:$0xff] }
 0x31b   : > { %3231 = vmatprep.mubr.f32.mxu1 %v2610_v11  ;;  %v2500_v59 = vadd.f32 %v6803_v37, %v2464_v19  ;;  %v2308_v8 = vadd.f32 %v2292_v27, %v2272_v33  ;;  %v2414_v13 = vmul.f32 %v6209_v50, %v7898_v47  ;;  %v2450_v51 = vmul.f32 %v6242_v30, %v7963_v60  ;;  %v7969_v27 = vld [vmem:[#allocation191_spill] sm:$0xff]  ;;  %v7972_v33 = vld [vmem:[#allocation202_spill] sm:$0xff] }
 0x31c   : > { %v2237_v58 = vadd.f32 %v2221_v42, %v2201_v49  ;;  %v2274_v38 = vadd.f32 %v2258_v21, %v2238_v20  ;;  %v2294_v40 = vmul.f32 %v6044_v57, %v7964_v4  ;;  %v1794_v5 = vadd.f32 %v7966_v56, %v7965_v63  ;;  %v7973_v20 = vld [vmem:[#allocation179_spill] sm:$0xff] }
 0x31d   : > { %v2536_v48 = vadd.f32 %v7967_v18, %v2500_v59  ;;  %v2429_v53 = vadd.f32 %v2413_v61, %v2308_v8  ;;  %v2486_v37 = vmul.f32 %v6260_v46, %v7968_v3  ;;  %v2325_v52 = vrot.slane %v7969_v27, 2 }
 0x31e   : > { %v2273_v47 = vadd.f32 %v2257_v10, %v2237_v58  ;;  %v2310_v43 = vadd.f32 %v2294_v40, %v2274_v38  ;;  %v2415_v42 = vmul.f32 %v6209_v50, %v6501_v45  ;;  %v1830_v55 = vadd.f32 %v7970_v34, %v1794_v5  ;;  %v7974_v10 = vld [vmem:[#allocation39_spill] sm:$0xff]  ;;  %v7975_v5 = vld [vmem:[#allocation136_spill] sm:$0xff] }
 0x31f   : > { %v2572_v11 = vadd.f32 %v7971_v24, %v2536_v48  ;;  %v2465_v19 = vadd.f32 %v2449_v22, %v2429_v53  ;;  %v2522_v49 = vmul.f32 %v6263_v12, %v7972_v33  ;;  %v2337_v61 = vrot.slane %v7973_v20, 2 }
 0x320   : > { %v2309_v21 = vadd.f32 %v2293_v39, %v2273_v47  ;;  %v2431_v59 = vadd.f32 %v2415_v42, %v2310_v43  ;;  %v2451_v8 = vmul.f32 %v6242_v30, %v6613_v16  ;;  %v1866_v58 = vadd.f32 %v7974_v10, %v1830_v55  ;;  %v7978_v47 = vld [vmem:[#allocation135_spill] sm:$0xff] }
 0x321   : > { %v2595_v38 = vadd.f32 %v6377_v31, %v2572_v11  ;;  %v2501_v45 = vadd.f32 %v2485_v6, %v2465_v19  ;;  %v6927_v40 = vsel %vm2340_vm4, %v2325_v52, %v2337_v61  ;;  %v2487_v22 = vmul.f32 %v6260_v46, %v6722_v26  ;;  %v7979_v11 = vld [vmem:[#allocation149_spill] sm:$0xff] }
 0x322   : > { %v2430_v63 = vadd.f32 %v2414_v13, %v2309_v21  ;;  %v2467_v56 = vadd.f32 %v2451_v8, %v2431_v59  ;;  %v1902_v39 = vadd.f32 %v7975_v5, %v1866_v58  ;;  %v7976_v18 = vrot.slane %v7969_v27, 1  ;;  %v7980_v58 = vld [vmem:[#allocation157_spill] sm:$0xff] }
 0x323   : > { %v7977_v48 = vrot.slane %v7973_v20, 1  ;;  %v2611_v6 = vmul.f32 %v2595_v38, %v7978_v47  ;;  %v2537_v43 = vadd.f32 %v6858_v28, %v2501_v45  ;;  %v2558_v42 = vmul.f32 %v6306_v29, %v6897_v41 }
 0x324   : > { %v2523_v13 = vmul.f32 %v6263_v12, %v6839_v14  ;;  %v2466_v34 = vadd.f32 %v2450_v51, %v2430_v63  ;;  %v2503_v55 = vadd.f32 %v2487_v22, %v2467_v56  ;;  %v2559_v24 = vmul.f32 %v6306_v29, %v6927_v40  ;;  %v7981_v63 = vld [vmem:[#allocation182_spill] sm:$0xff] }
 0x325   : > { %v2097_v53 = vsel %vm2075_vm14, %v7977_v48, %v7976_v18  ;;  %v1938_v19 = vadd.f32 %v7979_v11, %v1902_v39  ;;  %3232 = vmatmul.mubr.f32.gmra.mxu1 %v2611_v6  ;;  %v2573_v21 = vadd.f32 %v6864_v36, %v2537_v43  ;;  %v2151_v28 = vmul.f32 %v7885_v25, %v6532_v32  ;;  %v7983_v48 = vld [vmem:[#allocation118_spill] sm:$0xff] }
 0x326   : > { %v6950_v59 = vsel %vm2105_vm3, %v2097_v53, 0.0  ;;  %v2224_v8 = vmul.f32 %v6038_v7, %v7953_v23  ;;  %v2502_v51 = vadd.f32 %v2486_v37, %v2466_v34  ;;  %v2539_v10 = vadd.f32 %v2523_v13, %v2503_v55  ;;  %v7982_v23 = vld [vmem:[#allocation172_spill] sm:$0xff]  ;;  %v7984_v43 = vld [vmem:[#allocation34_spill] sm:$0xff] }
 0x327   : > { %v1974_v38 = vadd.f32 %v7980_v58, %v1938_v19  ;;  %v2187_v45 = vmul.f32 %v7699_v0, %v6647_v2  ;;  %v2596_v22 = vadd.f32 %v6377_v31, %v2573_v21  ;;  %v2223_v36 = vmul.f32 %v6038_v7, %v6770_v1 }
 0x328   : > { %v2240_v56 = vadd.f32 %v2224_v8, %v7981_v63  ;;  %v2260_v32 = vmul.f32 %v7733_v54, %v7964_v4  ;;  %v2538_v5 = vadd.f32 %v2522_v49, %v2502_v51  ;;  %v2575_v39 = vadd.f32 %v2559_v24, %v2539_v10  ;;  %v7985_v4 = vld [vmem:[#allocation190_spill] sm:$0xff]  ;;  %v7986_v8 = vld [vmem:[#allocation177_spill] sm:$0xff] }
 0x329   : > { %v2010_v37 = vadd.f32 %v7982_v23, %v1974_v38  ;;  %v2259_v18 = vmul.f32 %v7733_v54, %v6869_v35  ;;  %v2612_v53 = vmul.f32 %v2596_v22, %v7983_v48  ;;  %v2295_v47 = vmul.f32 %v6044_v57, %v6950_v59  ;;  %v7987_v51 = vld [vmem:[#allocation189_spill] sm:$0xff]  ;;  %v7988_v38 = vld [vmem:[#allocation47_spill] sm:$0xff] }
 0x32a   : > { %v2276_v6 = vadd.f32 %v2260_v32, %v2240_v56  ;;  %v2296_v13 = vmul.f32 %v6044_v57, %v7984_v43  ;;  %v2574_v34 = vadd.f32 %v2558_v42, %v2538_v5  ;;  %v2598_v55 = vadd.f32 %v6377_v31, %v2575_v39  ;;  %v7990_v32 = vld [vmem:[#allocation52_spill] sm:$0xff] }
 0x32b   : > { %v2046_v49 = vadd.f32 %v7985_v4, %v2010_v37  ;;  %v2362_v24 = vsel %vm2340_vm4, %v2337_v61, %v2325_v52  ;;  %3234 = vmatprep.mubr.f32.mxu1 %v2612_v53  ;;  %v2416_v11 = vmul.f32 %v6209_v50, %v7963_v60  ;;  %v2417_v21 = vmul.f32 %v6209_v50, %v6613_v16  ;;  %v7989_v52 = vld [vmem:[#allocation119_spill] sm:$0xff] }
 0x32c   : > { %v2312_v19 = vadd.f32 %v2296_v13, %v2276_v6  ;;  %v2012_v10 = vadd.f32 %v7987_v51, %v7986_v8  ;;  %v2597_v42 = vadd.f32 %v6377_v31, %v2574_v34  ;;  %v2326_v22 = vrot.slane %v7988_v38, 2  ;;  %v7991_v16 = vld [vmem:[#allocation115_spill] sm:$0xff] }
 0x32d   : > { %v2167_v58 = vadd.f32 %v2151_v28, %v2046_v49  ;;  %v2453_v63 = vmul.f32 %v6242_v30, %v6722_v26  ;;  %v2614_v61 = vmul.f32 %v2598_v55, %v7989_v52  ;;  %v2153_v5 = vmul.f32 %v7885_v25, %v6647_v2  ;;  %v7992_v28 = vld [vmem:[#allocation168_spill] sm:$0xff]  ;;  %v7993_v49 = vld [vmem:[#allocation35_spill] sm:$0xff] }
 0x32e   : > { %v2433_v56 = vadd.f32 %v2417_v21, %v2312_v19  ;;  %v2048_v60 = vadd.f32 %v7990_v32, %v2012_v10  ;;  %v2613_v39 = vmul.f32 %v2597_v42, %v7991_v16  ;;  %v6994_v37 = vsel %vm2370_vm6, %v2362_v24, 0.0  ;;  %v7994_v10 = vld [vmem:[#allocation205_spill] sm:$0xff] }
 0x32f   : > { %v2203_v23 = vadd.f32 %v2187_v45, %v2167_v58  ;;  %v2338_v48 = vrot.slane %v7992_v28, 2  ;;  %v2489_v6 = vmul.f32 %v6260_v46, %v6839_v14  ;;  %v2189_v13 = vmul.f32 %v7699_v0, %v6770_v1  ;;  %v7995_v42 = vld [vmem:[#allocation49_spill] sm:$0xff] }
 0x330   : > { %v2469_v53 = vadd.f32 %v2453_v63, %v2433_v56  ;;  %v2169_v43 = vadd.f32 %v2153_v5, %v2048_v60  ;;  %3235 = vmatmul.mubr.f32.gmra.mxu1 %v2613_v39  ;;  %v2452_v2 = vmul.f32 %v6242_v30, %v7968_v3  ;;  %v2488_v45 = vmul.f32 %v6260_v46, %v7972_v33  ;;  %v7996_v56 = vld [vmem:[#allocation200_spill] sm:$0xff]  ;;  %v7998_v28 = vld [vmem:[#allocation105_spill] sm:$0xff] }
 0x331   : > { %v2239_v34 = vadd.f32 %v2223_v36, %v2203_v23  ;;  %v2351_v55 = vsel %vm2340_vm4, %v2326_v22, %v2338_v48  ;;  %3237 = vmatprep.mubr.f32.mxu1 %v2614_v61  ;;  %v2133_v24 = vsel %vm2105_vm3, %v7993_v49, 0.0  ;;  %v2225_v21 = vmul.f32 %v6038_v7, %v6869_v35  ;;  %v7997_v23 = vld [vmem:[#allocation195_spill] sm:$0xff] }
 0x332   : > { %v2505_v4 = vadd.f32 %v2489_v6, %v2469_v53  ;;  %v2205_v19 = vadd.f32 %v2189_v13, %v2169_v43  ;;  %v2524_v8 = vmul.f32 %v6263_v12, %v6897_v41  ;;  %v2560_v51 = vmul.f32 %v6306_v29, %v6994_v37 }
 0x333   : > { %v2275_v36 = vadd.f32 %v2259_v18, %v2239_v34  ;;  %v2278_v58 = vadd.f32 %v7995_v42, %v7994_v10  ;;  %v2525_v38 = vmul.f32 %v6263_v12, %v6927_v40  ;;  %v2561_v9 = vmul.f32 %v6306_v29, %v2351_v55 }
 0x334   : > { %v2241_v63 = vadd.f32 %v2225_v21, %v2205_v19  ;;  %v2261_v52 = vmul.f32 %v7733_v54, %v6950_v59  ;;  %v2297_v18 = vmul.f32 %v6044_v57, %v2133_v24  ;;  %v2419_v60 = vmul.f32 %v6209_v50, %v6722_v26  ;;  %v8001_v19 = vld [vmem:[#allocation183_spill] sm:$0xff] }
 0x335   : > { %v2311_v61 = vadd.f32 %v2295_v47, %v2275_v36  ;;  %v2314_v32 = vadd.f32 %v7996_v56, %v2278_v58  ;;  %v2541_v5 = vadd.f32 %v2525_v38, %v2505_v4  ;;  %v2363_v39 = vsel %vm2340_vm4, %v2338_v48, %v2326_v22  ;;  %v7999_v4 = vld [vmem:[#allocation38_spill] sm:$0xff] }
 0x336   : > { %v2277_v16 = vadd.f32 %v2261_v52, %v2241_v63  ;;  %v2050_v53 = vadd.f32 %v7998_v28, %v7997_v23  ;;  %v2455_v47 = vmul.f32 %v6242_v30, %v6839_v14  ;;  %v2155_v13 = vmul.f32 %v7885_v25, %v6770_v1 }
 0x337   : > { %v2432_v6 = vadd.f32 %v2416_v11, %v2311_v61  ;;  %v2435_v43 = vadd.f32 %v2419_v60, %v2314_v32  ;;  %v2418_v26 = vmul.f32 %v6209_v50, %v7968_v3  ;;  %v8000_v49 = vrot.slane %v7999_v4, 2 }
 0x338   : > { %v2313_v34 = vadd.f32 %v2297_v18, %v2277_v16  ;;  %v8002_v21 = vrot.slane %v8001_v19, 2  ;;  %v2491_v11 = vmul.f32 %v6260_v46, %v6927_v40  ;;  %v2171_v14 = vadd.f32 %v2155_v13, %v2050_v53 }
 0x339   : > { %v2468_v48 = vadd.f32 %v2452_v2, %v2432_v6  ;;  %v2471_v36 = vadd.f32 %v2455_v47, %v2435_v43  ;;  %v2191_v25 = vmul.f32 %v7699_v0, %v6869_v35  ;;  %v2577_v1 = vadd.f32 %v2561_v9, %v2541_v5  ;;  %v8004_v43 = vld [vmem:[#allocation155_spill] sm:$0xff] }
 0x33a   : > { %v2352_v22 = vsel %vm2340_vm4, %v8002_v21, %v8000_v49  ;;  %v2434_v10 = vadd.f32 %v2418_v26, %v2313_v34  ;;  %v2454_v3 = vmul.f32 %v6242_v30, %v7972_v33  ;;  %v2527_v42 = vmul.f32 %v6263_v12, %v2351_v55 }
 0x33b   : > { %v2504_v58 = vadd.f32 %v2488_v45, %v2468_v48  ;;  %v2507_v38 = vadd.f32 %v2491_v11, %v2471_v36  ;;  %v2207_v63 = vadd.f32 %v2191_v25, %v2171_v14  ;;  %v2227_v52 = vmul.f32 %v6038_v7, %v6950_v59  ;;  %v8003_v59 = vld [vmem:[#allocation65_spill] sm:$0xff]  ;;  %v3459_v11 = vld [vmem:[#allocation2 + $0x28] sm:$0xff] }
 0x33c   : > { %v2398_v40 = vsel %vm2370_vm6, %v2363_v39, 0.0  ;;  %v2470_v2 = vadd.f32 %v2454_v3, %v2434_v10  ;;  %v2490_v0 = vmul.f32 %v6260_v46, %v6897_v41  ;;  %v2563_v35 = vmul.f32 %v6306_v29, %v2352_v22 }
 0x33d   : > { %v2540_v9 = vadd.f32 %v2524_v8, %v2504_v58  ;;  %v2543_v61 = vadd.f32 %v2527_v42, %v2507_v38  ;;  %v2243_v18 = vadd.f32 %v2227_v52, %v2207_v63  ;;  %v2263_v55 = vmul.f32 %v7733_v54, %v2133_v24  ;;  %v3462_v42 = vld [vmem:[#allocation2 + $0x30] sm:$0xff] }
 0x33e   : > { %v2600_v45 = vadd.f32 %v6377_v31, %v2577_v1  ;;  %v2506_v56 = vadd.f32 %v2490_v0, %v2470_v2  ;;  %v2526_v7 = vmul.f32 %v6263_v12, %v6994_v37  ;;  %v2299_v32 = vmul.f32 %v6044_v57, %v8003_v59  ;;  %v3461_v1 = vld [vmem:[#allocation2 + $0x38] sm:$0xff]  ;;  %v3466_v59 = vld [vmem:[#allocation2 + $0x50] sm:$0xff] }
 0x33f   : > { %v2576_v60 = vadd.f32 %v2560_v51, %v2540_v9  ;;  %v2579_v5 = vadd.f32 %v2563_v35, %v2543_v61  ;;  %v2279_v16 = vadd.f32 %v2263_v55, %v2243_v18  ;;  %v2562_v23 = vmul.f32 %v6306_v29, %v2398_v40  ;;  %v3464_v35 = vld [vmem:[#allocation2 + $0x40] sm:$0xff] }
 0x340   : > { %v2542_v39 = vadd.f32 %v2526_v7, %v2506_v56  ;;  %v2420_v54 = vmul.f32 %v6209_v50, %v7972_v33  ;;  %v2616_v24 = vmul.f32 %v2600_v45, %v7944_v62  ;;  %v8005_v57 = vmov %v8002_v21  ;;  %v3465_v45 = vld [vmem:[#allocation2 + $0x58] sm:$0xff] }
 0x341   : > { %v2599_v8 = vadd.f32 %v6377_v31, %v2576_v60  ;;  %v2315_v28 = vadd.f32 %v2299_v32, %v2279_v16  ;;  %v2602_v6 = vadd.f32 %v6377_v31, %v2579_v5  ;;  %v8006_v51 = vmov %v8000_v49 }
 0x342   : > { %v2578_v53 = vadd.f32 %v2562_v23, %v2542_v39  ;;  %v2364_v13 = vsel %vm2340_vm4, %v8006_v51, %v8005_v57  ;;  %v2456_v26 = vmul.f32 %v6242_v30, %v6897_v41  ;;  %v2492_v33 = vmul.f32 %v6260_v46, %v6994_v37  ;;  %v3467_v39 = vld [vmem:[#allocation2 + $0x68] sm:$0xff] }
 0x343   : > { %v2615_v47 = vmul.f32 %v2599_v8, %v8004_v43  ;;  %v2436_v34 = vadd.f32 %v2420_v54, %v2315_v28  ;;  %v2618_v49 = vmul.f32 %v2602_v6, %v7969_v27  ;;  %v2400_v4 = vsel %vm2370_vm6, %v2364_v13, 0.0  ;;  %v3468_v28 = vld [vmem:[#allocation2 + $0x60] sm:$0xff]  ;;  %v3469_v43 = vld [vmem:[#allocation2 + $0x78] sm:$0xff]  ;;  %v3470_v13 = vld [vmem:[#allocation2 + $0x70] sm:$0xff] }
 0x344   : > { %v2601_v50 = vadd.f32 %v6377_v31, %v2578_v53  ;;  %v2528_v21 = vmul.f32 %v6263_v12, %v2398_v40  ;;  %v2564_v41 = vmul.f32 %v6306_v29, %v2400_v4  ;;  %v3463_v40 = vld [vmem:[#allocation2 + $0x48] sm:$0xff]  ;;  %v3472_v4 = vld [vmem:[#allocation2 + $0x80] sm:$0xff] }
 0x345   : > { %3238 = vmatmul.mubr.f32.gmra.mxu1 %v2615_v47  ;;  %v2472_v62 = vadd.f32 %v2456_v26, %v2436_v34 }
 0x346   : > { %3240 = vmatprep.mubr.f32.mxu1 %v2616_v24  ;;  %v2617_v44 = vmul.f32 %v2601_v50, %v7949_v17 }
 0x347   : > { %v2508_v19 = vadd.f32 %v2492_v33, %v2472_v62  ;;  %v3471_v62 = vld [vmem:[#allocation2 + $0x88] sm:$0xff] }
 0x349   : > { %3241 = vmatmul.mubr.f32.gmra.mxu1 %v2617_v44  ;;  %v2544_v30 = vadd.f32 %v2528_v21, %v2508_v19 }
 0x34a   : > { %3243 = vmatprep.mubr.f32.mxu1 %v2618_v49 }
 0x34b   : > { %v2580_v22 = vadd.f32 %v2564_v41, %v2544_v30  ;;  %v3473_v41 = vld [vmem:[#allocation2 + $0x98] sm:$0xff] }
 0x34d   : > { %v2603_v46 = vadd.f32 %v6377_v31, %v2580_v22  ;;  %v3460_v31 = vld [vmem:[#allocation2 + $0x20] sm:$0xff] }
 0x34f   : > { %v2619_v27 = vmul.f32 %v2603_v46, %v7973_v20 }
 0x351   : > { %3244 = vmatmul.mubr.f32.gmra.mxu1 %v2619_v27  ;;  %v3474_v27 = vld [vmem:[#allocation2 + $0x90] sm:$0xff] }
 0x3a8   : > { %v3224_v17 = vpop.f32.mrf.mxu1 }
 0x3a9   : > { %v2715_v12 = vadd.f32 %v3224_v17, %v7092_v15 }
 0x3aa   : > { %v2709_v37 = vpop.f32.mrf.mxu1 }
 0x3ab   : > { %v2789_v29 = vadd.f32 %v3459_v11, %v2715_v12  ;;  %v2710_v48 = vadd.f32 %v7092_v15, %v2709_v37 }
 0x3ad   : > { %2805 = vst [vmem:[%s3971_s22 + $0x8] sm:$0xff] %v2789_v29  ;;  %v2788_v36 = vadd.f32 %v3460_v31, %v2710_v48 }
 0x3af   : > { %2804 = vst [vmem:[%s3971_s22] sm:$0xff] %v2788_v36 }
 0x3bf   : > { %v3227_v20 = vpop.f32.mrf.mxu1 }
 0x3c0   : > { %v2725_v14 = vadd.f32 %v3227_v20, %v7092_v15 }
 0x3c1   : > { %v2719_v25 = vpop.f32.mrf.mxu1 }
 0x3c2   : > { %v2791_v10 = vadd.f32 %v3461_v1, %v2725_v14  ;;  %v2720_v3 = vadd.f32 %v7092_v15, %v2719_v25 }
 0x3c4   : > { %2807 = vst [vmem:[%s3971_s22 + $0x18] sm:$0xff] %v2791_v10  ;;  %v2790_v58 = vadd.f32 %v3462_v42, %v2720_v3 }
 0x3c6   : > { %2806 = vst [vmem:[%s3971_s22 + $0x10] sm:$0xff] %v2790_v58 }
 0x3d0   : > { %v3230_v38 = vpop.f32.mrf.mxu1 }
 0x3d1   : > { %v2735_v63 = vadd.f32 %v3230_v38, %v7092_v15 }
 0x3d2   : > { %v2729_v52 = vpop.f32.mrf.mxu1 }
 0x3d3   : > { %v2793_v2 = vadd.f32 %v3463_v40, %v2735_v63  ;;  %v2730_v0 = vadd.f32 %v7092_v15, %v2729_v52 }
 0x3d5   : > { %2809 = vst [vmem:[%s3971_s22 + $0x28] sm:$0xff] %v2793_v2  ;;  %v2792_v9 = vadd.f32 %v3464_v35, %v2730_v0 }
 0x3d7   : > { %2808 = vst [vmem:[%s3971_s22 + $0x20] sm:$0xff] %v2792_v9 }
 0x3e5   : > { %v3233_v61 = vpop.f32.mrf.mxu1 }
 0x3e6   : > { %v2745_v18 = vadd.f32 %v3233_v61, %v7092_v15 }
 0x3e7   : > { %v2739_v55 = vpop.f32.mrf.mxu1 }
 0x3e8   : > { %v2795_v56 = vadd.f32 %v3465_v45, %v2745_v18  ;;  %v2740_v7 = vadd.f32 %v7092_v15, %v2739_v55 }
 0x3ea   : > { %2811 = vst [vmem:[%s3971_s22 + $0x38] sm:$0xff] %v2795_v56  ;;  %v2794_v32 = vadd.f32 %v3466_v59, %v2740_v7 }
 0x3ec   : > { %2810 = vst [vmem:[%s3971_s22 + $0x30] sm:$0xff] %v2794_v32 }
 0x3f0   : > { %v3236_v60 = vpop.f32.mrf.mxu1 }
 0x3f1   : > { %v2755_v5 = vadd.f32 %v3236_v60, %v7092_v15 }
 0x3f2   : > { %v2749_v16 = vpop.f32.mrf.mxu1 }
 0x3f3   : > { %v2797_v23 = vadd.f32 %v3467_v39, %v2755_v5  ;;  %v2750_v8 = vadd.f32 %v7092_v15, %v2749_v16 }
 0x3f5   : > { %2813 = vst [vmem:[%s3971_s22 + $0x48] sm:$0xff] %v2797_v23  ;;  %v2796_v54 = vadd.f32 %v3468_v28, %v2750_v8 }
 0x3f7   : > { %2812 = vst [vmem:[%s3971_s22 + $0x40] sm:$0xff] %v2796_v54 }
 0x405   : > { %v3239_v24 = vpop.f32.mrf.mxu1 }
 0x406   : > { %v2765_v53 = vadd.f32 %v3239_v24, %v7092_v15 }
 0x407   : > { %v2759_v6 = vpop.f32.mrf.mxu1 }
 0x408   : > { %v2799_v47 = vadd.f32 %v3469_v43, %v2765_v53  ;;  %v2760_v57 = vadd.f32 %v7092_v15, %v2759_v6 }
 0x409   : > { %v3242_v51 = vpop.f32.mrf.mxu1 }
 0x40a   : > { %2815 = vst [vmem:[%s3971_s22 + $0x58] sm:$0xff] %v2799_v47  ;;  %v2798_v34 = vadd.f32 %v3470_v13, %v2760_v57  ;;  %v2775_v26 = vadd.f32 %v3242_v51, %v7092_v15 }
 0x40b   : > { %v2769_v50 = vpop.f32.mrf.mxu1 }
 0x40c   : > { %2814 = vst [vmem:[%s3971_s22 + $0x50] sm:$0xff] %v2798_v34  ;;  %v2801_v33 = vadd.f32 %v3471_v62, %v2775_v26  ;;  %v2770_v49 = vadd.f32 %v7092_v15, %v2769_v50 }
 0x40e   : > { %2817 = vst [vmem:[%s3971_s22 + $0x68] sm:$0xff] %v2801_v33  ;;  %v2800_v44 = vadd.f32 %v3472_v4, %v2770_v49 }
 0x410   : > { %2816 = vst [vmem:[%s3971_s22 + $0x60] sm:$0xff] %v2800_v44 }
 0x411   : > { %v3245_v19 = vpop.f32.mrf.mxu1 }
 0x412   : > { %v2785_v21 = vadd.f32 %v3245_v19, %v7092_v15 }
 0x413   : > { %v2779_v30 = vpop.f32.mrf.mxu1 }
 0x414   : > { %v2803_v22 = vadd.f32 %v3473_v41, %v2785_v21  ;;  %v2780_v46 = vadd.f32 %v7092_v15, %v2779_v30 }
 0x416   : > { %2819 = vst [vmem:[%s3971_s22 + $0x78] sm:$0xff] %v2803_v22  ;;  %v2802_v17 = vadd.f32 %v3474_v27, %v2780_v46 }
 0x418   : > { %2818 = vst [vmem:[%s3971_s22 + $0x70] sm:$0xff] %v2802_v17 }
 0x419   : > { %3632 = shalt.err (!%p3629_p8)
}
 0x41a   : > { %s3633_s22 = scalar_lea.hbm %s7133_s23, 2048  ;;  %s3637_s3 = scalar_lea.hbm %s7196_s7, 8192 }
 0x41b   : > { %p3634_p10 = scmp.ne.s32.totalorder %s7133_s23, %s3633_s22  ;;  %p3638_p0 = scmp.lt.s32.totalorder %s7133_s23, %s7196_s7 }
 0x41c   : > { %p3639_p1 = scmp.lt.s32.totalorder %s3637_s3, %s3633_s22 }
 0x41d   : > { %p3635_p4 = pnand %p3634_p10, %p3831_p3 }
 0x41e   : > { %p3640_p7 = por %p3639_p1, %p3638_p0 }
 0x41f   : > { %p3636_p12 = pneg %p3635_p4 }
 0x421   : > { %p3641_p9 = pnand %p3640_p7, %p3636_p12 }
 0x423   : > { %3644 = shalt.err (!%p3641_p9)
}
 0x424   : > { %s3737_s18 = smov 128   ;;  %s3738_s16 = smov 8  }
 0x425   : > { %3258 = dma.vmem_to_hbm [thread:$0]  (%p3831_p3), %s7127_s10, 2048, %s7133_s23, %s7138_s20, %s3737_s18, %s3737_s18, %s3738_s16  }
 0x426 PF: > { %s8008_s21 = sld [smem:[#allocation30_spill]]  ;;  %p3280_p11 = scmp.ge.s32.totalorder %s3725_s8, 2 }
 0x427   : > { %s2852_s29 = sand.u32 1, %s3697_s24  }
 0x428   : > { %s2853_s9 = scalar_lea.sflag [#allocation6], %s2852_s29 }
 0x42c   : > { %p8009_p13 = scmp.ne.s32.totalorder %s8008_s21, 0 }
 0x42e   : > { %p3271_p2 = pnand %p3280_p11, %p8009_p13 }
 0x430   : > { %p3272_p5 = pneg %p3271_p2 }
 0x432   : > { %3692 = dma.done.wait (%p3272_p5), %s2853_s9, 2048  }
 0x433   : > { %3694 = vsyncadd (%p3272_p5), %s2853_s9, 4294965248  ;;  %s22_s8 = sadd.s32 1, %s3725_s8   ;;  %s8010_s11 = sld [smem:[#allocation25_spill]] }
 0x434   : > { %p19_p6 = scmp.ge.s32.totalorder %s22_s8, 6   ;;  %s8011_s26 = sld [smem:[#allocation31_spill]] }
 0x435   : > { %s8012_s27 = sld [smem:[#allocation26_spill]]  ;;  %s8016_s24 = smov %s3701_s25 }
 0x436   : > { %s8013_s28 = sld [smem:[#allocation27_spill]]  ;;  %21 = sbr.rel (!%p19_p6) target bundleno = 11 (0xb), region = 110 }
 0x437   : > { %s8014_s29 = sld [smem:[#allocation28_spill]] }
 0x438   : > { %s8015_s30 = sld [smem:[#allocation29_spill]] }
 0x439   : > { %s8017_s25 = smov %s8010_s11 }
 0x43b   :  { %2858 = vsyncpa [#allocation5], 1 }
 0x43c   :  { %2860 = vsyncpa [#allocation5 + $0x1], 1 }
 0x43d   :  { %2861 = vsyncpa [#allocation8], 1 }
 0x43e   :  { %2862 = vsyncpa [#allocation6], 1 }
 0x43f   :  { %2864 = vsyncpa [#allocation6 + $0x1], 1 }
 0x440   :  { %2865 = vsyncmov [#allocation3] }
 0x443   :  { %s2866_s15 = vpop.sfrf %2865 }
 0x444   :  { %p3045_p3 = scmp.ne.s32.totalorder %s2866_s15, 0 }
 0x446   :  { %2870 = shalt.err (%p3045_p3)  }
 0x447   :  { %2872 = vsyncmov [#allocation3 + $0x1] }
 0x44a   :  { %s2873_s10 = vpop.sfrf %2872 }
 0x44b   :  { %p3046_p8 = scmp.ne.s32.totalorder %s2873_s10, 0 }
 0x44d   :  { %2877 = shalt.err (%p3046_p8)  }
 0x44e   :  { %2879 = vsyncmov [#allocation3 + $0x2] }
 0x451   :  { %s2880_s23 = vpop.sfrf %2879 }
 0x452   :  { %p3047_p10 = scmp.ne.s32.totalorder %s2880_s23, 0 }
 0x454   :  { %2884 = shalt.err (%p3047_p10)  }

</bundles_post_ra>
